<compile_context>
chip_gen: v6e
topology: v6e:2x2x1
jax: 0.10.0
libtpu: 0.0.40
codegen_flags: <defaults>
</compile_context>

<pallas_src>
import functools

import jax
import jax.numpy as jnp
from jax.experimental import pallas as pl
from jax.experimental.pallas import tpu as pltpu


# --------------------------------------------------------------------------
# Fused forward kernel (single grid step; batch folded into M = rows*S).
# TODO(synk): on v7x (2 TensorCores) a 2-way "parallel" batch grid (B/2 rows
# per step) would use both cores; kept single-step here since 1*S=28 rows per
# step is not sublane-aligned for a flattened block.
# --------------------------------------------------------------------------
def _fwd_kernel(x_ref, emb_pack_ref, w_pack_ref, ff2_wT_ref, bias_pack_ref,
                cls_pack_ref, o_ref, attn_ref, *,
                num_heads, num_layers, eps, input_dim, seq_len, rows):
    D, S = input_dim, seq_len
    E = emb_pack_ref.shape[1]
    F = ff2_wT_ref.shape[1]
    Dh = E // num_heads
    M = rows * S
    scale = 1.0 / float(Dh) ** 0.5

    def layer_norm(z, g, b):
        mu = jnp.mean(z, axis=-1, keepdims=True)
        zc = z - mu
        var = jnp.mean(zc * zc, axis=-1, keepdims=True)
        return zc * jax.lax.rsqrt(var + eps) * g + b

    # Block-diagonal attention bias and mean-pool matrix, shared by all
    # layers / heads: position i may attend to j only within its batch row.
    ri = jax.lax.broadcasted_iota(jnp.int32, (M, M), 0)
    ci = jax.lax.broadcasted_iota(jnp.int32, (M, M), 1)
    same = None
    for b in range(rows):
        lo = b * S
        blk = (ri >= lo) & (ri < lo + S) & (ci >= lo) & (ci < lo + S)
        same = blk if same is None else (same | blk)
    neg_bias = jnp.where(same, 0.0, -1e30).astype(jnp.float32)        # (M, M)

    pr = jax.lax.broadcasted_iota(jnp.int32, (rows, M), 0)
    pc = jax.lax.broadcasted_iota(jnp.int32, (rows, M), 1)
    pool_mat = jnp.where((pc >= pr * S) & (pc < (pr + 1) * S),
                         1.0 / S, 0.0).astype(jnp.float32)            # (rows, M)

    # ---- embedding + positional encoding on the batch-folded (M, .) slab --
    x = x_ref[...]                                                    # (M, D)
    emb_wT = emb_pack_ref[0:D, :]                                     # (D, E)
    posb = emb_pack_ref[D:D + M, :]                                   # (M, E): pos + emb bias, pre-tiled
    h = jnp.dot(x, emb_wT, preferred_element_type=jnp.float32) + posb

    # ---- transformer encoder layers (PyTorch default: post-norm, ReLU) ----
    # TODO(synk): matmul operands kept fp32 to match the fp32 PyTorch
    # reference; cast to bf16 here if ~1e-2 relative tolerance is acceptable.
    for l in range(num_layers):
        wp = w_pack_ref[l]                        # (E, 3E + E + F) packed weights
        in_wT = wp[:, 0:3 * E]
        out_wT = wp[:, 3 * E:4 * E]
        ff1_wT = wp[:, 4 * E:4 * E + F]
        bp = bias_pack_ref[l]                     # (8, W) packed bias / LN rows
        in_b, out_b = bp[0:1, 0:3 * E], bp[1:2, 0:E]
        ln1_g, ln1_b = bp[2:3, 0:E], bp[3:4, 0:E]
        ff1_b, ff2_b = bp[4:5, 0:F], bp[5:6, 0:E]
        ln2_g, ln2_b = bp[6:7, 0:E], bp[7:8, 0:E]

        # fused QKV projection for all batch rows at once
        qkv = jnp.dot(h, in_wT, preferred_element_type=jnp.float32) + in_b
        q = qkv[:, 0:E]
        k = qkv[:, E:2 * E]
        v = qkv[:, 2 * E:3 * E]

        # per-head attention over the whole (M, .) slab with the block-diagonal
        # mask; each head's output lands in the (M, E) scratch at a static lane
        # offset so the output projection is a single (M,E)@(E,E) matmul.
        for hh in range(num_heads):
            lo = hh * Dh
            qh = q[:, lo:lo + Dh]
            kh = k[:, lo:lo + Dh]
            vh = v[:, lo:lo + Dh]
            s = jax.lax.dot_general(qh, kh, (((1,), (1,)), ((), ())),
                                    preferred_element_type=jnp.float32)
            s = s * scale + neg_bias
            s = s - jnp.max(s, axis=-1, keepdims=True)
            p = jnp.exp(s)
            p = p / jnp.sum(p, axis=-1, keepdims=True)       # exact softmax
            attn_ref[:, lo:lo + Dh] = jnp.dot(
                p, vh, preferred_element_type=jnp.float32)

        attn = jnp.dot(attn_ref[...], out_wT,
                       preferred_element_type=jnp.float32) + out_b
        h = layer_norm(h + attn, ln1_g, ln1_b)    # dropout == identity (eval)

        ff = jnp.dot(h, ff1_wT, preferred_element_type=jnp.float32) + ff1_b
        ff = jnp.maximum(ff, 0.0)
        ff = jnp.dot(ff, ff2_wT_ref[l], preferred_element_type=jnp.float32) + ff2_b
        h = layer_norm(h + ff, ln2_g, ln2_b)

    # ---- per-row mean pooling (one matmul, no unaligned slices) + classifier
    pooled = jnp.dot(pool_mat, h, preferred_element_type=jnp.float32)   # (rows, E)
    cls_wT = cls_pack_ref[0:E, :]
    cls_b = cls_pack_ref[E:E + 1, :]
    logits = jnp.dot(pooled, cls_wT, preferred_element_type=jnp.float32) + cls_b
    o_ref[...] = logits.astype(o_ref.dtype)


# ---------------------------- wrapper ----------------------------

_PACKED_WEIGHTS = ("w_pack", "ff2_wT", "bias_pack", "cls_pack")


def transformer_classifier(params, x, *, num_heads):
    B, S, D = x.shape
    L, E = params["w_pack"].shape[0], params["w_pack"].shape[1]
    C = params["cls_pack"].shape[1]
    assert params["posb"].shape[0] == S, "sequence length must match pos_encoding"

    rows = B                      # fold the whole batch into one grid step
    M = rows * S

    # Flatten batch into the matmul M dimension and fold embedding bias /
    # positional encoding into a single (D + M, E) packed stream.
    x2 = x.reshape(B * S, D)
    emb_pack = jnp.concatenate(
        [params["emb_wT"], jnp.tile(params["posb"], (rows, 1))], axis=0)

    weights = (emb_pack,) + tuple(params[k] for k in _PACKED_WEIGHTS)

    def whole_spec(arr):
        nd = arr.ndim
        return pl.BlockSpec(arr.shape, lambda b, _nd=nd: (0,) * _nd)

    in_specs = ([pl.BlockSpec((M, D), lambda b: (b, 0))]
                + [whole_spec(w) for w in weights])

    kernel = functools.partial(
        _fwd_kernel, num_heads=num_heads, num_layers=L, eps=1e-5,
        input_dim=D, seq_len=S, rows=rows)

    return pl.pallas_call(
        kernel,
        out_shape=jax.ShapeDtypeStruct((B, C), jnp.float32),
        grid=(B // rows,),
        in_specs=in_specs,
        out_specs=pl.BlockSpec((rows, C), lambda b: (b, 0)),
        scratch_shapes=[pltpu.VMEM((M, E), jnp.float32)],
        compiler_params=pltpu.CompilerParams(
            dimension_semantics=("parallel",)),
    )(x2, *weights)


# ---------------------------- parameters (kernel-ready packed layout) ----------------------------

def init_params(key, input_dim, embed_dim, num_heads, num_layers, num_classes,
                ffn_hidden_dim, seq_len=28):
    """Weights stored pre-transposed, layer-stacked and PACKED into a handful
    of arrays so the fused kernel only opens ~5 DMA streams."""
    def nrm(k, shape, scale=0.1):
        return scale * jax.random.normal(k, shape, jnp.float32)

    E, F, L, C = embed_dim, ffn_hidden_dim, num_layers, num_classes
    keys = jax.random.split(key, 7)

    emb_wT = nrm(keys[0], (input_dim, E))                  # embedding.weight.T
    emb_b = jnp.zeros((E,), jnp.float32)                   # embedding.bias
    pos = jax.random.normal(keys[1], (seq_len, E), jnp.float32)  # (1,28,E) squeezed

    in_wT = nrm(keys[2], (L, E, 3 * E))                    # in_proj_weight.T per layer
    out_wT = nrm(keys[3], (L, E, E))                       # out_proj.weight.T
    ff1_wT = nrm(keys[4], (L, E, F))                       # linear1.weight.T
    ff2_wT = nrm(keys[5], (L, F, E))                       # linear2.weight.T

    bias_rows = [
        jnp.zeros((L, 3 * E), jnp.float32),                # 0: in_proj bias
        jnp.zeros((L, E), jnp.float32),                    # 1: out_proj bias
        jnp.ones((L, E), jnp.float32),                     # 2: norm1 gamma
        jnp.zeros((L, E), jnp.float32),                    # 3: norm1 beta
        jnp.zeros((L, F), jnp.float32),                    # 4: linear1 bias
        jnp.zeros((L, E), jnp.float32),                    # 5: linear2 bias
        jnp.ones((L, E), jnp.float32),                     # 6: norm2 gamma
        jnp.zeros((L, E), jnp.float32),                    # 7: norm2 beta
    ]
    W = max(3 * E, F, E)
    bias_pack = jnp.concatenate(
        [jnp.pad(r, ((0, 0), (0, W - r.shape[1])))[:, None, :] for r in bias_rows],
        axis=1)                                            # (L, 8, W)

    return {
        "emb_wT": emb_wT,
        "posb": pos + emb_b[None, :],                      # pos_encoding + embedding bias
        "w_pack": jnp.concatenate([in_wT, out_wT, ff1_wT], axis=-1),  # (L, E, 3E+E+F)
        "ff2_wT": ff2_wT,                                  # (L, F, E)
        "bias_pack": bias_pack,                            # (L, 8, W)
        "cls_pack": jnp.concatenate(
            [nrm(keys[6], (E, C)), jnp.zeros((1, C), jnp.float32)], axis=0),  # (E+1, C)
    }


# ---------------------------- pure-JAX reference (sanity check) ----------------------------

def _reference_forward(params, x, num_heads):
    hp = jax.lax.Precision.HIGHEST
    B, S, D = x.shape
    L, E = params["w_pack"].shape[0], params["w_pack"].shape[1]
    F = params["ff2_wT"].shape[1]
    Dh = E // num_heads

    def ln(z, g, b):
        mu = z.mean(-1, keepdims=True)
        var = ((z - mu) ** 2).mean(-1, keepdims=True)
        return (z - mu) * jax.lax.rsqrt(var + 1e-5) * g + b

    h = jnp.einsum("bsd,de->bse", x, params["emb_wT"], precision=hp) + params["posb"][None]
    for l in range(L):
        wp = params["w_pack"][l]
        in_wT, out_wT, ff1_wT = wp[:, :3 * E], wp[:, 3 * E:4 * E], wp[:, 4 * E:4 * E + F]
        bp = params["bias_pack"][l]
        in_b, out_b = bp[0, :3 * E], bp[1, :E]
        ln1_g, ln1_b = bp[2, :E], bp[3, :E]
        ff1_b, ff2_b = bp[4, :F], bp[5, :E]
        ln2_g, ln2_b = bp[6, :E], bp[7, :E]

        qkv = jnp.einsum("bse,ef->bsf", h, in_wT, precision=hp) + in_b
        q, k, v = qkv[..., :E], qkv[..., E:2 * E], qkv[..., 2 * E:]
        split = lambda t: t.reshape(B, S, num_heads, Dh).transpose(0, 2, 1, 3)
        qh, kh, vh = split(q), split(k), split(v)
        s = jnp.einsum("bhqd,bhkd->bhqk", qh, kh, precision=hp) / (Dh ** 0.5)
        p = jax.nn.softmax(s, axis=-1)
        oh = jnp.einsum("bhqk,bhkd->bhqd", p, vh, precision=hp)
        oh = oh.transpose(0, 2, 1, 3).reshape(B, S, E)
        attn = jnp.einsum("bse,ef->bsf", oh, out_wT, precision=hp) + out_b
        h = ln(h + attn, ln1_g, ln1_b)
        ff = jnp.maximum(jnp.einsum("bse,ef->bsf", h, ff1_wT, precision=hp) + ff1_b, 0.0)
        ff = jnp.einsum("bsf,fe->bse", ff, params["ff2_wT"][l], precision=hp) + ff2_b
        h = ln(h + ff, ln2_g, ln2_b)
    pooled = h.mean(axis=1)
    return jnp.dot(pooled, params["cls_pack"][:E], precision=hp) + params["cls_pack"][E]


if __name__ == "__main__":
    B, S = 2, 28                        # seq length fixed at 28 by pos_encoding
    input_dim, embed_dim, num_heads = 16, 32, 4
    num_layers, num_classes, ffn_hidden_dim = 2, 10, 64

    key = jax.random.PRNGKey(0)
    kp, kx = jax.random.split(key)
    params = init_params(kp, input_dim, embed_dim, num_heads, num_layers,
                         num_classes, ffn_hidden_dim, seq_len=S)
    x = jax.random.normal(kx, (B, S, input_dim), jnp.float32)

    fwd = jax.jit(functools.partial(transformer_classifier, num_heads=num_heads))
    logits = fwd(params, x)
    jax.block_until_ready(logits)
    assert logits.shape == (B, num_classes)

    # sanity check against a pure-JAX reference of the same forward pass
    ref = _reference_forward(params, x, num_heads)
    err = float(jnp.max(jnp.abs(logits - ref)))
    ref_scale = float(jnp.max(jnp.abs(ref)))
    assert err <= 5e-2 * max(ref_scale, 1e-3), f"mismatch: err={err} ref={ref_scale}"
    print("KERNEL_OK")
</pallas_src>

<mosaic_0001>
module attributes {stable_mosaic.version = 11 : i64} {
  func.func @_fwd_kernel(%arg0: i32, %arg1: memref<56x16xf32, #tpu.memory_space<vmem>>, %arg2: memref<72x32xf32, #tpu.memory_space<vmem>>, %arg3: memref<2x32x192xf32, #tpu.memory_space<vmem>>, %arg4: memref<2x64x32xf32, #tpu.memory_space<vmem>>, %arg5: memref<2x8x96xf32, #tpu.memory_space<vmem>>, %arg6: memref<33x10xf32, #tpu.memory_space<vmem>>, %arg7: memref<2x10xf32, #tpu.memory_space<vmem>>, %arg8: memref<56x32xf32, #tpu.memory_space<vmem>>) attributes {dimension_semantics = [#tpu.dimension_semantics<parallel>], iteration_bounds = array<i64: 1>, scalar_prefetch = 0 : i64, scratch_operands = 1 : i64, tpu.core_type = #tpu.core_type<tc>, window_params = [{transform_indices = @transform_0, window_bounds = array<i64: 56, 16>}, {pipeline_mode = #tpu.pipeline_mode<synchronous>, transform_indices = @transform_1, window_bounds = array<i64: 72, 32>}, {pipeline_mode = #tpu.pipeline_mode<synchronous>, transform_indices = @transform_2, window_bounds = array<i64: 2, 32, 192>}, {pipeline_mode = #tpu.pipeline_mode<synchronous>, transform_indices = @transform_3, window_bounds = array<i64: 2, 64, 32>}, {pipeline_mode = #tpu.pipeline_mode<synchronous>, transform_indices = @transform_4, window_bounds = array<i64: 2, 8, 96>}, {pipeline_mode = #tpu.pipeline_mode<synchronous>, transform_indices = @transform_5, window_bounds = array<i64: 33, 10>}, {transform_indices = @transform_6, window_bounds = array<i64: 2, 10>}]} {
    %0 = tpu.iota {dimensions = array<i32: 0>} : vector<56x56xi32>
    %1 = tpu.iota {dimensions = array<i32: 1>} : vector<56x56xi32>
    %c0_i32 = arith.constant 0 : i32
    %2 = vector.broadcast %c0_i32 : i32 to vector<56x56xi32>
    %3 = arith.cmpi sge, %0, %2 : vector<56x56xi32>
    %c28_i32 = arith.constant 28 : i32
    %4 = vector.broadcast %c28_i32 : i32 to vector<56x56xi32>
    %5 = arith.cmpi slt, %0, %4 : vector<56x56xi32>
    %6 = arith.andi %3, %5 : vector<56x56xi1>
    %c0_i32_0 = arith.constant 0 : i32
    %7 = vector.broadcast %c0_i32_0 : i32 to vector<56x56xi32>
    %8 = arith.cmpi sge, %1, %7 : vector<56x56xi32>
    %9 = arith.andi %6, %8 : vector<56x56xi1>
    %c28_i32_1 = arith.constant 28 : i32
    %10 = vector.broadcast %c28_i32_1 : i32 to vector<56x56xi32>
    %11 = arith.cmpi slt, %1, %10 : vector<56x56xi32>
    %12 = arith.andi %9, %11 : vector<56x56xi1>
    %c28_i32_2 = arith.constant 28 : i32
    %13 = vector.broadcast %c28_i32_2 : i32 to vector<56x56xi32>
    %14 = arith.cmpi sge, %0, %13 : vector<56x56xi32>
    %c56_i32 = arith.constant 56 : i32
    %15 = vector.broadcast %c56_i32 : i32 to vector<56x56xi32>
    %16 = arith.cmpi slt, %0, %15 : vector<56x56xi32>
    %17 = arith.andi %14, %16 : vector<56x56xi1>
    %c28_i32_3 = arith.constant 28 : i32
    %18 = vector.broadcast %c28_i32_3 : i32 to vector<56x56xi32>
    %19 = arith.cmpi sge, %1, %18 : vector<56x56xi32>
    %20 = arith.andi %17, %19 : vector<56x56xi1>
    %c56_i32_4 = arith.constant 56 : i32
    %21 = vector.broadcast %c56_i32_4 : i32 to vector<56x56xi32>
    %22 = arith.cmpi slt, %1, %21 : vector<56x56xi32>
    %23 = arith.andi %20, %22 : vector<56x56xi1>
    %24 = arith.ori %12, %23 : vector<56x56xi1>
    %cst = arith.constant 0.000000e+00 : f32
    %cst_5 = arith.constant -1.000000e+30 : f32
    %25 = vector.broadcast %cst : f32 to vector<56x56xf32>
    %26 = vector.broadcast %cst_5 : f32 to vector<56x56xf32>
    %27 = arith.select %24, %25, %26 : vector<56x56xi1>, vector<56x56xf32>
    %28 = tpu.iota {dimensions = array<i32: 0>} : vector<2x56xi32>
    %29 = tpu.iota {dimensions = array<i32: 1>} : vector<2x56xi32>
    %c28_i32_6 = arith.constant 28 : i32
    %30 = vector.broadcast %c28_i32_6 : i32 to vector<2x56xi32>
    %31 = arith.muli %28, %30 : vector<2x56xi32>
    %32 = arith.cmpi sge, %29, %31 : vector<2x56xi32>
    %c1_i32 = arith.constant 1 : i32
    %33 = vector.broadcast %c1_i32 : i32 to vector<2x56xi32>
    %34 = arith.addi %28, %33 : vector<2x56xi32>
    %c28_i32_7 = arith.constant 28 : i32
    %35 = vector.broadcast %c28_i32_7 : i32 to vector<2x56xi32>
    %36 = arith.muli %34, %35 : vector<2x56xi32>
    %37 = arith.cmpi slt, %29, %36 : vector<2x56xi32>
    %38 = arith.andi %32, %37 : vector<2x56xi1>
    %cst_8 = arith.constant 0.0357142873 : f32
    %cst_9 = arith.constant 0.000000e+00 : f32
    %39 = vector.broadcast %cst_8 : f32 to vector<2x56xf32>
    %40 = vector.broadcast %cst_9 : f32 to vector<2x56xf32>
    %41 = arith.select %38, %39, %40 : vector<2x56xi1>, vector<2x56xf32>
    %c0 = arith.constant 0 : index
    %c0_10 = arith.constant 0 : index
    %42 = vector.load %arg1[%c0, %c0_10] : memref<56x16xf32, #tpu.memory_space<vmem>>, vector<56x16xf32>
    %c0_11 = arith.constant 0 : index
    %c0_12 = arith.constant 0 : index
    %43 = vector.load %arg2[%c0_11, %c0_12] : memref<72x32xf32, #tpu.memory_space<vmem>>, vector<16x32xf32>
    %c16 = arith.constant 16 : index
    %c0_13 = arith.constant 0 : index
    %44 = vector.load %arg2[%c16, %c0_13] : memref<72x32xf32, #tpu.memory_space<vmem>>, vector<56x32xf32>
    %cst_14 = arith.constant dense<0.000000e+00> : vector<56x32xf32>
    %45 = tpu.matmul %42, %43, %cst_14 {dimension_numbers = #tpu.dot_dimension_numbers<[1], [0], [0], [1], [0, 0, 1, 1], [], []>} : vector<56x16xf32>, vector<16x32xf32>, vector<56x32xf32> -> vector<56x32xf32>
    %46 = arith.addf %45, %44 : vector<56x32xf32>
    %c0_15 = arith.constant 0 : index
    %c0_16 = arith.constant 0 : index
    %c0_17 = arith.constant 0 : index
    %47 = vector.load %arg3[%c0_15, %c0_16, %c0_17] : memref<2x32x192xf32, #tpu.memory_space<vmem>>, vector<1x32x192xf32>
    %48 = vector.shape_cast %47 : vector<1x32x192xf32> to vector<32x192xf32>
    %49 = vector.extract_strided_slice %48 {offsets = [0, 0], sizes = [32, 96], strides = [1, 1]} : vector<32x192xf32> to vector<32x96xf32>
    %50 = vector.extract_strided_slice %48 {offsets = [0, 96], sizes = [32, 32], strides = [1, 1]} : vector<32x192xf32> to vector<32x32xf32>
    %51 = vector.extract_strided_slice %48 {offsets = [0, 128], sizes = [32, 64], strides = [1, 1]} : vector<32x192xf32> to vector<32x64xf32>
    %c0_18 = arith.constant 0 : index
    %c0_19 = arith.constant 0 : index
    %c0_20 = arith.constant 0 : index
    %52 = vector.load %arg5[%c0_18, %c0_19, %c0_20] : memref<2x8x96xf32, #tpu.memory_space<vmem>>, vector<1x8x96xf32>
    %53 = vector.shape_cast %52 : vector<1x8x96xf32> to vector<8x96xf32>
    %54 = vector.extract_strided_slice %53 {offsets = [0, 0], sizes = [1, 96], strides = [1, 1]} : vector<8x96xf32> to vector<1x96xf32>
    %55 = vector.extract_strided_slice %53 {offsets = [1, 0], sizes = [1, 32], strides = [1, 1]} : vector<8x96xf32> to vector<1x32xf32>
    %56 = vector.extract_strided_slice %53 {offsets = [2, 0], sizes = [1, 32], strides = [1, 1]} : vector<8x96xf32> to vector<1x32xf32>
    %57 = vector.extract_strided_slice %53 {offsets = [3, 0], sizes = [1, 32], strides = [1, 1]} : vector<8x96xf32> to vector<1x32xf32>
    %58 = vector.extract_strided_slice %53 {offsets = [4, 0], sizes = [1, 64], strides = [1, 1]} : vector<8x96xf32> to vector<1x64xf32>
    %59 = vector.extract_strided_slice %53 {offsets = [5, 0], sizes = [1, 32], strides = [1, 1]} : vector<8x96xf32> to vector<1x32xf32>
    %60 = vector.extract_strided_slice %53 {offsets = [6, 0], sizes = [1, 32], strides = [1, 1]} : vector<8x96xf32> to vector<1x32xf32>
    %61 = vector.extract_strided_slice %53 {offsets = [7, 0], sizes = [1, 32], strides = [1, 1]} : vector<8x96xf32> to vector<1x32xf32>
    %cst_21 = arith.constant dense<0.000000e+00> : vector<56x96xf32>
    %62 = tpu.matmul %46, %49, %cst_21 {dimension_numbers = #tpu.dot_dimension_numbers<[1], [0], [0], [1], [0, 0, 1, 1], [], []>} : vector<56x32xf32>, vector<32x96xf32>, vector<56x96xf32> -> vector<56x96xf32>
    %63 = vector.broadcast %54 : vector<1x96xf32> to vector<56x96xf32>
    %64 = arith.addf %62, %63 : vector<56x96xf32>
    %65 = vector.extract_strided_slice %64 {offsets = [0, 0], sizes = [56, 32], strides = [1, 1]} : vector<56x96xf32> to vector<56x32xf32>
    %66 = vector.extract_strided_slice %64 {offsets = [0, 32], sizes = [56, 32], strides = [1, 1]} : vector<56x96xf32> to vector<56x32xf32>
    %67 = vector.extract_strided_slice %64 {offsets = [0, 64], sizes = [56, 32], strides = [1, 1]} : vector<56x96xf32> to vector<56x32xf32>
    %68 = vector.extract_strided_slice %65 {offsets = [0, 0], sizes = [56, 8], strides = [1, 1]} : vector<56x32xf32> to vector<56x8xf32>
    %69 = vector.extract_strided_slice %66 {offsets = [0, 0], sizes = [56, 8], strides = [1, 1]} : vector<56x32xf32> to vector<56x8xf32>
    %70 = vector.extract_strided_slice %67 {offsets = [0, 0], sizes = [56, 8], strides = [1, 1]} : vector<56x32xf32> to vector<56x8xf32>
    %cst_22 = arith.constant dense<0.000000e+00> : vector<56x56xf32>
    %71 = tpu.matmul %68, %69, %cst_22 {dimension_numbers = #tpu.dot_dimension_numbers<[1], [1], [0], [0], [0, 0, 1, 0], [], []>} : vector<56x8xf32>, vector<56x8xf32>, vector<56x56xf32> -> vector<56x56xf32>
    %cst_23 = arith.constant 0.353553385 : f32
    %72 = vector.broadcast %cst_23 : f32 to vector<56x56xf32>
    %73 = arith.mulf %71, %72 : vector<56x56xf32>
    %74 = arith.addf %73, %27 : vector<56x56xf32>
    %cst_24 = arith.constant dense<0xFF800000> : vector<56xf32>
    %75 = vector.multi_reduction <maximumf>, %74, %cst_24 [1] : vector<56x56xf32> to vector<56xf32>
    %76 = vector.shape_cast %75 : vector<56xf32> to vector<56x1xf32>
    %77 = vector.broadcast %76 : vector<56x1xf32> to vector<56x56xf32>
    %78 = arith.subf %74, %77 : vector<56x56xf32>
    %79 = math.exp %78 : vector<56x56xf32>
    %cst_25 = arith.constant dense<0.000000e+00> : vector<56xf32>
    %80 = vector.multi_reduction <add>, %79, %cst_25 [1] : vector<56x56xf32> to vector<56xf32>
    %81 = vector.shape_cast %80 : vector<56xf32> to vector<56x1xf32>
    %82 = vector.broadcast %81 : vector<56x1xf32> to vector<56x56xf32>
    %83 = arith.divf %79, %82 : vector<56x56xf32>
    %cst_26 = arith.constant dense<0.000000e+00> : vector<56x8xf32>
    %84 = tpu.matmul %83, %70, %cst_26 {dimension_numbers = #tpu.dot_dimension_numbers<[1], [0], [0], [1], [0, 0, 1, 1], [], []>} : vector<56x56xf32>, vector<56x8xf32>, vector<56x8xf32> -> vector<56x8xf32>
    %c0_27 = arith.constant 0 : index
    %c0_28 = arith.constant 0 : index
    %85 = vector.load %arg8[%c0_27, %c0_28] : memref<56x32xf32, #tpu.memory_space<vmem>>, vector<56x8xf32>
    tpu.vector_store %arg8[%c0_27, %c0_28], %84 {strides = array<i32>} : memref<56x32xf32, #tpu.memory_space<vmem>>, vector<56x8xf32>,
    %86 = vector.extract_strided_slice %65 {offsets = [0, 8], sizes = [56, 8], strides = [1, 1]} : vector<56x32xf32> to vector<56x8xf32>
    %87 = vector.extract_strided_slice %66 {offsets = [0, 8], sizes = [56, 8], strides = [1, 1]} : vector<56x32xf32> to vector<56x8xf32>
    %88 = vector.extract_strided_slice %67 {offsets = [0, 8], sizes = [56, 8], strides = [1, 1]} : vector<56x32xf32> to vector<56x8xf32>
    %cst_29 = arith.constant dense<0.000000e+00> : vector<56x56xf32>
    %89 = tpu.matmul %86, %87, %cst_29 {dimension_numbers = #tpu.dot_dimension_numbers<[1], [1], [0], [0], [0, 0, 1, 0], [], []>} : vector<56x8xf32>, vector<56x8xf32>, vector<56x56xf32> -> vector<56x56xf32>
    %cst_30 = arith.constant 0.353553385 : f32
    %90 = vector.broadcast %cst_30 : f32 to vector<56x56xf32>
    %91 = arith.mulf %89, %90 : vector<56x56xf32>
    %92 = arith.addf %91, %27 : vector<56x56xf32>
    %cst_31 = arith.constant dense<0xFF800000> : vector<56xf32>
    %93 = vector.multi_reduction <maximumf>, %92, %cst_31 [1] : vector<56x56xf32> to vector<56xf32>
    %94 = vector.shape_cast %93 : vector<56xf32> to vector<56x1xf32>
    %95 = vector.broadcast %94 : vector<56x1xf32> to vector<56x56xf32>
    %96 = arith.subf %92, %95 : vector<56x56xf32>
    %97 = math.exp %96 : vector<56x56xf32>
    %cst_32 = arith.constant dense<0.000000e+00> : vector<56xf32>
    %98 = vector.multi_reduction <add>, %97, %cst_32 [1] : vector<56x56xf32> to vector<56xf32>
    %99 = vector.shape_cast %98 : vector<56xf32> to vector<56x1xf32>
    %100 = vector.broadcast %99 : vector<56x1xf32> to vector<56x56xf32>
    %101 = arith.divf %97, %100 : vector<56x56xf32>
    %cst_33 = arith.constant dense<0.000000e+00> : vector<56x8xf32>
    %102 = tpu.matmul %101, %88, %cst_33 {dimension_numbers = #tpu.dot_dimension_numbers<[1], [0], [0], [1], [0, 0, 1, 1], [], []>} : vector<56x56xf32>, vector<56x8xf32>, vector<56x8xf32> -> vector<56x8xf32>
    %c0_34 = arith.constant 0 : index
    %c8 = arith.constant 8 : index
    %103 = vector.load %arg8[%c0_34, %c8] : memref<56x32xf32, #tpu.memory_space<vmem>>, vector<56x8xf32>
    tpu.vector_store %arg8[%c0_34, %c8], %102 {strides = array<i32>} : memref<56x32xf32, #tpu.memory_space<vmem>>, vector<56x8xf32>,
    %104 = vector.extract_strided_slice %65 {offsets = [0, 16], sizes = [56, 8], strides = [1, 1]} : vector<56x32xf32> to vector<56x8xf32>
    %105 = vector.extract_strided_slice %66 {offsets = [0, 16], sizes = [56, 8], strides = [1, 1]} : vector<56x32xf32> to vector<56x8xf32>
    %106 = vector.extract_strided_slice %67 {offsets = [0, 16], sizes = [56, 8], strides = [1, 1]} : vector<56x32xf32> to vector<56x8xf32>
    %cst_35 = arith.constant dense<0.000000e+00> : vector<56x56xf32>
    %107 = tpu.matmul %104, %105, %cst_35 {dimension_numbers = #tpu.dot_dimension_numbers<[1], [1], [0], [0], [0, 0, 1, 0], [], []>} : vector<56x8xf32>, vector<56x8xf32>, vector<56x56xf32> -> vector<56x56xf32>
    %cst_36 = arith.constant 0.353553385 : f32
    %108 = vector.broadcast %cst_36 : f32 to vector<56x56xf32>
    %109 = arith.mulf %107, %108 : vector<56x56xf32>
    %110 = arith.addf %109, %27 : vector<56x56xf32>
    %cst_37 = arith.constant dense<0xFF800000> : vector<56xf32>
    %111 = vector.multi_reduction <maximumf>, %110, %cst_37 [1] : vector<56x56xf32> to vector<56xf32>
    %112 = vector.shape_cast %111 : vector<56xf32> to vector<56x1xf32>
    %113 = vector.broadcast %112 : vector<56x1xf32> to vector<56x56xf32>
    %114 = arith.subf %110, %113 : vector<56x56xf32>
    %115 = math.exp %114 : vector<56x56xf32>
    %cst_38 = arith.constant dense<0.000000e+00> : vector<56xf32>
    %116 = vector.multi_reduction <add>, %115, %cst_38 [1] : vector<56x56xf32> to vector<56xf32>
    %117 = vector.shape_cast %116 : vector<56xf32> to vector<56x1xf32>
    %118 = vector.broadcast %117 : vector<56x1xf32> to vector<56x56xf32>
    %119 = arith.divf %115, %118 : vector<56x56xf32>
    %cst_39 = arith.constant dense<0.000000e+00> : vector<56x8xf32>
    %120 = tpu.matmul %119, %106, %cst_39 {dimension_numbers = #tpu.dot_dimension_numbers<[1], [0], [0], [1], [0, 0, 1, 1], [], []>} : vector<56x56xf32>, vector<56x8xf32>, vector<56x8xf32> -> vector<56x8xf32>
    %c0_40 = arith.constant 0 : index
    %c16_41 = arith.constant 16 : index
    %121 = vector.load %arg8[%c0_40, %c16_41] : memref<56x32xf32, #tpu.memory_space<vmem>>, vector<56x8xf32>
    tpu.vector_store %arg8[%c0_40, %c16_41], %120 {strides = array<i32>} : memref<56x32xf32, #tpu.memory_space<vmem>>, vector<56x8xf32>,
    %122 = vector.extract_strided_slice %65 {offsets = [0, 24], sizes = [56, 8], strides = [1, 1]} : vector<56x32xf32> to vector<56x8xf32>
    %123 = vector.extract_strided_slice %66 {offsets = [0, 24], sizes = [56, 8], strides = [1, 1]} : vector<56x32xf32> to vector<56x8xf32>
    %124 = vector.extract_strided_slice %67 {offsets = [0, 24], sizes = [56, 8], strides = [1, 1]} : vector<56x32xf32> to vector<56x8xf32>
    %cst_42 = arith.constant dense<0.000000e+00> : vector<56x56xf32>
    %125 = tpu.matmul %122, %123, %cst_42 {dimension_numbers = #tpu.dot_dimension_numbers<[1], [1], [0], [0], [0, 0, 1, 0], [], []>} : vector<56x8xf32>, vector<56x8xf32>, vector<56x56xf32> -> vector<56x56xf32>
    %cst_43 = arith.constant 0.353553385 : f32
    %126 = vector.broadcast %cst_43 : f32 to vector<56x56xf32>
    %127 = arith.mulf %125, %126 : vector<56x56xf32>
    %128 = arith.addf %127, %27 : vector<56x56xf32>
    %cst_44 = arith.constant dense<0xFF800000> : vector<56xf32>
    %129 = vector.multi_reduction <maximumf>, %128, %cst_44 [1] : vector<56x56xf32> to vector<56xf32>
    %130 = vector.shape_cast %129 : vector<56xf32> to vector<56x1xf32>
    %131 = vector.broadcast %130 : vector<56x1xf32> to vector<56x56xf32>
    %132 = arith.subf %128, %131 : vector<56x56xf32>
    %133 = math.exp %132 : vector<56x56xf32>
    %cst_45 = arith.constant dense<0.000000e+00> : vector<56xf32>
    %134 = vector.multi_reduction <add>, %133, %cst_45 [1] : vector<56x56xf32> to vector<56xf32>
    %135 = vector.shape_cast %134 : vector<56xf32> to vector<56x1xf32>
    %136 = vector.broadcast %135 : vector<56x1xf32> to vector<56x56xf32>
    %137 = arith.divf %133, %136 : vector<56x56xf32>
    %cst_46 = arith.constant dense<0.000000e+00> : vector<56x8xf32>
    %138 = tpu.matmul %137, %124, %cst_46 {dimension_numbers = #tpu.dot_dimension_numbers<[1], [0], [0], [1], [0, 0, 1, 1], [], []>} : vector<56x56xf32>, vector<56x8xf32>, vector<56x8xf32> -> vector<56x8xf32>
    %c0_47 = arith.constant 0 : index
    %c24 = arith.constant 24 : index
    %139 = vector.load %arg8[%c0_47, %c24] : memref<56x32xf32, #tpu.memory_space<vmem>>, vector<56x8xf32>
    tpu.vector_store %arg8[%c0_47, %c24], %138 {strides = array<i32>} : memref<56x32xf32, #tpu.memory_space<vmem>>, vector<56x8xf32>,
    %c0_48 = arith.constant 0 : index
    %c0_49 = arith.constant 0 : index
    %140 = vector.load %arg8[%c0_48, %c0_49] : memref<56x32xf32, #tpu.memory_space<vmem>>, vector<56x32xf32>
    %cst_50 = arith.constant dense<0.000000e+00> : vector<56x32xf32>
    %141 = tpu.matmul %140, %50, %cst_50 {dimension_numbers = #tpu.dot_dimension_numbers<[1], [0], [0], [1], [0, 0, 1, 1], [], []>} : vector<56x32xf32>, vector<32x32xf32>, vector<56x32xf32> -> vector<56x32xf32>
    %142 = vector.broadcast %55 : vector<1x32xf32> to vector<56x32xf32>
    %143 = arith.addf %141, %142 : vector<56x32xf32>
    %144 = arith.addf %46, %143 : vector<56x32xf32>
    %cst_51 = arith.constant dense<0.000000e+00> : vector<56xf32>
    %145 = vector.multi_reduction <add>, %144, %cst_51 [1] : vector<56x32xf32> to vector<56xf32>
    %146 = vector.shape_cast %145 : vector<56xf32> to vector<56x1xf32>
    %cst_52 = arith.constant 3.200000e+01 : f32
    %147 = vector.broadcast %cst_52 : f32 to vector<56x1xf32>
    %148 = arith.divf %146, %147 : vector<56x1xf32>
    %149 = vector.broadcast %148 : vector<56x1xf32> to vector<56x32xf32>
    %150 = arith.subf %144, %149 : vector<56x32xf32>
    %151 = arith.mulf %150, %150 : vector<56x32xf32>
    %cst_53 = arith.constant dense<0.000000e+00> : vector<56xf32>
    %152 = vector.multi_reduction <add>, %151, %cst_53 [1] : vector<56x32xf32> to vector<56xf32>
    %153 = vector.shape_cast %152 : vector<56xf32> to vector<56x1xf32>
    %cst_54 = arith.constant 3.200000e+01 : f32
    %154 = vector.broadcast %cst_54 : f32 to vector<56x1xf32>
    %155 = arith.divf %153, %154 : vector<56x1xf32>
    %cst_55 = arith.constant 9.99999974E-6 : f32
    %156 = vector.broadcast %cst_55 : f32 to vector<56x1xf32>
    %157 = arith.addf %155, %156 : vector<56x1xf32>
    %158 = math.rsqrt %157 : vector<56x1xf32>
    %159 = vector.broadcast %158 : vector<56x1xf32> to vector<56x32xf32>
    %160 = arith.mulf %150, %159 : vector<56x32xf32>
    %161 = vector.broadcast %56 : vector<1x32xf32> to vector<56x32xf32>
    %162 = arith.mulf %160, %161 : vector<56x32xf32>
    %163 = vector.broadcast %57 : vector<1x32xf32> to vector<56x32xf32>
    %164 = arith.addf %162, %163 : vector<56x32xf32>
    %cst_56 = arith.constant dense<0.000000e+00> : vector<56x64xf32>
    %165 = tpu.matmul %164, %51, %cst_56 {dimension_numbers = #tpu.dot_dimension_numbers<[1], [0], [0], [1], [0, 0, 1, 1], [], []>} : vector<56x32xf32>, vector<32x64xf32>, vector<56x64xf32> -> vector<56x64xf32>
    %166 = vector.broadcast %58 : vector<1x64xf32> to vector<56x64xf32>
    %167 = arith.addf %165, %166 : vector<56x64xf32>
    %cst_57 = arith.constant 0.000000e+00 : f32
    %168 = vector.broadcast %cst_57 : f32 to vector<56x64xf32>
    %169 = arith.maximumf %167, %168 : vector<56x64xf32>
    %c0_58 = arith.constant 0 : index
    %c0_59 = arith.constant 0 : index
    %c0_60 = arith.constant 0 : index
    %170 = vector.load %arg4[%c0_58, %c0_59, %c0_60] : memref<2x64x32xf32, #tpu.memory_space<vmem>>, vector<1x64x32xf32>
    %171 = vector.shape_cast %170 : vector<1x64x32xf32> to vector<64x32xf32>
    %cst_61 = arith.constant dense<0.000000e+00> : vector<56x32xf32>
    %172 = tpu.matmul %169, %171, %cst_61 {dimension_numbers = #tpu.dot_dimension_numbers<[1], [0], [0], [1], [0, 0, 1, 1], [], []>} : vector<56x64xf32>, vector<64x32xf32>, vector<56x32xf32> -> vector<56x32xf32>
    %173 = vector.broadcast %59 : vector<1x32xf32> to vector<56x32xf32>
    %174 = arith.addf %172, %173 : vector<56x32xf32>
    %175 = arith.addf %164, %174 : vector<56x32xf32>
    %cst_62 = arith.constant dense<0.000000e+00> : vector<56xf32>
    %176 = vector.multi_reduction <add>, %175, %cst_62 [1] : vector<56x32xf32> to vector<56xf32>
    %177 = vector.shape_cast %176 : vector<56xf32> to vector<56x1xf32>
    %cst_63 = arith.constant 3.200000e+01 : f32
    %178 = vector.broadcast %cst_63 : f32 to vector<56x1xf32>
    %179 = arith.divf %177, %178 : vector<56x1xf32>
    %180 = vector.broadcast %179 : vector<56x1xf32> to vector<56x32xf32>
    %181 = arith.subf %175, %180 : vector<56x32xf32>
    %182 = arith.mulf %181, %181 : vector<56x32xf32>
    %cst_64 = arith.constant dense<0.000000e+00> : vector<56xf32>
    %183 = vector.multi_reduction <add>, %182, %cst_64 [1] : vector<56x32xf32> to vector<56xf32>
    %184 = vector.shape_cast %183 : vector<56xf32> to vector<56x1xf32>
    %cst_65 = arith.constant 3.200000e+01 : f32
    %185 = vector.broadcast %cst_65 : f32 to vector<56x1xf32>
    %186 = arith.divf %184, %185 : vector<56x1xf32>
    %cst_66 = arith.constant 9.99999974E-6 : f32
    %187 = vector.broadcast %cst_66 : f32 to vector<56x1xf32>
    %188 = arith.addf %186, %187 : vector<56x1xf32>
    %189 = math.rsqrt %188 : vector<56x1xf32>
    %190 = vector.broadcast %189 : vector<56x1xf32> to vector<56x32xf32>
    %191 = arith.mulf %181, %190 : vector<56x32xf32>
    %192 = vector.broadcast %60 : vector<1x32xf32> to vector<56x32xf32>
    %193 = arith.mulf %191, %192 : vector<56x32xf32>
    %194 = vector.broadcast %61 : vector<1x32xf32> to vector<56x32xf32>
    %195 = arith.addf %193, %194 : vector<56x32xf32>
    %c1 = arith.constant 1 : index
    %c0_67 = arith.constant 0 : index
    %c0_68 = arith.constant 0 : index
    %196 = vector.load %arg3[%c1, %c0_67, %c0_68] : memref<2x32x192xf32, #tpu.memory_space<vmem>>, vector<1x32x192xf32>
    %197 = vector.shape_cast %196 : vector<1x32x192xf32> to vector<32x192xf32>
    %198 = vector.extract_strided_slice %197 {offsets = [0, 0], sizes = [32, 96], strides = [1, 1]} : vector<32x192xf32> to vector<32x96xf32>
    %199 = vector.extract_strided_slice %197 {offsets = [0, 96], sizes = [32, 32], strides = [1, 1]} : vector<32x192xf32> to vector<32x32xf32>
    %200 = vector.extract_strided_slice %197 {offsets = [0, 128], sizes = [32, 64], strides = [1, 1]} : vector<32x192xf32> to vector<32x64xf32>
    %c1_69 = arith.constant 1 : index
    %c0_70 = arith.constant 0 : index
    %c0_71 = arith.constant 0 : index
    %201 = vector.load %arg5[%c1_69, %c0_70, %c0_71] : memref<2x8x96xf32, #tpu.memory_space<vmem>>, vector<1x8x96xf32>
    %202 = vector.shape_cast %201 : vector<1x8x96xf32> to vector<8x96xf32>
    %203 = vector.extract_strided_slice %202 {offsets = [0, 0], sizes = [1, 96], strides = [1, 1]} : vector<8x96xf32> to vector<1x96xf32>
    %204 = vector.extract_strided_slice %202 {offsets = [1, 0], sizes = [1, 32], strides = [1, 1]} : vector<8x96xf32> to vector<1x32xf32>
    %205 = vector.extract_strided_slice %202 {offsets = [2, 0], sizes = [1, 32], strides = [1, 1]} : vector<8x96xf32> to vector<1x32xf32>
    %206 = vector.extract_strided_slice %202 {offsets = [3, 0], sizes = [1, 32], strides = [1, 1]} : vector<8x96xf32> to vector<1x32xf32>
    %207 = vector.extract_strided_slice %202 {offsets = [4, 0], sizes = [1, 64], strides = [1, 1]} : vector<8x96xf32> to vector<1x64xf32>
    %208 = vector.extract_strided_slice %202 {offsets = [5, 0], sizes = [1, 32], strides = [1, 1]} : vector<8x96xf32> to vector<1x32xf32>
    %209 = vector.extract_strided_slice %202 {offsets = [6, 0], sizes = [1, 32], strides = [1, 1]} : vector<8x96xf32> to vector<1x32xf32>
    %210 = vector.extract_strided_slice %202 {offsets = [7, 0], sizes = [1, 32], strides = [1, 1]} : vector<8x96xf32> to vector<1x32xf32>
    %cst_72 = arith.constant dense<0.000000e+00> : vector<56x96xf32>
    %211 = tpu.matmul %195, %198, %cst_72 {dimension_numbers = #tpu.dot_dimension_numbers<[1], [0], [0], [1], [0, 0, 1, 1], [], []>} : vector<56x32xf32>, vector<32x96xf32>, vector<56x96xf32> -> vector<56x96xf32>
    %212 = vector.broadcast %203 : vector<1x96xf32> to vector<56x96xf32>
    %213 = arith.addf %211, %212 : vector<56x96xf32>
    %214 = vector.extract_strided_slice %213 {offsets = [0, 0], sizes = [56, 32], strides = [1, 1]} : vector<56x96xf32> to vector<56x32xf32>
    %215 = vector.extract_strided_slice %213 {offsets = [0, 32], sizes = [56, 32], strides = [1, 1]} : vector<56x96xf32> to vector<56x32xf32>
    %216 = vector.extract_strided_slice %213 {offsets = [0, 64], sizes = [56, 32], strides = [1, 1]} : vector<56x96xf32> to vector<56x32xf32>
    %217 = vector.extract_strided_slice %214 {offsets = [0, 0], sizes = [56, 8], strides = [1, 1]} : vector<56x32xf32> to vector<56x8xf32>
    %218 = vector.extract_strided_slice %215 {offsets = [0, 0], sizes = [56, 8], strides = [1, 1]} : vector<56x32xf32> to vector<56x8xf32>
    %219 = vector.extract_strided_slice %216 {offsets = [0, 0], sizes = [56, 8], strides = [1, 1]} : vector<56x32xf32> to vector<56x8xf32>
    %cst_73 = arith.constant dense<0.000000e+00> : vector<56x56xf32>
    %220 = tpu.matmul %217, %218, %cst_73 {dimension_numbers = #tpu.dot_dimension_numbers<[1], [1], [0], [0], [0, 0, 1, 0], [], []>} : vector<56x8xf32>, vector<56x8xf32>, vector<56x56xf32> -> vector<56x56xf32>
    %cst_74 = arith.constant 0.353553385 : f32
    %221 = vector.broadcast %cst_74 : f32 to vector<56x56xf32>
    %222 = arith.mulf %220, %221 : vector<56x56xf32>
    %223 = arith.addf %222, %27 : vector<56x56xf32>
    %cst_75 = arith.constant dense<0xFF800000> : vector<56xf32>
    %224 = vector.multi_reduction <maximumf>, %223, %cst_75 [1] : vector<56x56xf32> to vector<56xf32>
    %225 = vector.shape_cast %224 : vector<56xf32> to vector<56x1xf32>
    %226 = vector.broadcast %225 : vector<56x1xf32> to vector<56x56xf32>
    %227 = arith.subf %223, %226 : vector<56x56xf32>
    %228 = math.exp %227 : vector<56x56xf32>
    %cst_76 = arith.constant dense<0.000000e+00> : vector<56xf32>
    %229 = vector.multi_reduction <add>, %228, %cst_76 [1] : vector<56x56xf32> to vector<56xf32>
    %230 = vector.shape_cast %229 : vector<56xf32> to vector<56x1xf32>
    %231 = vector.broadcast %230 : vector<56x1xf32> to vector<56x56xf32>
    %232 = arith.divf %228, %231 : vector<56x56xf32>
    %cst_77 = arith.constant dense<0.000000e+00> : vector<56x8xf32>
    %233 = tpu.matmul %232, %219, %cst_77 {dimension_numbers = #tpu.dot_dimension_numbers<[1], [0], [0], [1], [0, 0, 1, 1], [], []>} : vector<56x56xf32>, vector<56x8xf32>, vector<56x8xf32> -> vector<56x8xf32>
    %c0_78 = arith.constant 0 : index
    %c0_79 = arith.constant 0 : index
    %234 = vector.load %arg8[%c0_78, %c0_79] : memref<56x32xf32, #tpu.memory_space<vmem>>, vector<56x8xf32>
    tpu.vector_store %arg8[%c0_78, %c0_79], %233 {strides = array<i32>} : memref<56x32xf32, #tpu.memory_space<vmem>>, vector<56x8xf32>,
    %235 = vector.extract_strided_slice %214 {offsets = [0, 8], sizes = [56, 8], strides = [1, 1]} : vector<56x32xf32> to vector<56x8xf32>
    %236 = vector.extract_strided_slice %215 {offsets = [0, 8], sizes = [56, 8], strides = [1, 1]} : vector<56x32xf32> to vector<56x8xf32>
    %237 = vector.extract_strided_slice %216 {offsets = [0, 8], sizes = [56, 8], strides = [1, 1]} : vector<56x32xf32> to vector<56x8xf32>
    %cst_80 = arith.constant dense<0.000000e+00> : vector<56x56xf32>
    %238 = tpu.matmul %235, %236, %cst_80 {dimension_numbers = #tpu.dot_dimension_numbers<[1], [1], [0], [0], [0, 0, 1, 0], [], []>} : vector<56x8xf32>, vector<56x8xf32>, vector<56x56xf32> -> vector<56x56xf32>
    %cst_81 = arith.constant 0.353553385 : f32
    %239 = vector.broadcast %cst_81 : f32 to vector<56x56xf32>
    %240 = arith.mulf %238, %239 : vector<56x56xf32>
    %241 = arith.addf %240, %27 : vector<56x56xf32>
    %cst_82 = arith.constant dense<0xFF800000> : vector<56xf32>
    %242 = vector.multi_reduction <maximumf>, %241, %cst_82 [1] : vector<56x56xf32> to vector<56xf32>
    %243 = vector.shape_cast %242 : vector<56xf32> to vector<56x1xf32>
    %244 = vector.broadcast %243 : vector<56x1xf32> to vector<56x56xf32>
    %245 = arith.subf %241, %244 : vector<56x56xf32>
    %246 = math.exp %245 : vector<56x56xf32>
    %cst_83 = arith.constant dense<0.000000e+00> : vector<56xf32>
    %247 = vector.multi_reduction <add>, %246, %cst_83 [1] : vector<56x56xf32> to vector<56xf32>
    %248 = vector.shape_cast %247 : vector<56xf32> to vector<56x1xf32>
    %249 = vector.broadcast %248 : vector<56x1xf32> to vector<56x56xf32>
    %250 = arith.divf %246, %249 : vector<56x56xf32>
    %cst_84 = arith.constant dense<0.000000e+00> : vector<56x8xf32>
    %251 = tpu.matmul %250, %237, %cst_84 {dimension_numbers = #tpu.dot_dimension_numbers<[1], [0], [0], [1], [0, 0, 1, 1], [], []>} : vector<56x56xf32>, vector<56x8xf32>, vector<56x8xf32> -> vector<56x8xf32>
    %c0_85 = arith.constant 0 : index
    %c8_86 = arith.constant 8 : index
    %252 = vector.load %arg8[%c0_85, %c8_86] : memref<56x32xf32, #tpu.memory_space<vmem>>, vector<56x8xf32>
    tpu.vector_store %arg8[%c0_85, %c8_86], %251 {strides = array<i32>} : memref<56x32xf32, #tpu.memory_space<vmem>>, vector<56x8xf32>,
    %253 = vector.extract_strided_slice %214 {offsets = [0, 16], sizes = [56, 8], strides = [1, 1]} : vector<56x32xf32> to vector<56x8xf32>
    %254 = vector.extract_strided_slice %215 {offsets = [0, 16], sizes = [56, 8], strides = [1, 1]} : vector<56x32xf32> to vector<56x8xf32>
    %255 = vector.extract_strided_slice %216 {offsets = [0, 16], sizes = [56, 8], strides = [1, 1]} : vector<56x32xf32> to vector<56x8xf32>
    %cst_87 = arith.constant dense<0.000000e+00> : vector<56x56xf32>
    %256 = tpu.matmul %253, %254, %cst_87 {dimension_numbers = #tpu.dot_dimension_numbers<[1], [1], [0], [0], [0, 0, 1, 0], [], []>} : vector<56x8xf32>, vector<56x8xf32>, vector<56x56xf32> -> vector<56x56xf32>
    %cst_88 = arith.constant 0.353553385 : f32
    %257 = vector.broadcast %cst_88 : f32 to vector<56x56xf32>
    %258 = arith.mulf %256, %257 : vector<56x56xf32>
    %259 = arith.addf %258, %27 : vector<56x56xf32>
    %cst_89 = arith.constant dense<0xFF800000> : vector<56xf32>
    %260 = vector.multi_reduction <maximumf>, %259, %cst_89 [1] : vector<56x56xf32> to vector<56xf32>
    %261 = vector.shape_cast %260 : vector<56xf32> to vector<56x1xf32>
    %262 = vector.broadcast %261 : vector<56x1xf32> to vector<56x56xf32>
    %263 = arith.subf %259, %262 : vector<56x56xf32>
    %264 = math.exp %263 : vector<56x56xf32>
    %cst_90 = arith.constant dense<0.000000e+00> : vector<56xf32>
    %265 = vector.multi_reduction <add>, %264, %cst_90 [1] : vector<56x56xf32> to vector<56xf32>
    %266 = vector.shape_cast %265 : vector<56xf32> to vector<56x1xf32>
    %267 = vector.broadcast %266 : vector<56x1xf32> to vector<56x56xf32>
    %268 = arith.divf %264, %267 : vector<56x56xf32>
    %cst_91 = arith.constant dense<0.000000e+00> : vector<56x8xf32>
    %269 = tpu.matmul %268, %255, %cst_91 {dimension_numbers = #tpu.dot_dimension_numbers<[1], [0], [0], [1], [0, 0, 1, 1], [], []>} : vector<56x56xf32>, vector<56x8xf32>, vector<56x8xf32> -> vector<56x8xf32>
    %c0_92 = arith.constant 0 : index
    %c16_93 = arith.constant 16 : index
    %270 = vector.load %arg8[%c0_92, %c16_93] : memref<56x32xf32, #tpu.memory_space<vmem>>, vector<56x8xf32>
    tpu.vector_store %arg8[%c0_92, %c16_93], %269 {strides = array<i32>} : memref<56x32xf32, #tpu.memory_space<vmem>>, vector<56x8xf32>,
    %271 = vector.extract_strided_slice %214 {offsets = [0, 24], sizes = [56, 8], strides = [1, 1]} : vector<56x32xf32> to vector<56x8xf32>
    %272 = vector.extract_strided_slice %215 {offsets = [0, 24], sizes = [56, 8], strides = [1, 1]} : vector<56x32xf32> to vector<56x8xf32>
    %273 = vector.extract_strided_slice %216 {offsets = [0, 24], sizes = [56, 8], strides = [1, 1]} : vector<56x32xf32> to vector<56x8xf32>
    %cst_94 = arith.constant dense<0.000000e+00> : vector<56x56xf32>
    %274 = tpu.matmul %271, %272, %cst_94 {dimension_numbers = #tpu.dot_dimension_numbers<[1], [1], [0], [0], [0, 0, 1, 0], [], []>} : vector<56x8xf32>, vector<56x8xf32>, vector<56x56xf32> -> vector<56x56xf32>
    %cst_95 = arith.constant 0.353553385 : f32
    %275 = vector.broadcast %cst_95 : f32 to vector<56x56xf32>
    %276 = arith.mulf %274, %275 : vector<56x56xf32>
    %277 = arith.addf %276, %27 : vector<56x56xf32>
    %cst_96 = arith.constant dense<0xFF800000> : vector<56xf32>
    %278 = vector.multi_reduction <maximumf>, %277, %cst_96 [1] : vector<56x56xf32> to vector<56xf32>
    %279 = vector.shape_cast %278 : vector<56xf32> to vector<56x1xf32>
    %280 = vector.broadcast %279 : vector<56x1xf32> to vector<56x56xf32>
    %281 = arith.subf %277, %280 : vector<56x56xf32>
    %282 = math.exp %281 : vector<56x56xf32>
    %cst_97 = arith.constant dense<0.000000e+00> : vector<56xf32>
    %283 = vector.multi_reduction <add>, %282, %cst_97 [1] : vector<56x56xf32> to vector<56xf32>
    %284 = vector.shape_cast %283 : vector<56xf32> to vector<56x1xf32>
    %285 = vector.broadcast %284 : vector<56x1xf32> to vector<56x56xf32>
    %286 = arith.divf %282, %285 : vector<56x56xf32>
    %cst_98 = arith.constant dense<0.000000e+00> : vector<56x8xf32>
    %287 = tpu.matmul %286, %273, %cst_98 {dimension_numbers = #tpu.dot_dimension_numbers<[1], [0], [0], [1], [0, 0, 1, 1], [], []>} : vector<56x56xf32>, vector<56x8xf32>, vector<56x8xf32> -> vector<56x8xf32>
    %c0_99 = arith.constant 0 : index
    %c24_100 = arith.constant 24 : index
    %288 = vector.load %arg8[%c0_99, %c24_100] : memref<56x32xf32, #tpu.memory_space<vmem>>, vector<56x8xf32>
    tpu.vector_store %arg8[%c0_99, %c24_100], %287 {strides = array<i32>} : memref<56x32xf32, #tpu.memory_space<vmem>>, vector<56x8xf32>,
    %c0_101 = arith.constant 0 : index
    %c0_102 = arith.constant 0 : index
    %289 = vector.load %arg8[%c0_101, %c0_102] : memref<56x32xf32, #tpu.memory_space<vmem>>, vector<56x32xf32>
    %cst_103 = arith.constant dense<0.000000e+00> : vector<56x32xf32>
    %290 = tpu.matmul %289, %199, %cst_103 {dimension_numbers = #tpu.dot_dimension_numbers<[1], [0], [0], [1], [0, 0, 1, 1], [], []>} : vector<56x32xf32>, vector<32x32xf32>, vector<56x32xf32> -> vector<56x32xf32>
    %291 = vector.broadcast %204 : vector<1x32xf32> to vector<56x32xf32>
    %292 = arith.addf %290, %291 : vector<56x32xf32>
    %293 = arith.addf %195, %292 : vector<56x32xf32>
    %cst_104 = arith.constant dense<0.000000e+00> : vector<56xf32>
    %294 = vector.multi_reduction <add>, %293, %cst_104 [1] : vector<56x32xf32> to vector<56xf32>
    %295 = vector.shape_cast %294 : vector<56xf32> to vector<56x1xf32>
    %cst_105 = arith.constant 3.200000e+01 : f32
    %296 = vector.broadcast %cst_105 : f32 to vector<56x1xf32>
    %297 = arith.divf %295, %296 : vector<56x1xf32>
    %298 = vector.broadcast %297 : vector<56x1xf32> to vector<56x32xf32>
    %299 = arith.subf %293, %298 : vector<56x32xf32>
    %300 = arith.mulf %299, %299 : vector<56x32xf32>
    %cst_106 = arith.constant dense<0.000000e+00> : vector<56xf32>
    %301 = vector.multi_reduction <add>, %300, %cst_106 [1] : vector<56x32xf32> to vector<56xf32>
    %302 = vector.shape_cast %301 : vector<56xf32> to vector<56x1xf32>
    %cst_107 = arith.constant 3.200000e+01 : f32
    %303 = vector.broadcast %cst_107 : f32 to vector<56x1xf32>
    %304 = arith.divf %302, %303 : vector<56x1xf32>
    %cst_108 = arith.constant 9.99999974E-6 : f32
    %305 = vector.broadcast %cst_108 : f32 to vector<56x1xf32>
    %306 = arith.addf %304, %305 : vector<56x1xf32>
    %307 = math.rsqrt %306 : vector<56x1xf32>
    %308 = vector.broadcast %307 : vector<56x1xf32> to vector<56x32xf32>
    %309 = arith.mulf %299, %308 : vector<56x32xf32>
    %310 = vector.broadcast %205 : vector<1x32xf32> to vector<56x32xf32>
    %311 = arith.mulf %309, %310 : vector<56x32xf32>
    %312 = vector.broadcast %206 : vector<1x32xf32> to vector<56x32xf32>
    %313 = arith.addf %311, %312 : vector<56x32xf32>
    %cst_109 = arith.constant dense<0.000000e+00> : vector<56x64xf32>
    %314 = tpu.matmul %313, %200, %cst_109 {dimension_numbers = #tpu.dot_dimension_numbers<[1], [0], [0], [1], [0, 0, 1, 1], [], []>} : vector<56x32xf32>, vector<32x64xf32>, vector<56x64xf32> -> vector<56x64xf32>
    %315 = vector.broadcast %207 : vector<1x64xf32> to vector<56x64xf32>
    %316 = arith.addf %314, %315 : vector<56x64xf32>
    %cst_110 = arith.constant 0.000000e+00 : f32
    %317 = vector.broadcast %cst_110 : f32 to vector<56x64xf32>
    %318 = arith.maximumf %316, %317 : vector<56x64xf32>
    %c1_111 = arith.constant 1 : index
    %c0_112 = arith.constant 0 : index
    %c0_113 = arith.constant 0 : index
    %319 = vector.load %arg4[%c1_111, %c0_112, %c0_113] : memref<2x64x32xf32, #tpu.memory_space<vmem>>, vector<1x64x32xf32>
    %320 = vector.shape_cast %319 : vector<1x64x32xf32> to vector<64x32xf32>
    %cst_114 = arith.constant dense<0.000000e+00> : vector<56x32xf32>
    %321 = tpu.matmul %318, %320, %cst_114 {dimension_numbers = #tpu.dot_dimension_numbers<[1], [0], [0], [1], [0, 0, 1, 1], [], []>} : vector<56x64xf32>, vector<64x32xf32>, vector<56x32xf32> -> vector<56x32xf32>
    %322 = vector.broadcast %208 : vector<1x32xf32> to vector<56x32xf32>
    %323 = arith.addf %321, %322 : vector<56x32xf32>
    %324 = arith.addf %313, %323 : vector<56x32xf32>
    %cst_115 = arith.constant dense<0.000000e+00> : vector<56xf32>
    %325 = vector.multi_reduction <add>, %324, %cst_115 [1] : vector<56x32xf32> to vector<56xf32>
    %326 = vector.shape_cast %325 : vector<56xf32> to vector<56x1xf32>
    %cst_116 = arith.constant 3.200000e+01 : f32
    %327 = vector.broadcast %cst_116 : f32 to vector<56x1xf32>
    %328 = arith.divf %326, %327 : vector<56x1xf32>
    %329 = vector.broadcast %328 : vector<56x1xf32> to vector<56x32xf32>
    %330 = arith.subf %324, %329 : vector<56x32xf32>
    %331 = arith.mulf %330, %330 : vector<56x32xf32>
    %cst_117 = arith.constant dense<0.000000e+00> : vector<56xf32>
    %332 = vector.multi_reduction <add>, %331, %cst_117 [1] : vector<56x32xf32> to vector<56xf32>
    %333 = vector.shape_cast %332 : vector<56xf32> to vector<56x1xf32>
    %cst_118 = arith.constant 3.200000e+01 : f32
    %334 = vector.broadcast %cst_118 : f32 to vector<56x1xf32>
    %335 = arith.divf %333, %334 : vector<56x1xf32>
    %cst_119 = arith.constant 9.99999974E-6 : f32
    %336 = vector.broadcast %cst_119 : f32 to vector<56x1xf32>
    %337 = arith.addf %335, %336 : vector<56x1xf32>
    %338 = math.rsqrt %337 : vector<56x1xf32>
    %339 = vector.broadcast %338 : vector<56x1xf32> to vector<56x32xf32>
    %340 = arith.mulf %330, %339 : vector<56x32xf32>
    %341 = vector.broadcast %209 : vector<1x32xf32> to vector<56x32xf32>
    %342 = arith.mulf %340, %341 : vector<56x32xf32>
    %343 = vector.broadcast %210 : vector<1x32xf32> to vector<56x32xf32>
    %344 = arith.addf %342, %343 : vector<56x32xf32>
    %cst_120 = arith.constant dense<0.000000e+00> : vector<2x32xf32>
    %345 = tpu.matmul %41, %344, %cst_120 {dimension_numbers = #tpu.dot_dimension_numbers<[1], [0], [0], [1], [0, 0, 1, 1], [], []>} : vector<2x56xf32>, vector<56x32xf32>, vector<2x32xf32> -> vector<2x32xf32>
    %c0_121 = arith.constant 0 : index
    %c0_122 = arith.constant 0 : index
    %346 = vector.load %arg6[%c0_121, %c0_122] : memref<33x10xf32, #tpu.memory_space<vmem>>, vector<32x10xf32>
    %c32 = arith.constant 32 : index
    %c0_123 = arith.constant 0 : index
    %347 = vector.load %arg6[%c32, %c0_123] : memref<33x10xf32, #tpu.memory_space<vmem>>, vector<1x10xf32>
    %cst_124 = arith.constant dense<0.000000e+00> : vector<2x10xf32>
    %348 = tpu.matmul %345, %346, %cst_124 {dimension_numbers = #tpu.dot_dimension_numbers<[1], [0], [0], [1], [0, 0, 1, 1], [], []>} : vector<2x32xf32>, vector<32x10xf32>, vector<2x10xf32> -> vector<2x10xf32>
    %349 = vector.broadcast %347 : vector<1x10xf32> to vector<2x10xf32>
    %350 = arith.addf %348, %349 : vector<2x10xf32>
    %c0_125 = arith.constant 0 : index
    %c0_126 = arith.constant 0 : index
    %351 = vector.load %arg7[%c0_125, %c0_126] : memref<2x10xf32, #tpu.memory_space<vmem>>, vector<2x10xf32>
    tpu.vector_store %arg7[%c0_125, %c0_126], %350 {strides = array<i32>} : memref<2x10xf32, #tpu.memory_space<vmem>>, vector<2x10xf32>,
    return
  }
  func.func @transform_0(%arg0: i32) -> (i32, i32) {
    %c0_i32 = arith.constant 0 : i32
    %c0_i32_0 = arith.constant 0 : i32
    return %arg0, %c0_i32 : i32, i32
  }
  func.func @transform_1(%arg0: i32) -> (i32, i32) {
    %c0_i32 = arith.constant 0 : i32
    %c0_i32_0 = arith.constant 0 : i32
    %c0_i32_1 = arith.constant 0 : i32
    return %c0_i32, %c0_i32_0 : i32, i32
  }
  func.func @transform_2(%arg0: i32) -> (i32, i32, i32) {
    %c0_i32 = arith.constant 0 : i32
    %c0_i32_0 = arith.constant 0 : i32
    %c0_i32_1 = arith.constant 0 : i32
    %c0_i32_2 = arith.constant 0 : i32
    return %c0_i32, %c0_i32_0, %c0_i32_1 : i32, i32, i32
  }
  func.func @transform_3(%arg0: i32) -> (i32, i32, i32) {
    %c0_i32 = arith.constant 0 : i32
    %c0_i32_0 = arith.constant 0 : i32
    %c0_i32_1 = arith.constant 0 : i32
    %c0_i32_2 = arith.constant 0 : i32
    return %c0_i32, %c0_i32_0, %c0_i32_1 : i32, i32, i32
  }
  func.func @transform_4(%arg0: i32) -> (i32, i32, i32) {
    %c0_i32 = arith.constant 0 : i32
    %c0_i32_0 = arith.constant 0 : i32
    %c0_i32_1 = arith.constant 0 : i32
    %c0_i32_2 = arith.constant 0 : i32
    return %c0_i32, %c0_i32_0, %c0_i32_1 : i32, i32, i32
  }
  func.func @transform_5(%arg0: i32) -> (i32, i32) {
    %c0_i32 = arith.constant 0 : i32
    %c0_i32_0 = arith.constant 0 : i32
    %c0_i32_1 = arith.constant 0 : i32
    return %c0_i32, %c0_i32_0 : i32, i32
  }
  func.func @transform_6(%arg0: i32) -> (i32, i32) {
    %c0_i32 = arith.constant 0 : i32
    %c0_i32_0 = arith.constant 0 : i32
    return %arg0, %c0_i32 : i32, i32
  }
}

</mosaic_0001>

<bundles_post_ra>
// kernel: tile.9
= control target key start
LH: loop header
LB: loop body
LE: loop exit
PB: predicated region body
PF: predicated region fallthrough
CT: control target
= control target key end

     0   :  { %vm163_vm0 = vcmask 1047556   ;;  %s305_s10 = smov 28   ;;  %vm165_vm1 = vcmask 228352   ;;  %vm202_vm2 = vcmask 457952   ;;  %s452_s0 = inlined_call_operand.vmem [shape: f32[2,28,32], index: 0, kind: input, shape index: {}]   ;;  %s453_s1 = inlined_call_operand.vmem [shape: f32[56,32], index: 1, kind: output, shape index: {}]  }
   0x1   :  { %v291_v0 = vld [vmem:[%s452_s0 + $0xe] sm:$0x3]  ;;  %v292_v1 = vld [vmem:[%s452_s0 + $0xc] sm:$0x3]  ;;  %v293_v2 = vld [vmem:[%s452_s0 + $0xa] sm:$0x3] }
   0x2   :  { %129 = vst [vmem:[#allocation0 + $0x38] sm:$0x3] %v291_v0  ;;  %134 = vst [vmem:[#allocation0 + $0x30] sm:$0x3] %v292_v1  ;;  %v294_v3 = vld [vmem:[%s452_s0 + $0x8] sm:$0x3] }
   0x3   :  { %139 = vst [vmem:[#allocation0 + $0x28] sm:$0x3] %v293_v2  ;;  %v295_v4 = vld [vmem:[%s452_s0 + $0x6] sm:$0x3]  ;;  %v296_v5 = vld [vmem:[%s452_s0 + $0x4] sm:$0x3] }
   0x4   :  { %144 = vst [vmem:[#allocation0 + $0x20] sm:$0x3] %v294_v3  ;;  %149 = vst [vmem:[#allocation0 + $0x18] sm:$0x3] %v295_v4  ;;  %v297_v6 = vld [vmem:[%s452_s0 + $0x2] sm:$0x3] }
   0x5   :  { %154 = vst [vmem:[#allocation0 + $0x10] sm:$0x3] %v296_v5  ;;  %v159_v7 = vld [vmem:[%s452_s0] sm:$0x3]  ;;  %158 = vst [vmem:[#allocation0 + $0x8] sm:$0x3] %v297_v6 }
   0x6   :  { %160 = vst [vmem:[#allocation0] sm:$0x3] %v159_v7  ;;  %v275_v8 = vld [vmem:[%s452_s0 + $0x2e] sm:$0x3]  ;;  %v276_v9 = vld [vmem:[%s452_s0 + $0x2c] sm:$0x3] }
   0x7   :  { %v277_v10 = vld [vmem:[%s452_s0 + $0x2a] sm:$0x3]  ;;  %49 = vst [vmem:[#allocation0 + $0xb8] sm:$0x3] %v275_v8  ;;  %54 = vst [vmem:[#allocation0 + $0xb0] sm:$0x3] %v276_v9 }
   0x8   :  { %59 = vst [vmem:[#allocation0 + $0xa8] sm:$0x3] %v277_v10  ;;  %v278_v11 = vld [vmem:[%s452_s0 + $0x28] sm:$0x3]  ;;  %v279_v12 = vld [vmem:[%s452_s0 + $0x26] sm:$0x3] }
   0x9   :  { %v280_v13 = vld [vmem:[%s452_s0 + $0x24] sm:$0x3]  ;;  %64 = vst [vmem:[#allocation0 + $0xa0] sm:$0x3] %v278_v11  ;;  %69 = vst [vmem:[#allocation0 + $0x98] sm:$0x3] %v279_v12 }
   0xa   :  { %74 = vst [vmem:[#allocation0 + $0x90] sm:$0x3] %v280_v13  ;;  %v281_v14 = vld [vmem:[%s452_s0 + $0x22] sm:$0x3]  ;;  %v282_v15 = vld [vmem:[%s452_s0 + $0x20] sm:$0x3] }
   0xb   :  { %v283_v16 = vld [vmem:[%s452_s0 + $0x1e] sm:$0x3]  ;;  %79 = vst [vmem:[#allocation0 + $0x88] sm:$0x3] %v281_v14  ;;  %84 = vst [vmem:[#allocation0 + $0x80] sm:$0x3] %v282_v15 }
   0xc   :  { %89 = vst [vmem:[#allocation0 + $0x78] sm:$0x3] %v283_v16  ;;  %v284_v17 = vld [vmem:[%s452_s0 + $0x1c] sm:$0x3]  ;;  %v285_v18 = vld [vmem:[%s452_s0 + $0x1a] sm:$0x3] }
   0xd   :  { %v286_v19 = vld [vmem:[%s452_s0 + $0x18] sm:$0x3]  ;;  %94 = vst [vmem:[#allocation0 + $0x70] sm:$0x3] %v284_v17  ;;  %99 = vst [vmem:[#allocation0 + $0x68] sm:$0x3] %v285_v18 }
   0xe   :  { %104 = vst [vmem:[#allocation0 + $0x60] sm:$0x3] %v286_v19  ;;  %v287_v20 = vld [vmem:[%s452_s0 + $0x16] sm:$0x3]  ;;  %v288_v21 = vld [vmem:[%s452_s0 + $0x14] sm:$0x3] }
   0xf   :  { %v289_v22 = vld [vmem:[%s452_s0 + $0x12] sm:$0x3]  ;;  %109 = vst [vmem:[#allocation0 + $0x58] sm:$0x3] %v287_v20  ;;  %114 = vst [vmem:[#allocation0 + $0x50] sm:$0x3] %v288_v21 }
  0x10   :  { %119 = vst [vmem:[#allocation0 + $0x48] sm:$0x3] %v289_v22  ;;  %v290_v23 = vld [vmem:[%s452_s0 + $0x10] sm:$0x3]  ;;  %v267_v24 = vld [vmem:[%s452_s0 + $0x3e] sm:$0x3] }
  0x11   :  { %v268_v25 = vld [vmem:[%s452_s0 + $0x3c] sm:$0x3]  ;;  %v197_v26 = vld [vmem:[#allocation0 + $0x1] ss:$8 sm:$0xf0]  }
  0x12   :  { %124 = vst [vmem:[#allocation0 + $0x40] sm:$0x3] %v290_v23  ;;  %9 = vst [vmem:[#allocation0 + $0xf8] sm:$0x3] %v267_v24  ;;  %v269_v27 = vld [vmem:[%s452_s0 + $0x3a] sm:$0x3] }
  0x13   :  { %14 = vst [vmem:[#allocation0 + $0xf0] sm:$0x3] %v268_v25  ;;  %v195_v28 = vld [vmem:[#allocation0 + $0x1] ss:$8 sm:$0xf]  }
  0x14   :  { %19 = vst [vmem:[#allocation0 + $0xe8] sm:$0x3] %v269_v27  ;;  %v270_v29 = vld [vmem:[%s452_s0 + $0x38] sm:$0x3]  ;;  %v199_v30 = vsel %vm163_vm0, %v197_v26, %v195_v28  ;;  %v271_v31 = vld [vmem:[%s452_s0 + $0x36] sm:$0x3] }
  0x15   :  { %24 = vst [vmem:[#allocation0 + $0xe0] sm:$0x3] %v270_v29  ;;  %v272_v32 = vld [vmem:[%s452_s0 + $0x34] sm:$0x3]  ;;  %v273_v33 = vld [vmem:[%s452_s0 + $0x32] sm:$0x3]  ;;  %200 = vrot.lane.b32.xlu0 %v199_v30, %s305_s10 }
  0x16   :  { %v218_v34 = vld [vmem:[#allocation0 + $0x81] ss:$8 sm:$0xf0]   ;;  %29 = vst [vmem:[#allocation0 + $0xd8] sm:$0x3] %v271_v31 }
  0x17   :  { %34 = vst [vmem:[#allocation0 + $0xd0] sm:$0x3] %v272_v32  ;;  %39 = vst [vmem:[#allocation0 + $0xc8] sm:$0x3] %v273_v33  ;;  %v274_v35 = vld [vmem:[%s452_s0 + $0x30] sm:$0x3] }
  0x18   :  { %v216_v36 = vld [vmem:[#allocation0 + $0x81] ss:$8 sm:$0xf]   ;;  %44 = vst [vmem:[#allocation0 + $0xc0] sm:$0x3] %v274_v35 }
  0x19   :  { %v161_v37 = vld [vmem:[#allocation0] ss:$8 sm:$0xf]   ;;  %v220_v38 = vsel %vm163_vm0, %v218_v34, %v216_v36  ;;  %v207_v39 = vld [vmem:[#allocation0 + $0x41] ss:$8 sm:$0xf0]  }
  0x1a   :  { %v162_v40 = vld [vmem:[#allocation0] ss:$8 sm:$0xf0]   ;;  %221 = vrot.lane.b32.xlu1 %v220_v38, %s305_s10  ;;  %v205_v44 = vld [vmem:[#allocation0 + $0x41] ss:$8 sm:$0xf]  }
  0x1b   :  { %v164_v41 = vsel %vm163_vm0, %v162_v40, %v161_v37  ;;  %v177_v42 = vld [vmem:[#allocation0 + $0x80] ss:$8 sm:$0xf]   ;;  %v209_v47 = vsel %vm163_vm0, %v207_v39, %v205_v44 }
  0x1c   :  { %v179_v43 = vld [vmem:[#allocation0 + $0x80] ss:$8 sm:$0xf0]   ;;  %166 = vst.msk [vmem:[%s453_s1] sm:$0xff] %vm165_vm1, %v164_v41   ;;  %210 = vrot.lane.b32.xlu0 %v209_v47, %s305_s10 }
  0x1d   :  { %v181_v45 = vsel %vm163_vm0, %v179_v43, %v177_v42  ;;  %v168_v46 = vld [vmem:[#allocation0 + $0x40] ss:$8 sm:$0xf]   ;;  %v229_v49 = vld [vmem:[#allocation0 + $0xc1] ss:$8 sm:$0xf0]  }
  0x1e   :  { %299 = vst.msk [vmem:[%s453_s1 + $0x10] sm:$0xff] %vm165_vm1, %v181_v45   ;;  %v170_v48 = vld [vmem:[#allocation0 + $0x40] ss:$8 sm:$0xf0]  }
  0x1f   :  { %v172_v50 = vsel %vm163_vm0, %v170_v48, %v168_v46  ;;  %v188_v51 = vld [vmem:[#allocation0 + $0xc0] ss:$8 sm:$0xf0]   ;;  %v227_v52 = vld [vmem:[#allocation0 + $0xc1] ss:$8 sm:$0xf]  }
  0x20   :  { %298 = vst.msk [vmem:[%s453_s1 + $0x8] sm:$0xff] %vm165_vm1, %v172_v50   ;;  %v186_v53 = vld [vmem:[#allocation0 + $0xc0] ss:$8 sm:$0xf]   ;;  %v231_v54 = vsel %vm163_vm0, %v229_v49, %v227_v52 }
  0x21   :  { %v190_v55 = vsel %vm163_vm0, %v188_v51, %v186_v53  ;;  %232 = vrot.lane.b32.xlu1 %v231_v54, %s305_s10 }
  0x22   :  { %300 = vst.msk [vmem:[%s453_s1 + $0x18] sm:$0xff] %vm165_vm1, %v190_v55  }
  0x87   :  { %v201_v56 = vpop.permute.xlu0 %200  }
  0x88   :  { %203 = vst.msk [vmem:[%s453_s1] sm:$0xff] %vm202_vm2, %v201_v56  }
  0x8c   :  { %v222_v57 = vpop.permute.xlu1 %221  }
  0x8d   :  { %302 = vst.msk [vmem:[%s453_s1 + $0x10] sm:$0xff] %vm202_vm2, %v222_v57  }
  0x8e   :  { %v211_v58 = vpop.permute.xlu0 %210  }
  0x8f   :  { %301 = vst.msk [vmem:[%s453_s1 + $0x8] sm:$0xff] %vm202_vm2, %v211_v58  }
  0x93   :  { %v233_v59 = vpop.permute.xlu1 %232  }
  0x94   :  { %303 = vst.msk [vmem:[%s453_s1 + $0x18] sm:$0xff] %vm202_vm2, %v233_v59  }

// kernel: transformer_classifier.1
= control target key start
LH: loop header
LB: loop body
LE: loop exit
PB: predicated region body
PF: predicated region fallthrough
CT: control target
= control target key end

     0   :  { %v9727_v1 = vmov 0.0   ;;  %vm7131_vm0 = vmmov 0   ;;  %vm145_vm1 = vcmask 130048   ;;  %s9719_s0 = inlined_call_operand.vmem [shape: f32[56,16], index: 0, kind: input, shape index: {}]   ;;  %s9720_s1 = inlined_call_operand.vmem [shape: f32[72,32], index: 1, kind: input, shape index: {}]   ;;  %s9721_s2 = inlined_call_operand.vmem [shape: f32[2,32,192], index: 2, kind: input, shape index: {}]   ;;  %s9722_s3 = inlined_call_operand.vmem [shape: f32[2,64,32], index: 3, kind: input, shape index: {}]   ;;  %s9723_s4 = inlined_call_operand.vmem [shape: f32[2,8,96], index: 4, kind: input, shape index: {}]   ;;  %s9724_s5 = inlined_call_operand.vmem [shape: f32[33,10], index: 5, kind: input, shape index: {}]   ;;  %s9725_s6 = inlined_call_operand.hbm [shape: f32[2,10], index: 6, kind: output, shape index: {}]  }
   0x1   :  { %v137_v0 = vld [vmem:[%s9720_s1 + $0x8] sm:$0xff]  ;;  %5938 = vmatprep.subr.mxu0 %v9727_v1  ;;  %v136_v2 = vld [vmem:[%s9720_s1] sm:$0xff]  ;;  %5942 = vmatprep.mubr.msk.f32.mxu0 %vm7131_vm0, %v9727_v1  ;;  %v273_v4 = vld [vmem:[%s9721_s2 + $0x30] sm:$0xff] }
   0x2   :  { %5939 = vmatpush3.msra.mxu0 %v137_v0  ;;  %v129_v3 = vld [vmem:[%s9719_s0] sm:$0xff]  ;;  %5963 = vmatprep.subr.mxu1 %v9727_v1 }
   0x3   :  { %5940 = vmatprep.subr.mxu0 %v9727_v1  ;;  %v271_v5 = vld [vmem:[%s9721_s2 + $0x20] sm:$0xff]  ;;  %5971 = vmatprep.mubr.msk.f32.mxu1 %vm7131_vm0, %v9727_v1 }
   0x4   :  { %5941 = vmatpush3.msra.mxu0 %v136_v2  ;;  %5964 = vmatpush3.msra.mxu1 %v273_v4 }
   0x5   :  { %11 = vsyncpa [#allocation4], 0  ;;  %5943 = vmatmul.mubr.msk.f32.vlgmr.msra.gmra.mxu0 %vm145_vm1, %v129_v3  ;;  %5965 = vmatprep.subr.mxu1 %v9727_v1  ;;  %v130_v6 = vld [vmem:[%s9719_s0 + $0x8] sm:$0xff]  ;;  %v131_v7 = vld [vmem:[%s9719_s0 + $0x10] sm:$0xff]  ;;  %vm280_vm2 = vcmask 261120   ;;  %v24_v44 = vlaneseq  ;;  %s7132_s13 = smov 96  }
   0x6   :  { %5945 = vmatprep.mubr.msk.f32.mxu0 %vm7131_vm0, %v9727_v1  ;;  %5966 = vmatpush3.msra.mxu1 %v271_v5  ;;  %v132_v8 = vld [vmem:[%s9719_s0 + $0x18] sm:$0xff]  ;;  %v133_v9 = vld [vmem:[%s9719_s0 + $0x20] sm:$0xff]  ;;  %v134_v10 = vld [vmem:[%s9719_s0 + $0x28] sm:$0xff]  ;;  %s7133_s14 = smov 88   ;;  %s7134_s15 = smov 80   ;;  %vm423_vm3 = vcmask 64512  }
   0x7   :  { %5967 = vmatprep.subr.mxu1 %v9727_v1  ;;  %5992 = vmatprep.subr.mxu0 %v9727_v1  ;;  %v135_v11 = vld [vmem:[%s9719_s0 + $0x30] sm:$0xff]  ;;  %v267_v13 = vld [vmem:[%s9721_s2] sm:$0xff]  ;;  %v139_v18 = vld [vmem:[%s9720_s1 + $0x18] sm:$0xff]  ;;  %v7320_v47 = vshrl.u32 %v24_v44, 7  ;;  %s7135_s16 = smov 120   ;;  %s7136_s17 = smov 72  }
   0x8   :  { %v269_v12 = vld [vmem:[%s9721_s2 + $0x10] sm:$0xff]  ;;  %v140_v22 = vld [vmem:[%s9720_s1 + $0x20] sm:$0xff]  ;;  %v141_v26 = vld [vmem:[%s9720_s1 + $0x28] sm:$0xff]  ;;  %s7137_s18 = smov 112   ;;  %s7138_s19 = smov 104   ;;  %vm566_vm7 = vcmask 457728  }
   0x9   :  { %5946 = vmatmul.mubr.msk.f32.gmra.mxu0 %vm145_vm1, %v130_v6  ;;  %5968 = vmatpush3.msra.mxu1 %v269_v12  ;;  %v138_v14 = vld [vmem:[%s9720_s1 + $0x10] sm:$0xff]  ;;  %v143_v34 = vld [vmem:[%s9720_s1 + $0x38] sm:$0xff]  ;;  %v144_v38 = vld [vmem:[%s9720_s1 + $0x40] sm:$0xff]  ;;  %v9726_v50 = vsub.s32 0, %v7320_v47  ;;  %s7139_s20 = smov 64   ;;  %s7140_s21 = smov 56  }
   0xa   :  { %5948 = vmatprep.mubr.msk.f32.mxu0 %vm7131_vm0, %v9727_v1  ;;  %5969 = vmatprep.subr.mxu1 %v9727_v1  ;;  %v142_v30 = vld [vmem:[%s9720_s1 + $0x30] sm:$0xff]  ;;  %v275_v51 = vld [vmem:[%s9723_s4] sm:$0xff]  ;;  %s7141_s22 = smov 48   ;;  %s7142_s0 = smov 40   ;;  %vm1210_vm15 = vcmask 130112  }
   0xb   :  { %5970 = vmatpush3.msra.mxu1 %v267_v13  ;;  %v279_v54 = vrot.slane %v275_v51, %v9726_v50  ;;  %s7144_s25 = smov 32   ;;  %s7145_s8 = smov 8  }
   0xc   :  { %6027 = vmatprep.subr.mxu1 %v9727_v1  ;;  %s7146_s9 = smov 16   ;;  %s7147_s10 = smov 24  }
   0xd   :  { %5949 = vmatmul.mubr.msk.f32.gmra.mxu0 %vm145_vm1, %v131_v7 }
   0xe   :  { %5951 = vmatprep.mubr.msk.f32.mxu0 %vm7131_vm0, %v9727_v1 }
  0x11   :  { %5952 = vmatmul.mubr.msk.f32.gmra.mxu0 %vm145_vm1, %v132_v8 }
  0x12   :  { %5954 = vmatprep.mubr.msk.f32.mxu0 %vm7131_vm0, %v9727_v1 }
  0x15   :  { %5955 = vmatmul.mubr.msk.f32.gmra.mxu0 %vm145_vm1, %v133_v9 }
  0x16   :  { %5957 = vmatprep.mubr.msk.f32.mxu0 %vm7131_vm0, %v9727_v1 }
  0x19   :  { %5958 = vmatmul.mubr.msk.f32.gmra.mxu0 %vm145_vm1, %v134_v10 }
  0x1a   :  { %5960 = vmatprep.mubr.msk.f32.mxu0 %vm7131_vm0, %v9727_v1 }
  0x1d   :  { %5961 = vmatmul.mubr.msk.f32.gmra.mxu0 %vm145_vm1, %v135_v11  ;;  %vm1635_vm1 = vcmask 195712  }
  0x1e   :  { %6006 = vmatprep.mubr.msk.f32.mxu0 %vm7131_vm0, %v9727_v1 }
  0xc5   :  { %v233_v15 = vpop.f32.mrf.mxu0 }
  0xc6   :  { %v7259_v16 = vadd.f32 %v233_v15, %v138_v14 }
  0xc7   :  { %v5944_v17 = vpop.f32.mrf.mxu0 }
  0xc8   :  { %5972 = vmatmul.mubr.msk.f32.vlgmr.msra.gmra.mxu1 %vm280_vm2, %v7259_v16 }
  0xc9   :  { %v238_v19 = vpop.f32.mrf.mxu0  ;;  %5974 = vmatprep.mubr.msk.f32.mxu1 %vm7131_vm0, %v9727_v1 }
  0xca   :  { %v7268_v20 = vadd.f32 %v238_v19, %v139_v18 }
  0xcb   :  { %v5947_v21 = vpop.f32.mrf.mxu0 }
  0xcc   :  { %5975 = vmatmul.mubr.msk.f32.gmra.mxu1 %vm280_vm2, %v7268_v20 }
  0xcd   :  { %v243_v23 = vpop.f32.mrf.mxu0  ;;  %5977 = vmatprep.mubr.msk.f32.mxu1 %vm7131_vm0, %v9727_v1 }
  0xce   :  { %v7277_v24 = vadd.f32 %v243_v23, %v140_v22 }
  0xcf   :  { %v5950_v25 = vpop.f32.mrf.mxu0 }
  0xd0   :  { %5978 = vmatmul.mubr.msk.f32.gmra.mxu1 %vm280_vm2, %v7277_v24 }
  0xd1   :  { %v248_v27 = vpop.f32.mrf.mxu0  ;;  %5980 = vmatprep.mubr.msk.f32.mxu1 %vm7131_vm0, %v9727_v1 }
  0xd2   :  { %v7286_v28 = vadd.f32 %v248_v27, %v141_v26 }
  0xd3   :  { %v5953_v29 = vpop.f32.mrf.mxu0 }
  0xd4   :  { %9753 = vst [vmem:[#allocation6_spill] sm:$0xff] %v7286_v28  ;;  %5981 = vmatmul.mubr.msk.f32.gmra.mxu1 %vm280_vm2, %v7286_v28 }
  0xd5   :  { %v253_v31 = vpop.f32.mrf.mxu0  ;;  %5983 = vmatprep.mubr.msk.f32.mxu1 %vm7131_vm0, %v9727_v1 }
  0xd6   :  { %v7295_v32 = vadd.f32 %v253_v31, %v142_v30 }
  0xd7   :  { %v5956_v33 = vpop.f32.mrf.mxu0 }
  0xd8   :  { %9754 = vst [vmem:[#allocation7_spill] sm:$0xff] %v7295_v32  ;;  %5984 = vmatmul.mubr.msk.f32.gmra.mxu1 %vm280_vm2, %v7295_v32 }
  0xd9   :  { %v258_v35 = vpop.f32.mrf.mxu0  ;;  %5986 = vmatprep.mubr.msk.f32.mxu1 %vm7131_vm0, %v9727_v1 }
  0xda   :  { %v7304_v36 = vadd.f32 %v258_v35, %v143_v34 }
  0xdb   :  { %v5959_v37 = vpop.f32.mrf.mxu0 }
  0xdc   :  { %9755 = vst [vmem:[#allocation8_spill] sm:$0xff] %v7304_v36  ;;  %5987 = vmatmul.mubr.msk.f32.gmra.mxu1 %vm280_vm2, %v7304_v36 }
  0xdd   :  { %v263_v39 = vpop.f32.mrf.mxu0  ;;  %5989 = vmatprep.mubr.msk.f32.mxu1 %vm7131_vm0, %v9727_v1 }
  0xde   :  { %v7313_v40 = vadd.f32 %v263_v39, %v144_v38 }
  0xdf   :  { %v5962_v41 = vpop.f32.mrf.mxu0 }
  0xe0   :  { %9756 = vst [vmem:[#allocation9_spill] sm:$0xff] %v7313_v40  ;;  %5990 = vmatmul.mubr.msk.f32.gmra.mxu1 %vm280_vm2, %v7313_v40 }
  0xe1   :  { %6041 = vmatprep.mubr.msk.f32.mxu1 %vm7131_vm0, %v9727_v1 }
 0x188   :  { %v368_v42 = vpop.f32.mrf.mxu1 }
 0x189   :  { %v7356_v4 = vadd.f32 %v368_v42, %v279_v54 }
 0x18a   :  { %v5973_v43 = vpop.f32.mrf.mxu1 }
 0x18c   :  { %v373_v45 = vpop.f32.mrf.mxu1 }
 0x18d   :  { %v7336_v62 = vadd.f32 %v373_v45, %v279_v54 }
 0x18e   :  { %v5976_v46 = vpop.f32.mrf.mxu1 }
 0x190   :  { %v378_v48 = vpop.f32.mrf.mxu1 }
 0x191   :  { %v7350_v3 = vadd.f32 %v378_v48, %v279_v54 }
 0x192   :  { %v5979_v49 = vpop.f32.mrf.mxu1 }
 0x194   :  { %v383_v52 = vpop.f32.mrf.mxu1 }
 0x195   :  { %v7332_v59 = vadd.f32 %v383_v52, %v279_v54 }
 0x196   :  { %v5982_v53 = vpop.f32.mrf.mxu1 }
 0x198   :  { %v388_v55 = vpop.f32.mrf.mxu1 }
 0x199   :  { %v7328_v56 = vadd.f32 %v388_v55, %v279_v54 }
 0x19a   :  { %v5985_v57 = vpop.f32.mrf.mxu1 }
 0x19b   :  { %417 = vrot.lane.b32.xlu1 %v7328_v56, %s7132_s13 }
 0x19c   :  { %v393_v58 = vpop.f32.mrf.mxu1 }
 0x19d   :  { %v7344_v2 = vadd.f32 %v393_v58, %v279_v54 }
 0x19e   :  { %v5988_v60 = vpop.f32.mrf.mxu1 }
 0x19f   :  { %415 = vrot.lane.b32.xlu1 %v7332_v59, %s7132_s13 }
 0x1a0   :  { %v398_v61 = vpop.f32.mrf.mxu1 }
 0x1a1   :  { %v7338_v63 = vadd.f32 %v398_v61, %v279_v54 }
 0x1a2   :  { %v5991_v0 = vpop.f32.mrf.mxu1 }
 0x1a3   :  { %421 = vrot.lane.b32.xlu0 %v7338_v63, %s7132_s13  ;;  %411 = vrot.lane.b32.xlu1 %v7336_v62, %s7132_s13 }
 0x1a7   :  { %419 = vrot.lane.b32.xlu0 %v7344_v2, %s7132_s13  ;;  %819 = vrot.lane.b32.xlu1 %v7338_v63, %s7133_s14 }
 0x1ab   :  { %413 = vrot.lane.b32.xlu0 %v7350_v3, %s7132_s13  ;;  %815 = vrot.lane.b32.xlu1 %v7328_v56, %s7133_s14 }
 0x1af   :  { %811 = vrot.lane.b32.xlu1 %v7350_v3, %s7133_s14  ;;  %409 = vrot.lane.b32.xlu0 %v7356_v4, %s7132_s13 }
 0x1b3   :  { %807 = vrot.lane.b32.xlu1 %v7356_v4, %s7133_s14  ;;  %817 = vrot.lane.b32.xlu0 %v7344_v2, %s7133_s14 }
 0x1b7   :  { %1244 = vrot.lane.b32.xlu1 %v7338_v63, %s7134_s15  ;;  %813 = vrot.lane.b32.xlu0 %v7332_v59, %s7133_s14 }
 0x1bb   :  { %1242 = vrot.lane.b32.xlu1 %v7344_v2, %s7134_s15  ;;  %809 = vrot.lane.b32.xlu0 %v7336_v62, %s7133_s14 }
 0x1bf   :  { %1240 = vrot.lane.b32.xlu1 %v7328_v56, %s7134_s15  ;;  %793 = vrot.lane.b32.xlu0 %v7356_v4, %s7135_s16 }
 0x1c3   :  { %1238 = vrot.lane.b32.xlu1 %v7332_v59, %s7134_s15  ;;  %795 = vrot.lane.b32.xlu0 %v7336_v62, %s7135_s16 }
 0x1c7   :  { %1236 = vrot.lane.b32.xlu1 %v7350_v3, %s7134_s15  ;;  %797 = vrot.lane.b32.xlu0 %v7350_v3, %s7135_s16 }
 0x1cb   :  { %1234 = vrot.lane.b32.xlu1 %v7336_v62, %s7134_s15  ;;  %799 = vrot.lane.b32.xlu0 %v7332_v59, %s7135_s16 }
 0x1cf   :  { %1232 = vrot.lane.b32.xlu1 %v7356_v4, %s7134_s15  ;;  %801 = vrot.lane.b32.xlu0 %v7328_v56, %s7135_s16 }
 0x1d3   :  { %1669 = vrot.lane.b32.xlu1 %v7338_v63, %s7136_s17  ;;  %803 = vrot.lane.b32.xlu0 %v7344_v2, %s7135_s16 }
 0x1d7   :  { %1667 = vrot.lane.b32.xlu1 %v7344_v2, %s7136_s17  ;;  %805 = vrot.lane.b32.xlu0 %v7338_v63, %s7135_s16 }
 0x1db   :  { %1665 = vrot.lane.b32.xlu1 %v7328_v56, %s7136_s17  ;;  %1218 = vrot.lane.b32.xlu0 %v7356_v4, %s7137_s18 }
 0x1df   :  { %1663 = vrot.lane.b32.xlu1 %v7332_v59, %s7136_s17  ;;  %1220 = vrot.lane.b32.xlu0 %v7336_v62, %s7137_s18 }
 0x1e3   :  { %1661 = vrot.lane.b32.xlu1 %v7350_v3, %s7136_s17  ;;  %1222 = vrot.lane.b32.xlu0 %v7350_v3, %s7137_s18 }
 0x1e7   :  { %1659 = vrot.lane.b32.xlu1 %v7336_v62, %s7136_s17  ;;  %1224 = vrot.lane.b32.xlu0 %v7332_v59, %s7137_s18 }
 0x1eb   :  { %1657 = vrot.lane.b32.xlu1 %v7356_v4, %s7136_s17  ;;  %1226 = vrot.lane.b32.xlu0 %v7328_v56, %s7137_s18 }
 0x1ef   :  { %1645 = vrot.lane.b32.xlu1 %v7336_v62, %s7138_s19  ;;  %1228 = vrot.lane.b32.xlu0 %v7344_v2, %s7137_s18 }
 0x1f3   :  { %1649 = vrot.lane.b32.xlu1 %v7332_v59, %s7138_s19  ;;  %1230 = vrot.lane.b32.xlu0 %v7338_v63, %s7137_s18 }
 0x1f7   :  { %1653 = vrot.lane.b32.xlu1 %v7344_v2, %s7138_s19  ;;  %1643 = vrot.lane.b32.xlu0 %v7356_v4, %s7138_s19 }
 0x1fb   :  { %654 = vrot.lane.b32.xlu1 %v7344_v2, %s7139_s20  ;;  %1647 = vrot.lane.b32.xlu0 %v7350_v3, %s7138_s19 }
 0x1ff   :  { %648 = vrot.lane.b32.xlu1 %v7350_v3, %s7139_s20  ;;  %1651 = vrot.lane.b32.xlu0 %v7328_v56, %s7138_s19 }
 0x203   :  { %646 = vrot.lane.b32.xlu1 %v7336_v62, %s7139_s20  ;;  %1655 = vrot.lane.b32.xlu0 %v7338_v63, %s7138_s19 }
 0x207   :  { %644 = vrot.lane.b32.xlu1 %v7356_v4, %s7139_s20  ;;  %652 = vrot.lane.b32.xlu0 %v7328_v56, %s7139_s20 }
 0x20b   :  { %1050 = vrot.lane.b32.xlu1 %v7344_v2, %s7140_s21  ;;  %650 = vrot.lane.b32.xlu0 %v7332_v59, %s7139_s20 }
 0x20d   :  { %v418_v5 = vpop.permute.xlu1 %417 }
 0x20f   :  { %1042 = vrot.lane.b32.xlu1 %v7336_v62, %s7140_s21  ;;  %1048 = vrot.lane.b32.xlu0 %v7328_v56, %s7140_s21 }
 0x211   :  { %v416_v6 = vpop.permute.xlu1 %415 }
 0x213   :  { %1475 = vrot.lane.b32.xlu1 %v7344_v2, %s7141_s22  ;;  %1046 = vrot.lane.b32.xlu0 %v7332_v59, %s7140_s21 }
 0x215   :  { %v422_v7 = vpop.permute.xlu0 %421  ;;  %v412_v8 = vpop.permute.xlu1 %411 }
 0x216   :  { %5993 = vmatpush3.xpose.msk.msra.mxu0 %vm423_vm3, %v422_v7 }
 0x217   :  { %1467 = vrot.lane.b32.xlu1 %v7336_v62, %s7141_s22  ;;  %1044 = vrot.lane.b32.xlu0 %v7350_v3, %s7140_s21 }
 0x218   :  { %5994 = vmatprep.subr.mxu0 %v9727_v1 }
 0x219   :  { %v420_v9 = vpop.permute.xlu0 %419  ;;  %v820_v10 = vpop.permute.xlu1 %819 }
 0x21a   :  { %5995 = vmatpush3.xpose.msk.msra.mxu0 %vm423_vm3, %v420_v9 }
 0x21b   :  { %1040 = vrot.lane.b32.xlu0 %v7356_v4, %s7140_s21  ;;  %5996 = vmatprep.subr.mxu0 %v9727_v1 }
 0x21d   :  { %v414_v11 = vpop.permute.xlu0 %413  ;;  %v816_v12 = vpop.permute.xlu1 %815 }
 0x21e   :  { %5997 = vmatpush3.xpose.msk.msra.mxu0 %vm423_vm3, %v418_v5 }
 0x21f   :  { %1473 = vrot.lane.b32.xlu0 %v7328_v56, %s7141_s22  ;;  %5998 = vmatprep.subr.mxu0 %v9727_v1 }
 0x221   :  { %v410_v13 = vpop.permute.xlu0 %409  ;;  %v812_v15 = vpop.permute.xlu1 %811 }
 0x222   :  { %5999 = vmatpush3.xpose.msk.msra.mxu0 %vm423_vm3, %v416_v6 }
 0x223   :  { %1471 = vrot.lane.b32.xlu0 %v7332_v59, %s7141_s22  ;;  %6000 = vmatprep.subr.mxu0 %v9727_v1 }
 0x225   :  { %v818_v14 = vpop.permute.xlu0 %817  ;;  %v808_v18 = vpop.permute.xlu1 %807 }
 0x226   :  { %6001 = vmatpush3.xpose.msk.msra.mxu0 %vm423_vm3, %v414_v11 }
 0x227   :  { %1469 = vrot.lane.b32.xlu0 %v7350_v3, %s7141_s22  ;;  %6002 = vmatprep.subr.mxu0 %v9727_v1 }
 0x229   :  { %v814_v17 = vpop.permute.xlu0 %813  ;;  %v1245_v22 = vpop.permute.xlu1 %1244 }
 0x22a   :  { %6003 = vmatpush3.xpose.msk.msra.mxu0 %vm423_vm3, %v412_v8 }
 0x22b   :  { %1465 = vrot.lane.b32.xlu0 %v7356_v4, %s7141_s22  ;;  %6004 = vmatprep.subr.mxu0 %v9727_v1 }
 0x22d   :  { %v810_v19 = vpop.permute.xlu0 %809  ;;  %v1243_v25 = vpop.permute.xlu1 %1242 }
 0x22e   :  { %6005 = vmatpush3.xpose.msk.msra.mxu0 %vm423_vm3, %v410_v13 }
 0x22f   :  { %656 = vrot.lane.b32.xlu0 %v7338_v63, %s7139_s20  ;;  %6062 = vmatprep.subr.mxu0 %v9727_v1 }
 0x231   :  { %6007 = vmatmul.mubr.msk.f32.vlgmr.msra.gmra.mxu0 %vm423_vm3, %v7356_v4  ;;  %v794_v21 = vpop.permute.xlu0 %793  ;;  %v1241_v29 = vpop.permute.xlu1 %1240 }
 0x232   :  { %6063 = vmatpush3.xpose.msk.msra.mxu0 %vm423_vm3, %v820_v10  ;;  %6009 = vmatprep.mubr.msk.f32.mxu0 %vm7131_vm0, %v9727_v1 }
 0x233   :  { %1052 = vrot.lane.b32.xlu0 %v7338_v63, %s7140_s21  ;;  %6064 = vmatprep.subr.mxu0 %v9727_v1 }
 0x235   :  { %6010 = vmatmul.mubr.msk.f32.gmra.mxu0 %vm423_vm3, %v7336_v62  ;;  %v796_v23 = vpop.permute.xlu0 %795  ;;  %v1239_v31 = vpop.permute.xlu1 %1238 }
 0x236   :  { %6065 = vmatpush3.xpose.msk.msra.mxu0 %vm423_vm3, %v818_v14  ;;  %6012 = vmatprep.mubr.msk.f32.mxu0 %vm7131_vm0, %v9727_v1 }
 0x237   :  { %1477 = vrot.lane.b32.xlu0 %v7338_v63, %s7141_s22  ;;  %6066 = vmatprep.subr.mxu0 %v9727_v1 }
 0x239   :  { %6013 = vmatmul.mubr.msk.f32.gmra.mxu0 %vm423_vm3, %v7350_v3  ;;  %v798_v26 = vpop.permute.xlu0 %797  ;;  %v1237_v35 = vpop.permute.xlu1 %1236 }
 0x23a   :  { %6067 = vmatpush3.xpose.msk.msra.mxu0 %vm423_vm3, %v816_v12  ;;  %6015 = vmatprep.mubr.msk.f32.mxu0 %vm7131_vm0, %v9727_v1 }
 0x23b   :  { %1902 = vrot.lane.b32.xlu0 %v7338_v63, %s7142_s0  ;;  %6068 = vmatprep.subr.mxu0 %v9727_v1 }
 0x23d   :  { %6016 = vmatmul.mubr.msk.f32.gmra.mxu0 %vm423_vm3, %v7332_v59  ;;  %v800_v27 = vpop.permute.xlu0 %799  ;;  %v1235_v38 = vpop.permute.xlu1 %1234 }
 0x23e   :  { %6069 = vmatpush3.xpose.msk.msra.mxu0 %vm423_vm3, %v814_v17  ;;  %6018 = vmatprep.mubr.msk.f32.mxu0 %vm7131_vm0, %v9727_v1 }
 0x23f   :  { %6070 = vmatprep.subr.mxu0 %v9727_v1 }
 0x241   :  { %6019 = vmatmul.mubr.msk.f32.gmra.mxu0 %vm423_vm3, %v7328_v56  ;;  %v802_v30 = vpop.permute.xlu0 %801  ;;  %v1233_v42 = vpop.permute.xlu1 %1232 }
 0x242   :  { %6071 = vmatpush3.xpose.msk.msra.mxu0 %vm423_vm3, %v812_v15  ;;  %6021 = vmatprep.mubr.msk.f32.mxu0 %vm7131_vm0, %v9727_v1 }
 0x243   :  { %6072 = vmatprep.subr.mxu0 %v9727_v1 }
 0x245   :  { %6022 = vmatmul.mubr.msk.f32.gmra.mxu0 %vm423_vm3, %v7344_v2  ;;  %v804_v33 = vpop.permute.xlu0 %803  ;;  %v1670_v45 = vpop.permute.xlu1 %1669 }
 0x246   :  { %6073 = vmatpush3.xpose.msk.msra.mxu0 %vm423_vm3, %v810_v19  ;;  %6024 = vmatprep.mubr.msk.f32.mxu0 %vm7131_vm0, %v9727_v1 }
 0x247   :  { %6074 = vmatprep.subr.mxu0 %v9727_v1 }
 0x249   :  { %6025 = vmatmul.mubr.msk.f32.gmra.mxu0 %vm423_vm3, %v7338_v63  ;;  %v806_v34 = vpop.permute.xlu0 %805  ;;  %v1668_v49 = vpop.permute.xlu1 %1667 }
 0x24a   :  { %6075 = vmatpush3.xpose.msk.msra.mxu0 %vm423_vm3, %v808_v18  ;;  %6076 = vmatprep.mubr.msk.f32.mxu0 %vm7131_vm0, %v9727_v1 }
 0x24b   :  { %6132 = vmatprep.subr.mxu0 %v9727_v1 }
 0x24d   :  { %6077 = vmatmul.mubr.msk.f32.vlgmr.msra.gmra.mxu0 %vm423_vm3, %v794_v21  ;;  %v1219_v37 = vpop.permute.xlu0 %1218  ;;  %v1666_v52 = vpop.permute.xlu1 %1665 }
 0x24e   :  { %6133 = vmatpush3.xpose.msk.msra.mxu0 %vm423_vm3, %v1245_v22  ;;  %6079 = vmatprep.mubr.msk.f32.mxu0 %vm7131_vm0, %v9727_v1 }
 0x24f   :  { %6134 = vmatprep.subr.mxu0 %v9727_v1 }
 0x251   :  { %6080 = vmatmul.mubr.msk.f32.gmra.mxu0 %vm423_vm3, %v796_v23  ;;  %v1221_v39 = vpop.permute.xlu0 %1220  ;;  %v1664_v55 = vpop.permute.xlu1 %1663 }
 0x252   :  { %6135 = vmatpush3.xpose.msk.msra.mxu0 %vm423_vm3, %v1243_v25  ;;  %6082 = vmatprep.mubr.msk.f32.mxu0 %vm7131_vm0, %v9727_v1  ;;  %v7655_v25 = vand.u32 127, %v24_v44 }
 0x253   :  { %6136 = vmatprep.subr.mxu0 %v9727_v1 }
 0x254   :  { %9757 = vst [vmem:[#allocation10_spill] sm:$0xff] %v7655_v25  ;;  %vm63_vm4 = vcmp.lt.s32.totalorder %v7655_v25, 28  ;;  %vm92_vm6 = vcmp.ge.s32.totalorder %v7655_v25, 28  ;;  %vm100_vm10 = vcmp.lt.s32.totalorder %v7655_v25, 56 }
 0x255   :  { %6083 = vmatmul.mubr.msk.f32.gmra.mxu0 %vm423_vm3, %v798_v26  ;;  %v1223_v41 = vpop.permute.xlu0 %1222  ;;  %v1662_v58 = vpop.permute.xlu1 %1661  ;;  %v28_v26 = vadd.s32 24, %v7320_v47  ;;  %vm105_vm14 = vmand %vm92_vm6, %vm100_vm10 }
 0x256   :  { %6137 = vmatpush3.xpose.msk.msra.mxu0 %vm423_vm3, %v1241_v29  ;;  %6085 = vmatprep.mubr.msk.f32.mxu0 %vm7131_vm0, %v9727_v1 }
 0x257   :  { %6138 = vmatprep.subr.mxu0 %v9727_v1  ;;  %vm74_vm5 = vcmp.ge.s32.totalorder %v28_v26, 28  ;;  %vm44_vm8 = vcmp.lt.s32.totalorder %v28_v26, 28 }
 0x258   :  { %vm96_vm9 = vmand %vm74_vm5, %vm92_vm6  ;;  %vm2481_vm5 = vcmask 523264  }
 0x259   :  { %6086 = vmatmul.mubr.msk.f32.gmra.mxu0 %vm423_vm3, %v800_v27  ;;  %v1225_v43 = vpop.permute.xlu0 %1224  ;;  %v1660_v63 = vpop.permute.xlu1 %1659  ;;  %v7143_v27 = vmov -1e+30   ;;  %vm67_vm11 = vmand %vm44_vm8, %vm63_vm4 }
 0x25a   :  { %6139 = vmatpush3.xpose.msk.msra.mxu0 %vm423_vm3, %v1239_v31  ;;  %6088 = vmatprep.mubr.msk.f32.mxu0 %vm7131_vm0, %v9727_v1  ;;  %v7661_v29 = vsel %vm63_vm4, 0.0, %v7143_v27  ;;  %vm104_vm12 = vmand %vm96_vm9, %vm100_vm10  ;;  %vm2060_vm4 = vcmask 261312  }
 0x25b   :  { %6140 = vmatprep.subr.mxu0 %v9727_v1  ;;  %9758 = vst [vmem:[#allocation11_spill] sm:$0xff] %v7661_v29  ;;  %vm111_vm13 = vmor %vm67_vm11, %vm104_vm12 }
 0x25d   :  { %6089 = vmatmul.mubr.msk.f32.gmra.mxu0 %vm423_vm3, %v802_v30  ;;  %v1227_v46 = vpop.permute.xlu0 %1226  ;;  %v1658_v5 = vpop.permute.xlu1 %1657 }
 0x25e   :  { %6141 = vmatpush3.xpose.msk.msra.mxu0 %vm423_vm3, %v1237_v35  ;;  %6091 = vmatprep.mubr.msk.f32.mxu0 %vm7131_vm0, %v9727_v1 }
 0x25f   :  { %6142 = vmatprep.subr.mxu0 %v9727_v1 }
 0x261   :  { %6092 = vmatmul.mubr.msk.f32.gmra.mxu0 %vm423_vm3, %v804_v33  ;;  %v1229_v48 = vpop.permute.xlu0 %1228  ;;  %v1646_v8 = vpop.permute.xlu1 %1645 }
 0x262   :  { %6143 = vmatpush3.xpose.msk.msra.mxu0 %vm423_vm3, %v1235_v38  ;;  %6094 = vmatprep.mubr.msk.f32.mxu0 %vm7131_vm0, %v9727_v1 }
 0x263   :  { %6144 = vmatprep.subr.mxu0 %v9727_v1 }
 0x265   :  { %6095 = vmatmul.mubr.msk.f32.gmra.mxu0 %vm423_vm3, %v806_v34  ;;  %v1231_v51 = vpop.permute.xlu0 %1230  ;;  %v1650_v11 = vpop.permute.xlu1 %1649 }
 0x266   :  { %6145 = vmatpush3.xpose.msk.msra.mxu0 %vm423_vm3, %v1233_v42  ;;  %6146 = vmatprep.mubr.msk.f32.mxu0 %vm7131_vm0, %v9727_v1 }
 0x267   :  { %6202 = vmatprep.subr.mxu0 %v9727_v1 }
 0x269   :  { %6147 = vmatmul.mubr.msk.f32.vlgmr.msra.gmra.mxu0 %vm423_vm3, %v1219_v37  ;;  %v1644_v53 = vpop.permute.xlu0 %1643  ;;  %v1654_v13 = vpop.permute.xlu1 %1653 }
 0x26a   :  { %6203 = vmatpush3.xpose.msk.msra.mxu0 %vm423_vm3, %v1670_v45  ;;  %6149 = vmatprep.mubr.msk.f32.mxu0 %vm7131_vm0, %v9727_v1 }
 0x26b   :  { %6204 = vmatprep.subr.mxu0 %v9727_v1 }
 0x26d   :  { %6150 = vmatmul.mubr.msk.f32.gmra.mxu0 %vm423_vm3, %v1221_v39  ;;  %v1648_v54 = vpop.permute.xlu0 %1647  ;;  %v655_v17 = vpop.permute.xlu1 %654 }
 0x26e   :  { %6205 = vmatpush3.xpose.msk.msra.mxu0 %vm423_vm3, %v1668_v49  ;;  %6152 = vmatprep.mubr.msk.f32.mxu0 %vm7131_vm0, %v9727_v1  ;;  %v7684_v49 = vsel %vm111_vm13, 0.0, %v7143_v27 }
 0x26f   :  { %6206 = vmatprep.subr.mxu0 %v9727_v1  ;;  %9759 = vst [vmem:[#allocation12_spill] sm:$0xff] %v7684_v49 }
 0x271   :  { %6153 = vmatmul.mubr.msk.f32.gmra.mxu0 %vm423_vm3, %v1223_v41  ;;  %v1652_v57 = vpop.permute.xlu0 %1651  ;;  %v649_v19 = vpop.permute.xlu1 %648 }
 0x272   :  { %6207 = vmatpush3.xpose.msk.msra.mxu0 %vm423_vm3, %v1666_v52  ;;  %6155 = vmatprep.mubr.msk.f32.mxu0 %vm7131_vm0, %v9727_v1 }
 0x273   :  { %6208 = vmatprep.subr.mxu0 %v9727_v1 }
 0x275   :  { %6156 = vmatmul.mubr.msk.f32.gmra.mxu0 %vm423_vm3, %v1225_v43  ;;  %v1656_v60 = vpop.permute.xlu0 %1655  ;;  %v647_v22 = vpop.permute.xlu1 %646 }
 0x276   :  { %6209 = vmatpush3.xpose.msk.msra.mxu0 %vm423_vm3, %v1664_v55  ;;  %6158 = vmatprep.mubr.msk.f32.mxu0 %vm7131_vm0, %v9727_v1 }
 0x277   :  { %6210 = vmatprep.subr.mxu0 %v9727_v1 }
 0x279   :  { %6159 = vmatmul.mubr.msk.f32.gmra.mxu0 %vm423_vm3, %v1227_v46  ;;  %v653_v61 = vpop.permute.xlu0 %652  ;;  %v645_v23 = vpop.permute.xlu1 %644 }
 0x27a   :  { %6211 = vmatpush3.xpose.msk.msra.mxu0 %vm423_vm3, %v1662_v58  ;;  %6161 = vmatprep.mubr.msk.f32.mxu0 %vm7131_vm0, %v9727_v1 }
 0x27b   :  { %6212 = vmatprep.subr.mxu0 %v9727_v1 }
 0x27d   :  { %6162 = vmatmul.mubr.msk.f32.gmra.mxu0 %vm423_vm3, %v1229_v48  ;;  %v651_v0 = vpop.permute.xlu0 %650 }
 0x27e   :  { %6213 = vmatpush3.xpose.msk.msra.mxu0 %vm423_vm3, %v1660_v63  ;;  %6164 = vmatprep.mubr.msk.f32.mxu0 %vm7131_vm0, %v9727_v1 }
 0x27f   :  { %6214 = vmatprep.subr.mxu0 %v9727_v1 }
 0x281   :  { %6165 = vmatmul.mubr.msk.f32.gmra.mxu0 %vm423_vm3, %v1231_v51  ;;  %v7606_v6 = vpop.permute.xlu0 %1048 }
 0x282   :  { %6215 = vmatpush3.xpose.msk.msra.mxu0 %vm423_vm3, %v1658_v5  ;;  %6216 = vmatprep.mubr.msk.f32.mxu0 %vm7131_vm0, %v9727_v1 }
 0x283   :  { %6272 = vmatprep.subr.mxu0 %v9727_v1 }
 0x285   :  { %6217 = vmatmul.mubr.msk.f32.vlgmr.msra.gmra.mxu0 %vm423_vm3, %v1644_v53  ;;  %v7613_v7 = vpop.permute.xlu0 %1046 }
 0x286   :  { %6219 = vmatprep.mubr.msk.f32.mxu0 %vm7131_vm0, %v9727_v1 }
 0x289   :  { %6220 = vmatmul.mubr.msk.f32.gmra.mxu0 %vm423_vm3, %v1646_v8  ;;  %v7618_v9 = vpop.permute.xlu0 %1044 }
 0x28a   :  { %6222 = vmatprep.mubr.msk.f32.mxu0 %vm7131_vm0, %v9727_v1 }
 0x28d   :  { %6223 = vmatmul.mubr.msk.f32.gmra.mxu0 %vm423_vm3, %v1648_v54  ;;  %v7623_v10 = vpop.permute.xlu0 %1040 }
 0x28e   :  { %6225 = vmatprep.mubr.msk.f32.mxu0 %vm7131_vm0, %v9727_v1 }
 0x291   :  { %6226 = vmatmul.mubr.msk.f32.gmra.mxu0 %vm423_vm3, %v1650_v11  ;;  %v7628_v12 = vpop.permute.xlu0 %1473 }
 0x292   :  { %6228 = vmatprep.mubr.msk.f32.mxu0 %vm7131_vm0, %v9727_v1 }
 0x295   :  { %6229 = vmatmul.mubr.msk.f32.gmra.mxu0 %vm423_vm3, %v1652_v57  ;;  %v7633_v14 = vpop.permute.xlu0 %1471  ;;  %v7695_v57 = vsel %vm105_vm14, 0.0, %v7143_v27 }
 0x296   :  { %6231 = vmatprep.mubr.msk.f32.mxu0 %vm7131_vm0, %v9727_v1  ;;  %9760 = vst [vmem:[#allocation13_spill] sm:$0xff] %v7695_v57 }
 0x299   :  { %6232 = vmatmul.mubr.msk.f32.gmra.mxu0 %vm423_vm3, %v1654_v13  ;;  %v7638_v15 = vpop.permute.xlu0 %1469 }
 0x29a   :  { %6234 = vmatprep.mubr.msk.f32.mxu0 %vm7131_vm0, %v9727_v1 }
 0x29d   :  { %6235 = vmatmul.mubr.msk.f32.gmra.mxu0 %vm423_vm3, %v1656_v60  ;;  %v7643_v18 = vpop.permute.xlu0 %1465 }
 0x29e   :  { %6280 = vmatprep.mubr.msk.f32.mxu0 %vm7131_vm0, %v9727_v1 }
 0x2a1   :  { %v657_v21 = vpop.permute.xlu0 %656 }
 0x2a2   :  { %6028 = vmatpush3.msra.mxu1 %v657_v21 }
 0x2a3   :  { %6029 = vmatprep.subr.mxu1 %v9727_v1 }
 0x2a4   :  { %6030 = vmatpush3.msra.mxu1 %v655_v17 }
 0x2a5   :  { %6031 = vmatprep.subr.mxu1 %v9727_v1 }
 0x2a6   :  { %6032 = vmatpush3.msra.mxu1 %v653_v61 }
 0x2a7   :  { %6033 = vmatprep.subr.mxu1 %v9727_v1 }
 0x2a8   :  { %6034 = vmatpush3.msra.mxu1 %v651_v0 }
 0x2a9   :  { %6035 = vmatprep.subr.mxu1 %v9727_v1 }
 0x2aa   :  { %6036 = vmatpush3.msra.mxu1 %v649_v19 }
 0x2ab   :  { %6037 = vmatprep.subr.mxu1 %v9727_v1 }
 0x2ac   :  { %6038 = vmatpush3.msra.mxu1 %v647_v22 }
 0x2ad   :  { %6039 = vmatprep.subr.mxu1 %v9727_v1 }
 0x2ae   :  { %6040 = vmatpush3.msra.mxu1 %v645_v23 }
 0x2af   :  { %6097 = vmatprep.subr.mxu1 %v9727_v1 }
 0x2f1   :  { %v518_v30 = vpop.f32.mrf.mxu0 }
 0x2f2   :  { %v552_v31 = vmul.f32 0.35355338, %v518_v30 }
 0x2f3   :  { %v6008_v33 = vpop.f32.mrf.mxu0 }
 0x2f4   :  { %v7665_v44 = vadd.f32 %v552_v31, %v7661_v29 }
 0x2f5   :  { %v523_v34 = vpop.f32.mrf.mxu0 }
 0x2f6   :  { %v553_v35 = vmul.f32 0.35355338, %v523_v34  ;;  %v567_v37 = vsel %vm566_vm7, %v7665_v44, -inf }
 0x2f7   :  { %568 = vmax.xlane.f32.xlu1 %v567_v37  ;;  %v6011_v38 = vpop.f32.mrf.mxu0 }
 0x2f8   :  { %v7677_v39 = vadd.f32 %v553_v35, %v7661_v29 }
 0x2f9   :  { %v528_v41 = vpop.f32.mrf.mxu0 }
 0x2fa   :  { %v554_v42 = vmul.f32 0.35355338, %v528_v41  ;;  %v570_v43 = vsel %vm566_vm7, %v7677_v39, -inf }
 0x2fb   :  { %571 = vmax.xlane.f32.xlu0 %v570_v43  ;;  %v6014_v45 = vpop.f32.mrf.mxu0 }
 0x2fc   :  { %v7682_v46 = vadd.f32 %v554_v42, %v7661_v29 }
 0x2fd   :  { %v533_v48 = vpop.f32.mrf.mxu0 }
 0x2fe   :  { %v555_v51 = vmul.f32 0.35355338, %v533_v48  ;;  %v573_v52 = vsel %vm566_vm7, %v7682_v46, -inf }
 0x2ff   :  { %574 = vmax.xlane.f32.xlu0 %v573_v52  ;;  %v6017_v53 = vpop.f32.mrf.mxu0 }
 0x300   :  { %v7693_v54 = vadd.f32 %v555_v51, %v7684_v49 }
 0x301   :  { %v538_v55 = vpop.f32.mrf.mxu0 }
 0x302   :  { %v556_v58 = vmul.f32 0.35355338, %v538_v55  ;;  %v576_v60 = vsel %vm566_vm7, %v7693_v54, -inf }
 0x303   :  { %v6020_v61 = vpop.f32.mrf.mxu0  ;;  %577 = vmax.xlane.f32.xlu1 %v576_v60 }
 0x304   :  { %v7700_v63 = vadd.f32 %v556_v58, %v7695_v57 }
 0x305   :  { %v543_v0 = vpop.f32.mrf.mxu0 }
 0x306   :  { %v557_v5 = vmul.f32 0.35355338, %v543_v0  ;;  %v579_v8 = vsel %vm566_vm7, %v7700_v63, -inf }
 0x307   :  { %580 = vmax.xlane.f32.xlu0 %v579_v8  ;;  %v6023_v11 = vpop.f32.mrf.mxu0 }
 0x308   :  { %v7705_v13 = vadd.f32 %v557_v5, %v7695_v57 }
 0x309   :  { %v548_v17 = vpop.f32.mrf.mxu0 }
 0x30a   :  { %v558_v19 = vmul.f32 0.35355338, %v548_v17  ;;  %v582_v21 = vsel %vm566_vm7, %v7705_v13, -inf }
 0x30b   :  { %v6026_v22 = vpop.f32.mrf.mxu0  ;;  %583 = vmax.xlane.f32.xlu1 %v582_v21 }
 0x30c   :  { %v7710_v23 = vadd.f32 %v558_v19, %v7695_v57 }
 0x30d   :  { %v915_v26 = vpop.f32.mrf.mxu0 }
 0x30e   :  { %v949_v27 = vmul.f32 0.35355338, %v915_v26  ;;  %v585_v30 = vsel %vm566_vm7, %v7710_v23, -inf }
 0x30f   :  { %586 = vmax.xlane.f32.xlu0 %v585_v30  ;;  %v6078_v31 = vpop.f32.mrf.mxu0 }
 0x310   :  { %v7715_v33 = vadd.f32 %v949_v27, %v7661_v29 }
 0x311   :  { %v920_v34 = vpop.f32.mrf.mxu0 }
 0x312   :  { %v950_v35 = vmul.f32 0.35355338, %v920_v34  ;;  %v963_v37 = vsel %vm566_vm7, %v7715_v33, -inf }
 0x313   :  { %v6081_v38 = vpop.f32.mrf.mxu0  ;;  %964 = vmax.xlane.f32.xlu1 %v963_v37 }
 0x314   :  { %v7720_v41 = vadd.f32 %v950_v35, %v7661_v29 }
 0x315   :  { %v925_v42 = vpop.f32.mrf.mxu0 }
 0x316   :  { %v951_v43 = vmul.f32 0.35355338, %v925_v42  ;;  %v966_v45 = vsel %vm566_vm7, %v7720_v41, -inf }
 0x317   :  { %967 = vmax.xlane.f32.xlu0 %v966_v45  ;;  %v6084_v48 = vpop.f32.mrf.mxu0 }
 0x318   :  { %v7725_v51 = vadd.f32 %v951_v43, %v7661_v29 }
 0x319   :  { %v930_v52 = vpop.f32.mrf.mxu0 }
 0x31a   :  { %v952_v53 = vmul.f32 0.35355338, %v930_v52  ;;  %v969_v55 = vsel %vm566_vm7, %v7725_v51, -inf }
 0x31b   :  { %v6087_v58 = vpop.f32.mrf.mxu0  ;;  %970 = vmax.xlane.f32.xlu1 %v969_v55 }
 0x31c   :  { %v7730_v60 = vadd.f32 %v952_v53, %v7684_v49 }
 0x31d   :  { %v935_v61 = vpop.f32.mrf.mxu0 }
 0x31e   :  { %v953_v0 = vmul.f32 0.35355338, %v935_v61  ;;  %v972_v5 = vsel %vm566_vm7, %v7730_v60, -inf }
 0x31f   :  { %v6090_v8 = vpop.f32.mrf.mxu0  ;;  %973 = vmax.xlane.f32.xlu0 %v972_v5 }
 0x320   :  { %v7735_v11 = vadd.f32 %v953_v0, %v7695_v57 }
 0x321   :  { %v940_v17 = vpop.f32.mrf.mxu0 }
 0x322   :  { %v954_v19 = vmul.f32 0.35355338, %v940_v17  ;;  %v975_v21 = vsel %vm566_vm7, %v7735_v11, -inf }
 0x323   :  { %v6093_v22 = vpop.f32.mrf.mxu0  ;;  %976 = vmax.xlane.f32.xlu1 %v975_v21 }
 0x324   :  { %v7740_v26 = vadd.f32 %v954_v19, %v7695_v57 }
 0x325   :  { %v945_v27 = vpop.f32.mrf.mxu0 }
 0x326   :  { %v955_v30 = vmul.f32 0.35355338, %v945_v27  ;;  %v978_v31 = vsel %vm566_vm7, %v7740_v26, -inf }
 0x327   :  { %v6096_v34 = vpop.f32.mrf.mxu0  ;;  %979 = vmax.xlane.f32.xlu0 %v978_v31 }
 0x328   :  { %v7745_v35 = vadd.f32 %v955_v30, %v7695_v57 }
 0x329   :  { %v1340_v37 = vpop.f32.mrf.mxu0 }
 0x32a   :  { %v1374_v38 = vmul.f32 0.35355338, %v1340_v37  ;;  %v981_v42 = vsel %vm566_vm7, %v7745_v35, -inf }
 0x32b   :  { %v6148_v43 = vpop.f32.mrf.mxu0  ;;  %982 = vmax.xlane.f32.xlu1 %v981_v42 }
 0x32c   :  { %v7750_v45 = vadd.f32 %v1374_v38, %v7661_v29 }
 0x32d   :  { %v1345_v48 = vpop.f32.mrf.mxu0 }
 0x32e   :  { %v1375_v52 = vmul.f32 0.35355338, %v1345_v48  ;;  %v1388_v53 = vsel %vm566_vm7, %v7750_v45, -inf }
 0x32f   :  { %v6151_v55 = vpop.f32.mrf.mxu0  ;;  %1389 = vmax.xlane.f32.xlu0 %v1388_v53 }
 0x330   :  { %v7755_v58 = vadd.f32 %v1375_v52, %v7661_v29 }
 0x331   :  { %v1350_v61 = vpop.f32.mrf.mxu0 }
 0x332   :  { %v1376_v0 = vmul.f32 0.35355338, %v1350_v61  ;;  %v1391_v5 = vsel %vm566_vm7, %v7755_v58, -inf }
 0x333   :  { %v6154_v8 = vpop.f32.mrf.mxu0  ;;  %1392 = vmax.xlane.f32.xlu1 %v1391_v5 }
 0x334   :  { %v7760_v17 = vadd.f32 %v1376_v0, %v7661_v29 }
 0x335   :  { %v1355_v19 = vpop.f32.mrf.mxu0 }
 0x336   :  { %v1377_v21 = vmul.f32 0.35355338, %v1355_v19  ;;  %v1394_v22 = vsel %vm566_vm7, %v7760_v17, -inf }
 0x337   :  { %v6157_v27 = vpop.f32.mrf.mxu0  ;;  %1395 = vmax.xlane.f32.xlu0 %v1394_v22 }
 0x338   :  { %v7765_v30 = vadd.f32 %v1377_v21, %v7684_v49 }
 0x339   :  { %v1360_v31 = vpop.f32.mrf.mxu0 }
 0x33a   :  { %v1378_v34 = vmul.f32 0.35355338, %v1360_v31  ;;  %v1397_v37 = vsel %vm566_vm7, %v7765_v30, -inf }
 0x33b   :  { %v6160_v38 = vpop.f32.mrf.mxu0  ;;  %1398 = vmax.xlane.f32.xlu1 %v1397_v37 }
 0x33c   :  { %v7770_v42 = vadd.f32 %v1378_v34, %v7695_v57 }
 0x33d   :  { %v1365_v43 = vpop.f32.mrf.mxu0 }
 0x33e   :  { %v1379_v48 = vmul.f32 0.35355338, %v1365_v43  ;;  %v1400_v52 = vsel %vm566_vm7, %v7770_v42, -inf }
 0x33f   :  { %v6163_v53 = vpop.f32.mrf.mxu0  ;;  %1401 = vmax.xlane.f32.xlu0 %v1400_v52 }
 0x340   :  { %v7775_v55 = vadd.f32 %v1379_v48, %v7695_v57 }
 0x341   :  { %v1370_v61 = vpop.f32.mrf.mxu0 }
 0x342   :  { %v1380_v0 = vmul.f32 0.35355338, %v1370_v61  ;;  %v1403_v5 = vsel %vm566_vm7, %v7775_v55, -inf }
 0x343   :  { %v6166_v8 = vpop.f32.mrf.mxu0  ;;  %1404 = vmax.xlane.f32.xlu1 %v1403_v5 }
 0x344   :  { %v7780_v19 = vadd.f32 %v1380_v0, %v7695_v57 }
 0x345   :  { %v1765_v21 = vpop.f32.mrf.mxu0 }
 0x346   :  { %v1799_v22 = vmul.f32 0.35355338, %v1765_v21  ;;  %v1406_v27 = vsel %vm566_vm7, %v7780_v19, -inf }
 0x347   :  { %v6218_v31 = vpop.f32.mrf.mxu0  ;;  %1407 = vmax.xlane.f32.xlu0 %v1406_v27 }
 0x348   :  { %v7785_v34 = vadd.f32 %v1799_v22, %v7661_v29 }
 0x349   :  { %v1770_v37 = vpop.f32.mrf.mxu0 }
 0x34a   :  { %v1800_v38 = vmul.f32 0.35355338, %v1770_v37  ;;  %v1813_v43 = vsel %vm566_vm7, %v7785_v34, -inf }
 0x34b   :  { %v6221_v48 = vpop.f32.mrf.mxu0  ;;  %1814 = vmax.xlane.f32.xlu1 %v1813_v43 }
 0x34c   :  { %v7790_v52 = vadd.f32 %v1800_v38, %v7661_v29 }
 0x34d   :  { %v1775_v53 = vpop.f32.mrf.mxu0 }
 0x34e   :  { %v1801_v61 = vmul.f32 0.35355338, %v1775_v53  ;;  %v1816_v0 = vsel %vm566_vm7, %v7790_v52, -inf }
 0x34f   :  { %v6224_v5 = vpop.f32.mrf.mxu0  ;;  %1817 = vmax.xlane.f32.xlu0 %v1816_v0 }
 0x350   :  { %v7795_v8 = vadd.f32 %v1801_v61, %v7661_v29 }
 0x351   :  { %v1780_v21 = vpop.f32.mrf.mxu0 }
 0x352   :  { %v1802_v22 = vmul.f32 0.35355338, %v1780_v21  ;;  %v1819_v27 = vsel %vm566_vm7, %v7795_v8, -inf }
 0x353   :  { %v6227_v31 = vpop.f32.mrf.mxu0  ;;  %1820 = vmax.xlane.f32.xlu0 %v1819_v27 }
 0x354   :  { %v7800_v37 = vadd.f32 %v1802_v22, %v7684_v49 }
 0x355   :  { %v1785_v38 = vpop.f32.mrf.mxu0 }
 0x356   :  { %v1803_v43 = vmul.f32 0.35355338, %v1785_v38  ;;  %v1822_v48 = vsel %vm566_vm7, %v7800_v37, -inf }
 0x357   :  { %v6230_v53 = vpop.f32.mrf.mxu0  ;;  %1823 = vmax.xlane.f32.xlu0 %v1822_v48 }
 0x358   :  { %v7805_v61 = vadd.f32 %v1803_v43, %v7695_v57 }
 0x359   :  { %v1790_v0 = vpop.f32.mrf.mxu0 }
 0x35a   :  { %v1804_v5 = vmul.f32 0.35355338, %v1790_v0  ;;  %v1825_v21 = vsel %vm566_vm7, %v7805_v61, -inf  ;;  %v7819_v0 = vpop.permute.xlu1 %1050 }
 0x35b   :  { %v6233_v31 = vpop.f32.mrf.mxu0  ;;  %1826 = vmax.xlane.f32.xlu0 %v1825_v21 }
 0x35c   :  { %v7810_v22 = vadd.f32 %v1804_v5, %v7695_v57  ;;  %v7823_v5 = vpop.permute.xlu0 %1052 }
 0x35d   :  { %v1795_v27 = vpop.f32.mrf.mxu0 }
 0x35e   :  { %v1805_v38 = vmul.f32 0.35355338, %v1795_v27  ;;  %v1828_v50 = vsel %vm566_vm7, %v7810_v22, -inf  ;;  %v7821_v21 = vpop.permute.xlu1 %1042 }
 0x35f   :  { %v6236_v53 = vpop.f32.mrf.mxu0  ;;  %1829 = vmax.xlane.f32.xlu1 %v1828_v50 }
 0x360   :  { %v7815_v43 = vadd.f32 %v1805_v38, %v7695_v57  ;;  %v7829_v27 = vpop.permute.xlu0 %1477 }
 0x362   :  { %v1831_v48 = vsel %vm566_vm7, %v7815_v43, -inf  ;;  %v7825_v31 = vpop.permute.xlu1 %1475 }
 0x363   :  { %1832 = vmax.xlane.f32.xlu0 %v1831_v48 }
 0x364   :  { %v7835_v38 = vpop.permute.xlu0 %1902 }
 0x366   :  { %v7831_v50 = vpop.permute.xlu1 %1467 }
 0x379   :  { %1898 = vrot.lane.b32.xlu0 %v7328_v56, %s7142_s0 }
 0x37d   :  { %1896 = vrot.lane.b32.xlu0 %v7332_v59, %s7142_s0 }
 0x380   :  { %v569_v53 = vpop.xlane.xlu1 %568 }
 0x381   :  { %v588_v48 = vsub.f32 %v7665_v44, %v569_v53 }
 0x383   :  { %v595_v1 = vmul.f32 1.442695, %v588_v48 }
 0x384   :  { %v572_v25 = vpop.xlane.xlu0 %571 }
 0x385   :  { %6818 = vpow2.f32 %v595_v1  ;;  %v589_v57 = vsub.f32 %v7677_v39, %v572_v25 }
 0x387   :  { %v597_v49 = vmul.f32 1.442695, %v589_v57 }
 0x388   :  { %v575_v29 = vpop.xlane.xlu0 %574 }
 0x389   :  { %6820 = vpow2.f32 %v597_v49  ;;  %v590_v56 = vsub.f32 %v7682_v46, %v575_v29 }
 0x38b   :  { %v599_v40 = vmul.f32 1.442695, %v590_v56 }
 0x38c   :  { %v578_v36 = vpop.xlane.xlu1 %577 }
 0x38d   :  { %6822 = vpow2.f32 %v599_v40  ;;  %v591_v59 = vsub.f32 %v7693_v54, %v578_v36 }
 0x38f   :  { %v601_v32 = vmul.f32 1.442695, %v591_v59 }
 0x390   :  { %v581_v28 = vpop.xlane.xlu0 %580 }
 0x391   :  { %6824 = vpow2.f32 %v601_v32  ;;  %v592_v44 = vsub.f32 %v7700_v63, %v581_v28 }
 0x392   :  { %v7842_v53 = vpop.eup %6818 }
 0x393   :  { %v603_v1 = vmul.f32 1.442695, %v592_v44  ;;  %v609_v25 = vsel %vm566_vm7, %v7842_v53, 0.0 }
 0x394   :  { %610 = vadd.xlane.f32.xlu1 %v609_v25  ;;  %v584_v39 = vpop.xlane.xlu1 %583 }
 0x395   :  { %6826 = vpow2.f32 %v603_v1  ;;  %v593_v29 = vsub.f32 %v7705_v13, %v584_v39 }
 0x396   :  { %v7847_v46 = vpop.eup %6820 }
 0x397   :  { %v605_v40 = vmul.f32 1.442695, %v593_v29  ;;  %v612_v36 = vsel %vm566_vm7, %v7847_v46, 0.0 }
 0x398   :  { %v587_v32 = vpop.xlane.xlu0 %586  ;;  %613 = vadd.xlane.f32.xlu1 %v612_v36 }
 0x399   :  { %6828 = vpow2.f32 %v605_v40  ;;  %v594_v28 = vsub.f32 %v7710_v23, %v587_v32 }
 0x39a   :  { %v7852_v49 = vpop.eup %6822 }
 0x39b   :  { %v607_v54 = vmul.f32 1.442695, %v594_v28  ;;  %v615_v57 = vsel %vm566_vm7, %v7852_v49, 0.0 }
 0x39c   :  { %616 = vadd.xlane.f32.xlu1 %v615_v57  ;;  %v965_v48 = vpop.xlane.xlu1 %964 }
 0x39d   :  { %6830 = vpow2.f32 %v607_v54 }
 0x39e   :  { %v7856_v63 = vpop.eup %6824 }
 0x39f   :  { %v618_v13 = vsel %vm566_vm7, %v7856_v63, 0.0 }
 0x3a0   :  { %v968_v56 = vpop.xlane.xlu0 %967  ;;  %619 = vadd.xlane.f32.xlu1 %v618_v13 }
 0x3a1   :  { %v985_v59 = vsub.f32 %v7720_v41, %v968_v56 }
 0x3a2   :  { %v7861_v44 = vpop.eup %6826 }
 0x3a3   :  { %v993_v23 = vmul.f32 1.442695, %v985_v59  ;;  %v621_v1 = vsel %vm566_vm7, %v7861_v44, 0.0 }
 0x3a4   :  { %622 = vadd.xlane.f32.xlu1 %v621_v1  ;;  %v971_v25 = vpop.xlane.xlu1 %970 }
 0x3a5   :  { %6832 = vpow2.f32 %v993_v23  ;;  %v986_v39 = vsub.f32 %v7725_v51, %v971_v25 }
 0x3a6   :  { %v7866_v29 = vpop.eup %6828 }
 0x3a7   :  { %v995_v40 = vmul.f32 1.442695, %v986_v39  ;;  %v624_v36 = vsel %vm566_vm7, %v7866_v29, 0.0 }
 0x3a8   :  { %v974_v32 = vpop.xlane.xlu0 %973  ;;  %625 = vadd.xlane.f32.xlu1 %v624_v36 }
 0x3a9   :  { %6834 = vpow2.f32 %v995_v40  ;;  %v987_v41 = vsub.f32 %v7730_v60, %v974_v32 }
 0x3aa   :  { %v7871_v28 = vpop.eup %6830 }
 0x3ab   :  { %v997_v54 = vmul.f32 1.442695, %v987_v41  ;;  %v627_v57 = vsel %vm566_vm7, %v7871_v28, 0.0  ;;  %v984_v41 = vsub.f32 %v7715_v33, %v965_v48 }
 0x3ac   :  { %628 = vadd.xlane.f32.xlu0 %v627_v57  ;;  %v977_v51 = vpop.xlane.xlu1 %976 }
 0x3ad   :  { %6836 = vpow2.f32 %v997_v54 }
 0x3b0   :  { %v980_v57 = vpop.xlane.xlu0 %979 }
 0x3b2   :  { %v7875_v13 = vpop.eup %6832 }
 0x3b3   :  { %v1008_v56 = vsel %vm566_vm7, %v7875_v13, 0.0 }
 0x3b4   :  { %1009 = vadd.xlane.f32.xlu0 %v1008_v56  ;;  %v983_v59 = vpop.xlane.xlu1 %982 }
 0x3b5   :  { %v990_v23 = vsub.f32 %v7745_v35, %v983_v59  ;;  %v988_v59 = vsub.f32 %v7735_v11, %v977_v51 }
 0x3b6   :  { %v7880_v1 = vpop.eup %6834 }
 0x3b7   :  { %v1003_v60 = vmul.f32 1.442695, %v990_v23  ;;  %v1011_v25 = vsel %vm566_vm7, %v7880_v1, 0.0 }
 0x3b8   :  { %1012 = vadd.xlane.f32.xlu0 %v1011_v25  ;;  %v1390_v23 = vpop.xlane.xlu0 %1389  ;;  %v989_v25 = vsub.f32 %v7740_v26, %v980_v57 }
 0x3b9   :  { %6838 = vpow2.f32 %v1003_v60  ;;  %1900 = vrot.lane.b32.xlu1 %v7344_v2, %s7142_s0  ;;  %v991_v2 = vmul.f32 1.442695, %v984_v41  ;;  %v999_v60 = vmul.f32 1.442695, %v988_v59 }
 0x3ba   :  { %v7886_v39 = vpop.eup %6836  ;;  %v1001_v48 = vmul.f32 1.442695, %v989_v25 }
 0x3bb   :  { %v1014_v40 = vsel %vm566_vm7, %v7886_v39, 0.0 }
 0x3bc   :  { %1015 = vadd.xlane.f32.xlu0 %v1014_v40  ;;  %v1393_v36 = vpop.xlane.xlu1 %1392 }
 0x3bd   :  { %v1410_v35 = vsub.f32 %v7755_v58, %v1393_v36  ;;  %v1409_v36 = vsub.f32 %v7750_v45, %v1390_v23 }
 0x3bf   :  { %v1418_v32 = vmul.f32 1.442695, %v1410_v35  ;;  %v1416_v11 = vmul.f32 1.442695, %v1409_v36 }
 0x3c0   :  { %v1396_v40 = vpop.xlane.xlu0 %1395 }
 0x3c1   :  { %6840 = vpow2.f32 %v1418_v32  ;;  %v1411_v51 = vsub.f32 %v7760_v17, %v1396_v40 }
 0x3c2   :  { %6842 = vpow2.f32 %v991_v2 }
 0x3c3   :  { %6844 = vpow2.f32 %v999_v60  ;;  %v1420_v26 = vmul.f32 1.442695, %v1411_v51 }
 0x3c4   :  { %6846 = vpow2.f32 %v1001_v48  ;;  %v1399_v32 = vpop.xlane.xlu1 %1398 }
 0x3c5   :  { %6848 = vpow2.f32 %v1416_v11  ;;  %v1412_v57 = vsub.f32 %v7765_v30, %v1399_v32 }
 0x3c6   :  { %v7892_v54 = vpop.eup %6838  ;;  %6850 = vpow2.f32 %v1420_v26 }
 0x3c7   :  { %v1023_v56 = vsel %vm566_vm7, %v7892_v54, 0.0  ;;  %v1422_v59 = vmul.f32 1.442695, %v1412_v57 }
 0x3c8   :  { %1024 = vadd.xlane.f32.xlu0 %v1023_v56  ;;  %v1402_v35 = vpop.xlane.xlu0 %1401 }
 0x3c9   :  { %v1413_v60 = vsub.f32 %v7770_v42, %v1402_v35  ;;  %6852 = vpow2.f32 %v1422_v59 }
 0x3cb   :  { %v1424_v17 = vmul.f32 1.442695, %v1413_v60 }
 0x3cc   :  { %v1405_v25 = vpop.xlane.xlu1 %1404 }
 0x3cd   :  { %v1414_v40 = vsub.f32 %v7775_v55, %v1405_v25  ;;  %6854 = vpow2.f32 %v1424_v17 }
 0x3ce   :  { %v7898_v58 = vpop.eup %6840 }
 0x3cf   :  { %v1433_v33 = vsel %vm566_vm7, %v7898_v58, 0.0  ;;  %v7905_v56 = vpop.eup %6842  ;;  %v1426_v42 = vmul.f32 1.442695, %v1414_v40 }
 0x3d0   :  { %1434 = vadd.xlane.f32.xlu0 %v1433_v33  ;;  %v1408_v41 = vpop.xlane.xlu0 %1407  ;;  %v1005_v45 = vsel %vm566_vm7, %v7905_v56, 0.0  ;;  %v7910_v23 = vpop.eup %6844 }
 0x3d1   :  { %v1017_v30 = vsel %vm566_vm7, %v7910_v23, 0.0  ;;  %v7915_v33 = vpop.eup %6846  ;;  %6856 = vpow2.f32 %v1426_v42 }
 0x3d2   :  { %v1020_v11 = vsel %vm566_vm7, %v7915_v33, 0.0  ;;  %v7920_v51 = vpop.eup %6848 }
 0x3d3   :  { %v1430_v57 = vsel %vm566_vm7, %v7920_v51, 0.0  ;;  %v7927_v59 = vpop.eup %6850 }
 0x3d4   :  { %v1815_v48 = vpop.xlane.xlu1 %1814 }
 0x3d5   :  { %v1834_v35 = vsub.f32 %v7785_v34, %v1815_v48  ;;  %v1415_v34 = vsub.f32 %v7780_v19, %v1408_v41 }
 0x3d6   :  { %v7933_v25 = vpop.eup %6852 }
 0x3d7   :  { %v1841_v32 = vmul.f32 1.442695, %v1834_v35  ;;  %v1439_v19 = vsel %vm566_vm7, %v7933_v25, 0.0 }
 0x3d8   :  { %v1818_v2 = vpop.xlane.xlu0 %1817 }
 0x3d9   :  { %6858 = vpow2.f32 %v1841_v32  ;;  %v1835_v40 = vsub.f32 %v7790_v52, %v1818_v2 }
 0x3da   :  { %v7939_v41 = vpop.eup %6854 }
 0x3db   :  { %v1843_v42 = vmul.f32 1.442695, %v1835_v40  ;;  %v1442_v2 = vsel %vm566_vm7, %v7939_v41, 0.0 }
 0x3dc   :  { %v1821_v36 = vpop.xlane.xlu0 %1820 }
 0x3dd   :  { %1006 = vadd.xlane.f32.xlu1 %v1005_v45  ;;  %v1836_v26 = vsub.f32 %v7795_v8, %v1821_v36  ;;  %v1428_v8 = vmul.f32 1.442695, %v1415_v34 }
 0x3df   :  { %v1845_v60 = vmul.f32 1.442695, %v1836_v26 }
 0x3e0   :  { %v1824_v55 = vpop.xlane.xlu0 %1823 }
 0x3e1   :  { %1018 = vadd.xlane.f32.xlu1 %v1017_v30  ;;  %v1837_v45 = vsub.f32 %v7800_v37, %v1824_v55  ;;  %6860 = vpow2.f32 %v1845_v60 }
 0x3e2   :  { %6862 = vpow2.f32 %v1428_v8 }
 0x3e3   :  { %v1847_v30 = vmul.f32 1.442695, %v1837_v45 }
 0x3e4   :  { %v1827_v17 = vpop.xlane.xlu0 %1826 }
 0x3e5   :  { %1021 = vadd.xlane.f32.xlu1 %v1020_v11  ;;  %v1838_v48 = vsub.f32 %v7805_v61, %v1827_v17  ;;  %6864 = vpow2.f32 %v1847_v30  ;;  %v7945_v61 = vpop.eup %6856 }
 0x3e6   :  { %1894 = vrot.lane.b32.xlu0 %v7350_v3, %s7142_s0  ;;  %v1436_v3 = vsel %vm566_vm7, %v7927_v59, 0.0  ;;  %6866 = vpow2.f32 %v1843_v42  ;;  %v1445_v26 = vsel %vm566_vm7, %v7945_v61, 0.0 }
 0x3e7   :  { %v1849_v11 = vmul.f32 1.442695, %v1838_v48 }
 0x3e8   :  { %v1830_v36 = vpop.xlane.xlu1 %1829 }
 0x3e9   :  { %1431 = vadd.xlane.f32.xlu1 %v1430_v57  ;;  %v1839_v35 = vsub.f32 %v7810_v22, %v1830_v36  ;;  %6868 = vpow2.f32 %v1849_v11  ;;  %v7949_v57 = vpop.eup %6858 }
 0x3ea   :  { %v1855_v22 = vsel %vm566_vm7, %v7949_v57, 0.0 }
 0x3eb   :  { %v1851_v55 = vmul.f32 1.442695, %v1839_v35 }
 0x3ec   :  { %v1833_v37 = vpop.xlane.xlu0 %1832 }
 0x3ed   :  { %1437 = vadd.xlane.f32.xlu1 %v1436_v3  ;;  %v1840_v52 = vsub.f32 %v7815_v43, %v1833_v37  ;;  %6870 = vpow2.f32 %v1851_v55 }
 0x3ee   :  { %v7953_v43 = vpop.eup %6860 }
 0x3ef   :  { %v1853_v32 = vmul.f32 1.442695, %v1840_v52  ;;  %v7955_v34 = vpop.eup %6862  ;;  %v1861_v60 = vsel %vm566_vm7, %v7953_v43, 0.0 }
 0x3f0   :  { %v1448_v17 = vsel %vm566_vm7, %v7955_v34, 0.0 }
 0x3f1   :  { %1440 = vadd.xlane.f32.xlu1 %v1439_v19  ;;  %6872 = vpow2.f32 %v1853_v32  ;;  %v7985_v32 = vpop.permute.xlu0 %1898 }
 0x3f2   :  { %v7959_v45 = vpop.eup %6864 }
 0x3f3   :  { %v7961_v3 = vpop.eup %6866  ;;  %v1864_v8 = vsel %vm566_vm7, %v7959_v45, 0.0 }
 0x3f4   :  { %v1858_v48 = vsel %vm566_vm7, %v7961_v3, 0.0 }
 0x3f5   :  { %1443 = vadd.xlane.f32.xlu1 %v1442_v2 }
 0x3f6   :  { %v7967_v40 = vpop.eup %6868 }
 0x3f7   :  { %v1867_v36 = vsel %vm566_vm7, %v7967_v40, 0.0 }
 0x3f9   :  { %1446 = vadd.xlane.f32.xlu1 %v1445_v26 }
 0x3fa   :  { %v7969_v30 = vpop.eup %6870 }
 0x3fb   :  { %v1870_v42 = vsel %vm566_vm7, %v7969_v30, 0.0 }
 0x3fd   :  { %1856 = vadd.xlane.f32.xlu1 %v1855_v22 }
 0x3fe   :  { %v7975_v19 = vpop.eup %6872 }
 0x3ff   :  { %v1873_v37 = vsel %vm566_vm7, %v7975_v19, 0.0 }
 0x401   :  { %1862 = vadd.xlane.f32.xlu1 %v1861_v60 }
 0x405   :  { %1449 = vadd.xlane.f32.xlu0 %v1448_v17  ;;  %1865 = vadd.xlane.f32.xlu1 %v1864_v8  ;;  %v7994_v17 = vpop.permute.xlu0 %1896 }
 0x409   :  { %1859 = vadd.xlane.f32.xlu0 %v1858_v48  ;;  %1868 = vadd.xlane.f32.xlu1 %v1867_v36 }
 0x40d   :  { %1874 = vadd.xlane.f32.xlu0 %v1873_v37  ;;  %1871 = vadd.xlane.f32.xlu1 %v1870_v42 }
 0x41d   :  { %v611_v35 = vpop.xlane.xlu1 %610 }
 0x41e   :  { %6874 = vrcp.f32 %v611_v35  ;;  %1892 = vrot.lane.b32.xlu1 %v7336_v62, %s7142_s0  ;;  %v9761_v62 = vmov 0.0  }
 0x421   :  { %v614_v11 = vpop.xlane.xlu1 %613 }
 0x422   :  { %6876 = vrcp.f32 %v614_v11 }
 0x423   :  { %1890 = vrot.lane.b32.xlu0 %v7356_v4, %s7142_s0 }
 0x425   :  { %v617_v52 = vpop.xlane.xlu1 %616 }
 0x426   :  { %6878 = vrcp.f32 %v617_v52 }
 0x429   :  { %v620_v2 = vpop.xlane.xlu1 %619 }
 0x42a   :  { %6880 = vrcp.f32 %v620_v2 }
 0x42b   :  { %v6875_v55 = vpop.eup %6874 }
 0x42c   :  { %v631_v26 = vmul.f32 %v6875_v55, %v7842_v53 }
 0x42d   :  { %v623_v22 = vpop.xlane.xlu1 %622 }
 0x42e   :  { %6882 = vrcp.f32 %v623_v22  ;;  %6042 = vmatmul.mubr.msk.f32.vlgmr.msra.gmra.mxu1 %vm566_vm7, %v631_v26 }
 0x42f   :  { %v6877_v60 = vpop.eup %6876  ;;  %6098 = vmatpush3.msra.mxu1 %v7823_v5  ;;  %6044 = vmatprep.mubr.msk.f32.mxu1 %vm7131_vm0, %v9761_v62 }
 0x430   :  { %6099 = vmatprep.subr.mxu1 %v9761_v62  ;;  %v633_v4 = vmul.f32 %v6877_v60, %v7847_v46 }
 0x431   :  { %6100 = vmatpush3.msra.mxu1 %v7819_v0  ;;  %v626_v8 = vpop.xlane.xlu1 %625 }
 0x432   :  { %6101 = vmatprep.subr.mxu1 %v9761_v62  ;;  %6884 = vrcp.f32 %v626_v8  ;;  %6045 = vmatmul.mubr.msk.f32.gmra.mxu1 %vm566_vm7, %v633_v4 }
 0x433   :  { %v6879_v53 = vpop.eup %6878  ;;  %6102 = vmatpush3.msra.mxu1 %v7606_v6  ;;  %6047 = vmatprep.mubr.msk.f32.mxu1 %vm7131_vm0, %v9761_v62 }
 0x434   :  { %6103 = vmatprep.subr.mxu1 %v9761_v62  ;;  %v635_v5 = vmul.f32 %v6879_v53, %v7852_v49 }
 0x435   :  { %6104 = vmatpush3.msra.mxu1 %v7613_v7  ;;  %v629_v46 = vpop.xlane.xlu0 %628 }
 0x436   :  { %6886 = vrcp.f32 %v629_v46  ;;  %6105 = vmatprep.subr.mxu1 %v9761_v62  ;;  %6048 = vmatmul.mubr.msk.f32.gmra.mxu1 %vm566_vm7, %v635_v5 }
 0x437   :  { %v6881_v0 = vpop.eup %6880  ;;  %6106 = vmatpush3.msra.mxu1 %v7618_v9  ;;  %6050 = vmatprep.mubr.msk.f32.mxu1 %vm7131_vm0, %v9761_v62 }
 0x438   :  { %6107 = vmatprep.subr.mxu1 %v9761_v62  ;;  %v637_v6 = vmul.f32 %v6881_v0, %v7856_v63  ;;  %v7100_v0 = vld [vmem:[%s9721_s2 + $0x10] sm:$0xff] }
 0x439   :  { %6108 = vmatpush3.msra.mxu1 %v7821_v21 }
 0x43a   :  { %6109 = vmatprep.subr.mxu1 %v9761_v62  ;;  %6051 = vmatmul.mubr.msk.f32.gmra.mxu1 %vm566_vm7, %v637_v6  ;;  %v7101_v6 = vld [vmem:[%s9721_s2] sm:$0xff] }
 0x43b   :  { %v6883_v7 = vpop.eup %6882  ;;  %6110 = vmatpush3.msra.mxu1 %v7623_v10  ;;  %6053 = vmatprep.mubr.msk.f32.mxu1 %vm7131_vm0, %v9761_v62 }
 0x43c   :  { %v639_v9 = vmul.f32 %v6883_v7, %v7861_v44  ;;  %6167 = vmatprep.subr.mxu1 %v9761_v62  ;;  %v8031_v44 = vpop.permute.xlu1 %1900 }
 0x43d   :  { %v1010_v48 = vpop.xlane.xlu0 %1009 }
 0x43e   :  { %6054 = vmatmul.mubr.msk.f32.gmra.mxu1 %vm566_vm7, %v639_v9 }
 0x43f   :  { %v6885_v49 = vpop.eup %6884  ;;  %6056 = vmatprep.mubr.msk.f32.mxu1 %vm7131_vm0, %v9761_v62 }
 0x440   :  { %v641_v21 = vmul.f32 %v6885_v49, %v7866_v29 }
 0x441   :  { %v1013_v37 = vpop.xlane.xlu0 %1012 }
 0x442   :  { %6057 = vmatmul.mubr.msk.f32.gmra.mxu1 %vm566_vm7, %v641_v21 }
 0x443   :  { %v6887_v63 = vpop.eup %6886  ;;  %6059 = vmatprep.mubr.msk.f32.mxu1 %vm7131_vm0, %v9761_v62 }
 0x444   :  { %v643_v10 = vmul.f32 %v6887_v63, %v7871_v28 }
 0x445   :  { %v1016_v42 = vpop.xlane.xlu0 %1015 }
 0x446   :  { %6060 = vmatmul.mubr.msk.f32.gmra.mxu1 %vm566_vm7, %v643_v10 }
 0x447   :  { %6111 = vmatprep.mubr.msk.f32.mxu1 %vm7131_vm0, %v9761_v62 }
 0x451   :  { %v1025_v60 = vpop.xlane.xlu0 %1024 }
 0x466   :  { %v1007_v36 = vpop.xlane.xlu1 %1006 }
 0x467   :  { %6888 = vrcp.f32 %v1007_v36 }
 0x468   :  { %6890 = vrcp.f32 %v1010_v48 }
 0x469   :  { %6892 = vrcp.f32 %v1013_v37 }
 0x46a   :  { %v1019_v29 = vpop.xlane.xlu1 %1018  ;;  %6894 = vrcp.f32 %v1016_v42 }
 0x46b   :  { %6896 = vrcp.f32 %v1019_v29 }
 0x46e   :  { %v1022_v35 = vpop.xlane.xlu1 %1021 }
 0x46f   :  { %6898 = vrcp.f32 %v1022_v35 }
 0x470   :  { %6900 = vrcp.f32 %v1025_v60 }
 0x472   :  { %v1432_v11 = vpop.xlane.xlu1 %1431 }
 0x473   :  { %6902 = vrcp.f32 %v1432_v11 }
 0x474   :  { %v6889_v52 = vpop.eup %6888 }
 0x475   :  { %v1027_v28 = vmul.f32 %v6889_v52, %v7905_v56  ;;  %v6891_v2 = vpop.eup %6890 }
 0x476   :  { %v1438_v55 = vpop.xlane.xlu1 %1437  ;;  %v1029_v26 = vmul.f32 %v6891_v2, %v7875_v13  ;;  %v6893_v22 = vpop.eup %6892 }
 0x477   :  { %6112 = vmatmul.mubr.msk.f32.vlgmr.msra.gmra.mxu1 %vm566_vm7, %v1027_v28  ;;  %v6895_v13 = vpop.eup %6894 }
 0x478   :  { %6168 = vmatpush3.msra.mxu1 %v7829_v27  ;;  %6114 = vmatprep.mubr.msk.f32.mxu1 %vm7131_vm0, %v9761_v62  ;;  %v1031_v27 = vmul.f32 %v6893_v22, %v7880_v1  ;;  %v1435_v1 = vpop.xlane.xlu0 %1434 }
 0x479   :  { %6169 = vmatprep.subr.mxu1 %v9761_v62  ;;  %6904 = vrcp.f32 %v1435_v1 }
 0x47a   :  { %6170 = vmatpush3.msra.mxu1 %v7825_v31  ;;  %v1441_v56 = vpop.xlane.xlu1 %1440  ;;  %v6897_v31 = vpop.eup %6896  ;;  %6906 = vrcp.f32 %v1438_v55 }
 0x47b   :  { %6171 = vmatprep.subr.mxu1 %v9761_v62  ;;  %6115 = vmatmul.mubr.msk.f32.gmra.mxu1 %vm566_vm7, %v1029_v26  ;;  %6908 = vrcp.f32 %v1441_v56 }
 0x47c   :  { %6172 = vmatpush3.msra.mxu1 %v7628_v12  ;;  %6117 = vmatprep.mubr.msk.f32.mxu1 %vm7131_vm0, %v9761_v62  ;;  %v1033_v12 = vmul.f32 %v6895_v13, %v7886_v39  ;;  %v6899_v39 = vpop.eup %6898  ;;  %v1895_v5 = vpop.permute.xlu0 %1894 }
 0x47d   :  { %6173 = vmatprep.subr.mxu1 %v9761_v62  ;;  %v6901_v53 = vpop.eup %6900 }
 0x47e   :  { %6174 = vmatpush3.msra.mxu1 %v7633_v14  ;;  %v1444_v4 = vpop.xlane.xlu1 %1443 }
 0x47f   :  { %6175 = vmatprep.subr.mxu1 %v9761_v62  ;;  %6118 = vmatmul.mubr.msk.f32.gmra.mxu1 %vm566_vm7, %v1031_v27  ;;  %6910 = vrcp.f32 %v1444_v4 }
 0x480   :  { %6176 = vmatpush3.msra.mxu1 %v7638_v15  ;;  %6120 = vmatprep.mubr.msk.f32.mxu1 %vm7131_vm0, %v9761_v62  ;;  %v1035_v15 = vmul.f32 %v6897_v31, %v7910_v23  ;;  %v7099_v23 = vld [vmem:[%s9721_s2 + $0x30] sm:$0xff]  ;;  %v6903_v7 = vpop.eup %6902 }
 0x481   :  { %6177 = vmatprep.subr.mxu1 %v9761_v62  ;;  %2089 = vrot.lane.b32.xlu0 %v7099_v23, %s7144_s25 }
 0x482   :  { %6178 = vmatpush3.msra.mxu1 %v7831_v50  ;;  %v1447_v14 = vpop.xlane.xlu1 %1446  ;;  %v1037_v50 = vmul.f32 %v6899_v39, %v7915_v33  ;;  %v1039_v33 = vmul.f32 %v6901_v53, %v7892_v54  ;;  %v1452_v54 = vmul.f32 %v6903_v7, %v7920_v51 }
 0x483   :  { %6179 = vmatprep.subr.mxu1 %v9761_v62  ;;  %6121 = vmatmul.mubr.msk.f32.gmra.mxu1 %vm566_vm7, %v1033_v12  ;;  %6912 = vrcp.f32 %v1447_v14 }
 0x484   :  { %6180 = vmatpush3.msra.mxu1 %v7643_v18  ;;  %6123 = vmatprep.mubr.msk.f32.mxu1 %vm7131_vm0, %v9761_v62  ;;  %v7098_v18 = vld [vmem:[%s9721_s2 + $0x20] sm:$0xff] }
 0x485   :  { %6237 = vmatprep.subr.mxu1 %v9761_v62  ;;  %2087 = vrot.lane.b32.xlu1 %v7098_v18, %s7144_s25 }
 0x486   :  { %v1857_v8 = vpop.xlane.xlu1 %1856  ;;  %2083 = vrot.lane.b32.xlu0 %v7101_v6, %s7144_s25  ;;  %v6905_v21 = vpop.eup %6904 }
 0x487   :  { %6124 = vmatmul.mubr.msk.f32.gmra.mxu1 %vm566_vm7, %v1035_v15  ;;  %v1454_v48 = vmul.f32 %v6905_v21, %v7898_v58  ;;  %v6907_v36 = vpop.eup %6906 }
 0x488   :  { %6126 = vmatprep.mubr.msk.f32.mxu1 %vm7131_vm0, %v9761_v62  ;;  %v1456_v37 = vmul.f32 %v6907_v36, %v7927_v59  ;;  %v6909_v58 = vpop.eup %6908 }
 0x489   :  { %2085 = vrot.lane.b32.xlu1 %v7100_v0, %s7144_s25 }
 0x48a   :  { %v1863_v46 = vpop.xlane.xlu1 %1862 }
 0x48b   :  { %6127 = vmatmul.mubr.msk.f32.gmra.mxu1 %vm566_vm7, %v1037_v50 }
 0x48c   :  { %6129 = vmatprep.mubr.msk.f32.mxu1 %vm7131_vm0, %v9761_v62  ;;  %v6911_v29 = vpop.eup %6910 }
 0x48e   :  { %v1450_v9 = vpop.xlane.xlu0 %1449  ;;  %v1866_v49 = vpop.xlane.xlu1 %1865 }
 0x48f   :  { %6130 = vmatmul.mubr.msk.f32.gmra.mxu1 %vm566_vm7, %v1039_v33  ;;  %6914 = vrcp.f32 %v1450_v9 }
 0x490   :  { %6181 = vmatprep.mubr.msk.f32.mxu1 %vm7131_vm0, %v9761_v62  ;;  %6916 = vrcp.f32 %v1857_v8  ;;  %v6913_v42 = vpop.eup %6912 }
 0x492   :  { %v1869_v63 = vpop.xlane.xlu1 %1868  ;;  %v1860_v10 = vpop.xlane.xlu0 %1859 }
 0x493   :  { %6182 = vmatmul.mubr.msk.f32.vlgmr.msra.gmra.mxu1 %vm566_vm7, %v1452_v54  ;;  %6918 = vrcp.f32 %v1860_v10 }
 0x494   :  { %6238 = vmatpush3.msra.mxu1 %v7835_v38  ;;  %6184 = vmatprep.mubr.msk.f32.mxu1 %vm7131_vm0, %v9761_v62  ;;  %6920 = vrcp.f32 %v1863_v46 }
 0x495   :  { %6239 = vmatprep.subr.mxu1 %v9761_v62  ;;  %6922 = vrcp.f32 %v1866_v49 }
 0x496   :  { %6240 = vmatpush3.msra.mxu1 %v8031_v44  ;;  %v1872_v51 = vpop.xlane.xlu1 %1871  ;;  %v1875_v38 = vpop.xlane.xlu0 %1874  ;;  %v1458_v44 = vmul.f32 %v6909_v58, %v7933_v25  ;;  %v1462_v25 = vmul.f32 %v6913_v42, %v7945_v61  ;;  %6924 = vrcp.f32 %v1869_v63 }
 0x497   :  { %6241 = vmatprep.subr.mxu1 %v9761_v62  ;;  %6185 = vmatmul.mubr.msk.f32.gmra.mxu1 %vm566_vm7, %v1454_v48  ;;  %6926 = vrcp.f32 %v1872_v51 }
 0x498   :  { %6242 = vmatpush3.msra.mxu1 %v7985_v32  ;;  %6187 = vmatprep.mubr.msk.f32.mxu1 %vm7131_vm0, %v9761_v62  ;;  %6928 = vrcp.f32 %v1875_v38 }
 0x499   :  { %6243 = vmatprep.subr.mxu1 %v9761_v62 }
 0x49a   :  { %6244 = vmatpush3.msra.mxu1 %v7994_v17  ;;  %v1893_v32 = vpop.permute.xlu1 %1892  ;;  %v1891_v59 = vpop.permute.xlu0 %1890  ;;  %v1460_v17 = vmul.f32 %v6911_v29, %v7939_v41 }
 0x49b   :  { %6245 = vmatprep.subr.mxu1 %v9761_v62  ;;  %6188 = vmatmul.mubr.msk.f32.gmra.mxu1 %vm566_vm7, %v1456_v37 }
 0x49c   :  { %6246 = vmatpush3.msra.mxu1 %v1895_v5  ;;  %6190 = vmatprep.mubr.msk.f32.mxu1 %vm7131_vm0, %v9761_v62  ;;  %v6915_v35 = vpop.eup %6914 }
 0x49d   :  { %6247 = vmatprep.subr.mxu1 %v9761_v62  ;;  %v1464_v41 = vmul.f32 %v6915_v35, %v7955_v34  ;;  %v6917_v11 = vpop.eup %6916 }
 0x49e   :  { %6248 = vmatpush3.msra.mxu1 %v1893_v32  ;;  %v1877_v52 = vmul.f32 %v6917_v11, %v7949_v57 }
 0x49f   :  { %6249 = vmatprep.subr.mxu1 %v9761_v62  ;;  %6191 = vmatmul.mubr.msk.f32.gmra.mxu1 %vm566_vm7, %v1458_v44 }
 0x4a0   :  { %6250 = vmatpush3.msra.mxu1 %v1891_v59  ;;  %6193 = vmatprep.mubr.msk.f32.mxu1 %vm7131_vm0, %v9761_v62  ;;  %v6919_v28 = vpop.eup %6918 }
 0x4a1   :  { %6301 = vmatprep.subr.mxu1 %v9761_v62  ;;  %v1879_v61 = vmul.f32 %v6919_v28, %v7961_v3  ;;  %v6921_v2 = vpop.eup %6920 }
 0x4a2   :  { %v1881_v34 = vmul.f32 %v6921_v2, %v7953_v43  ;;  %v6923_v57 = vpop.eup %6922 }
 0x4a3   :  { %6194 = vmatmul.mubr.msk.f32.gmra.mxu1 %vm566_vm7, %v1460_v17  ;;  %v1883_v55 = vmul.f32 %v6923_v57, %v7959_v45  ;;  %v6925_v26 = vpop.eup %6924 }
 0x4a4   :  { %6196 = vmatprep.mubr.msk.f32.mxu1 %vm7131_vm0, %v9761_v62  ;;  %v1885_v3 = vmul.f32 %v6925_v26, %v7967_v40  ;;  %v6927_v22 = vpop.eup %6926 }
 0x4a5   :  { %v1887_v43 = vmul.f32 %v6927_v22, %v7969_v30  ;;  %v6929_v60 = vpop.eup %6928 }
 0x4a6   :  { %v1889_v45 = vmul.f32 %v6929_v60, %v7975_v19 }
 0x4a7   :  { %6197 = vmatmul.mubr.msk.f32.gmra.mxu1 %vm566_vm7, %v1462_v25 }
 0x4a8   :  { %6199 = vmatprep.mubr.msk.f32.mxu1 %vm7131_vm0, %v9761_v62 }
 0x4ab   :  { %6200 = vmatmul.mubr.msk.f32.gmra.mxu1 %vm566_vm7, %v1464_v41 }
 0x4ac   :  { %6251 = vmatprep.mubr.msk.f32.mxu1 %vm7131_vm0, %v9761_v62 }
 0x4af   :  { %6252 = vmatmul.mubr.msk.f32.vlgmr.msra.gmra.mxu1 %vm566_vm7, %v1877_v52 }
 0x4b0   :  { %6254 = vmatprep.mubr.msk.f32.mxu1 %vm7131_vm0, %v9761_v62 }
 0x4b3   :  { %6255 = vmatmul.mubr.msk.f32.gmra.mxu1 %vm566_vm7, %v1879_v61 }
 0x4b4   :  { %6257 = vmatprep.mubr.msk.f32.mxu1 %vm7131_vm0, %v9761_v62 }
 0x4b7   :  { %6258 = vmatmul.mubr.msk.f32.gmra.mxu1 %vm566_vm7, %v1881_v34 }
 0x4b8   :  { %6260 = vmatprep.mubr.msk.f32.mxu1 %vm7131_vm0, %v9761_v62 }
 0x4bb   :  { %6261 = vmatmul.mubr.msk.f32.gmra.mxu1 %vm566_vm7, %v1883_v55 }
 0x4bc   :  { %6263 = vmatprep.mubr.msk.f32.mxu1 %vm7131_vm0, %v9761_v62 }
 0x4bf   :  { %6264 = vmatmul.mubr.msk.f32.gmra.mxu1 %vm566_vm7, %v1885_v3 }
 0x4c0   :  { %6266 = vmatprep.mubr.msk.f32.mxu1 %vm7131_vm0, %v9761_v62 }
 0x4c3   :  { %6267 = vmatmul.mubr.msk.f32.gmra.mxu1 %vm566_vm7, %v1887_v43 }
 0x4c4   :  { %6269 = vmatprep.mubr.msk.f32.mxu1 %vm7131_vm0, %v9761_v62 }
 0x4c7   :  { %6270 = vmatmul.mubr.msk.f32.gmra.mxu1 %vm566_vm7, %v1889_v45 }
 0x4c8   :  { %6309 = vmatprep.mubr.msk.f32.mxu1 %vm7131_vm0, %v9761_v62 }
 0x4ee   :  { %v752_v40 = vpop.f32.mrf.mxu1 }
 0x4ef   :  { %786 = vst.msk [vmem:[#allocation2] sm:$0xff] %vm423_vm3, %v752_v40 }
 0x4f0   :  { %v6043_v56 = vpop.f32.mrf.mxu1 }
 0x4f2   :  { %v757_v27 = vpop.f32.mrf.mxu1 }
 0x4f3   :  { %787 = vst.msk [vmem:[#allocation2 + $0x8] sm:$0xff] %vm423_vm3, %v757_v27  ;;  %v2090_v18 = vpop.permute.xlu0 %2089 }
 0x4f4   :  { %v6046_v30 = vpop.f32.mrf.mxu1  ;;  %6273 = vmatpush3.msra.mxu0 %v2090_v18 }
 0x4f5   :  { %6274 = vmatprep.subr.mxu0 %v9761_v62 }
 0x4f6   :  { %v762_v13 = vpop.f32.mrf.mxu1 }
 0x4f7   :  { %788 = vst.msk [vmem:[#allocation2 + $0x10] sm:$0xff] %vm423_vm3, %v762_v13  ;;  %v2088_v50 = vpop.permute.xlu1 %2087 }
 0x4f8   :  { %v6049_v4 = vpop.f32.mrf.mxu1  ;;  %6275 = vmatpush3.msra.mxu0 %v2088_v50  ;;  %v2084_v53 = vpop.permute.xlu0 %2083 }
 0x4f9   :  { %6276 = vmatprep.subr.mxu0 %v9761_v62 }
 0x4fa   :  { %v767_v12 = vpop.f32.mrf.mxu1 }
 0x4fb   :  { %789 = vst.msk [vmem:[#allocation2 + $0x18] sm:$0xff] %vm423_vm3, %v767_v12  ;;  %v2086_v23 = vpop.permute.xlu1 %2085 }
 0x4fc   :  { %v6052_v19 = vpop.f32.mrf.mxu1  ;;  %6277 = vmatpush3.msra.mxu0 %v2086_v23 }
 0x4fd   :  { %6278 = vmatprep.subr.mxu0 %v9761_v62 }
 0x4fe   :  { %v772_v31 = vpop.f32.mrf.mxu1  ;;  %6279 = vmatpush3.msra.mxu0 %v2084_v53 }
 0x4ff   :  { %790 = vst.msk [vmem:[#allocation2 + $0x20] sm:$0xff] %vm423_vm3, %v772_v31  ;;  %6330 = vmatprep.subr.mxu0 %v9761_v62 }
 0x500   :  { %v6055_v1 = vpop.f32.mrf.mxu1 }
 0x502   :  { %v777_v14 = vpop.f32.mrf.mxu1 }
 0x503   :  { %791 = vst.msk [vmem:[#allocation2 + $0x28] sm:$0xff] %vm423_vm3, %v777_v14 }
 0x504   :  { %v6058_v15 = vpop.f32.mrf.mxu1 }
 0x506   :  { %v782_v39 = vpop.f32.mrf.mxu1 }
 0x507   :  { %792 = vst.msk [vmem:[#allocation2 + $0x30] sm:$0xff] %vm423_vm3, %v782_v39 }
 0x508   :  { %v6061_v8 = vpop.f32.mrf.mxu1 }
 0x537   :  { %v1148_v5 = vpop.f32.mrf.mxu1 }
 0x538   :  { %1189 = vrot.lane.b32.xlu1 %v1148_v5, %s7145_s8 }
 0x539   :  { %v6113_v46 = vpop.f32.mrf.mxu1 }
 0x53b   :  { %v1153_v33 = vpop.f32.mrf.mxu1 }
 0x53c   :  { %1191 = vrot.lane.b32.xlu1 %v1153_v33, %s7145_s8 }
 0x53d   :  { %v6116_v0 = vpop.f32.mrf.mxu1 }
 0x53f   :  { %v1158_v6 = vpop.f32.mrf.mxu1 }
 0x540   :  { %1193 = vrot.lane.b32.xlu0 %v1158_v6, %s7145_s8 }
 0x541   :  { %v6119_v7 = vpop.f32.mrf.mxu1 }
 0x543   :  { %v1163_v9 = vpop.f32.mrf.mxu1 }
 0x544   :  { %1195 = vrot.lane.b32.xlu0 %v1163_v9, %s7145_s8 }
 0x545   :  { %v6122_v49 = vpop.f32.mrf.mxu1 }
 0x547   :  { %v1168_v54 = vpop.f32.mrf.mxu1 }
 0x549   :  { %v6125_v21 = vpop.f32.mrf.mxu1 }
 0x54b   :  { %v1173_v63 = vpop.f32.mrf.mxu1 }
 0x54d   :  { %v6128_v10 = vpop.f32.mrf.mxu1 }
 0x54e   :  { %v9747_v10 = vsub.s32 1, %v7320_v47 }
 0x54f   :  { %v1178_v48 = vpop.f32.mrf.mxu1 }
 0x551   :  { %v6131_v36 = vpop.f32.mrf.mxu1 }
 0x553   :  { %v1573_v51 = vpop.f32.mrf.mxu1 }
 0x554   :  { %1614 = vrot.lane.b32.xlu1 %v1573_v51, %s7146_s9 }
 0x555   :  { %v6183_v38 = vpop.f32.mrf.mxu1 }
 0x557   :  { %v1578_v37 = vpop.f32.mrf.mxu1 }
 0x558   :  { %1616 = vrot.lane.b32.xlu0 %v1578_v37, %s7146_s9 }
 0x559   :  { %v6186_v58 = vpop.f32.mrf.mxu1 }
 0x55b   :  { %v1583_v32 = vpop.f32.mrf.mxu1 }
 0x55c   :  { %1618 = vrot.lane.b32.xlu1 %v1583_v32, %s7146_s9 }
 0x55d   :  { %v6189_v44 = vpop.f32.mrf.mxu1 }
 0x55f   :  { %v1588_v29 = vpop.f32.mrf.mxu1 }
 0x560   :  { %1620 = vrot.lane.b32.xlu1 %v1588_v29, %s7146_s9 }
 0x561   :  { %v6192_v59 = vpop.f32.mrf.mxu1 }
 0x563   :  { %v1593_v17 = vpop.f32.mrf.mxu1 }
 0x565   :  { %v6195_v42 = vpop.f32.mrf.mxu1 }
 0x567   :  { %v1598_v25 = vpop.f32.mrf.mxu1 }
 0x569   :  { %v6198_v35 = vpop.f32.mrf.mxu1 }
 0x56b   :  { %v1603_v41 = vpop.f32.mrf.mxu1 }
 0x56d   :  { %v6201_v11 = vpop.f32.mrf.mxu1 }
 0x56f   :  { %v1998_v52 = vpop.f32.mrf.mxu1 }
 0x570   :  { %2039 = vrot.lane.b32.xlu1 %v1998_v52, %s7147_s10 }
 0x571   :  { %v6253_v28 = vpop.f32.mrf.mxu1 }
 0x573   :  { %v2003_v61 = vpop.f32.mrf.mxu1 }
 0x574   :  { %1197 = vrot.lane.b32.xlu1 %v1168_v54, %s7145_s8  ;;  %2041 = vrot.lane.b32.xlu0 %v2003_v61, %s7147_s10 }
 0x575   :  { %v6256_v2 = vpop.f32.mrf.mxu1 }
 0x576   :  { %v9762_v2 = vld [vmem:[#allocation6_spill] sm:$0xff] }
 0x577   :  { %v2008_v34 = vpop.f32.mrf.mxu1 }
 0x578   :  { %1622 = vrot.lane.b32.xlu0 %v1593_v17, %s7146_s9  ;;  %2043 = vrot.lane.b32.xlu1 %v2008_v34, %s7147_s10 }
 0x579   :  { %v6259_v57 = vpop.f32.mrf.mxu1 }
 0x57b   :  { %v2013_v55 = vpop.f32.mrf.mxu1 }
 0x57c   :  { %1624 = vrot.lane.b32.xlu1 %v1598_v25, %s7146_s9  ;;  %2045 = vrot.lane.b32.xlu0 %v2013_v55, %s7147_s10 }
 0x57d   :  { %v6262_v26 = vpop.f32.mrf.mxu1 }
 0x57f   :  { %v2018_v3 = vpop.f32.mrf.mxu1 }
 0x580   :  { %1199 = vrot.lane.b32.xlu0 %v1173_v63, %s7145_s8  ;;  %2047 = vrot.lane.b32.xlu1 %v2018_v3, %s7147_s10  ;;  %v9763_v3 = vld [vmem:[#allocation7_spill] sm:$0xff] }
 0x581   :  { %v6265_v22 = vpop.f32.mrf.mxu1 }
 0x583   :  { %v2023_v43 = vpop.f32.mrf.mxu1 }
 0x584   :  { %1201 = vrot.lane.b32.xlu1 %v1178_v48, %s7145_s8  ;;  %2049 = vrot.lane.b32.xlu0 %v2023_v43, %s7147_s10  ;;  %v8236_v48 = vld [vmem:[%s9723_s4] sm:$0xff] }
 0x585   :  { %v6268_v60 = vpop.f32.mrf.mxu1  ;;  %v2078_v36 = vrot.slane %v8236_v48, %v9747_v10 }
 0x587   :  { %v2028_v45 = vpop.f32.mrf.mxu1 }
 0x588   :  { %1626 = vrot.lane.b32.xlu0 %v1603_v41, %s7146_s9  ;;  %2051 = vrot.lane.b32.xlu1 %v2028_v45, %s7147_s10 }
 0x589   :  { %v6271_v40 = vpop.f32.mrf.mxu1 }
 0x58a   :  { %v9764_v40 = vld [vmem:[#allocation8_spill] sm:$0xff] }
 0x5aa   :  { %v1190_v56 = vpop.permute.xlu1 %1189 }
 0x5ab   :  { %1211 = vst.msk [vmem:[#allocation2] sm:$0xff] %vm1210_vm15, %v1190_v56 }
 0x5ae   :  { %v1192_v27 = vpop.permute.xlu1 %1191 }
 0x5af   :  { %1212 = vst.msk [vmem:[#allocation2 + $0x8] sm:$0xff] %vm1210_vm15, %v1192_v27 }
 0x5b2   :  { %v1194_v30 = vpop.permute.xlu0 %1193 }
 0x5b3   :  { %1213 = vst.msk [vmem:[#allocation2 + $0x10] sm:$0xff] %vm1210_vm15, %v1194_v30 }
 0x5b6   :  { %v1196_v13 = vpop.permute.xlu0 %1195 }
 0x5b7   :  { %1214 = vst.msk [vmem:[#allocation2 + $0x18] sm:$0xff] %vm1210_vm15, %v1196_v13 }
 0x5c6   :  { %v1615_v4 = vpop.permute.xlu1 %1614 }
 0x5c7   :  { %1636 = vst.msk [vmem:[#allocation2] sm:$0xff] %vm1635_vm1, %v1615_v4 }
 0x5ca   :  { %v1617_v12 = vpop.permute.xlu0 %1616 }
 0x5cb   :  { %1637 = vst.msk [vmem:[#allocation2 + $0x8] sm:$0xff] %vm1635_vm1, %v1617_v12  ;;  %v9765_v12 = vld [vmem:[#allocation9_spill] sm:$0xff] }
 0x5ce   :  { %v1619_v19 = vpop.permute.xlu1 %1618 }
 0x5cf   :  { %1638 = vst.msk [vmem:[#allocation2 + $0x10] sm:$0xff] %vm1635_vm1, %v1619_v19 }
 0x5d2   :  { %v1621_v31 = vpop.permute.xlu1 %1620 }
 0x5d3   :  { %1639 = vst.msk [vmem:[#allocation2 + $0x18] sm:$0xff] %vm1635_vm1, %v1621_v31 }
 0x5e2   :  { %v2040_v1 = vpop.permute.xlu1 %2039 }
 0x5e3   :  { %2061 = vst.msk [vmem:[#allocation2] sm:$0xff] %vm2060_vm4, %v2040_v1 }
 0x5e6   :  { %v2042_v14 = vpop.permute.xlu0 %2041  ;;  %v1198_v15 = vpop.permute.xlu1 %1197 }
 0x5e7   :  { %2062 = vst.msk [vmem:[#allocation2 + $0x8] sm:$0xff] %vm2060_vm4, %v2042_v14 }
 0x5e8   :  { %1215 = vst.msk [vmem:[#allocation2 + $0x20] sm:$0xff] %vm1210_vm15, %v1198_v15 }
 0x5ea   :  { %v1623_v39 = vpop.permute.xlu0 %1622  ;;  %v2044_v8 = vpop.permute.xlu1 %2043  ;;  %v2068_v50 = vld [vmem:[#allocation2] sm:$0xff] }
 0x5eb   :  { %1640 = vst.msk [vmem:[#allocation2 + $0x20] sm:$0xff] %vm1635_vm1, %v1623_v39  ;;  %6281 = vmatmul.mubr.msk.f32.vlgmr.msra.gmra.mxu0 %vm280_vm2, %v2068_v50 }
 0x5ec   :  { %2063 = vst.msk [vmem:[#allocation2 + $0x10] sm:$0xff] %vm2060_vm4, %v2044_v8  ;;  %6283 = vmatprep.mubr.msk.f32.mxu0 %vm7131_vm0, %v9761_v62 }
 0x5ee   :  { %v2046_v18 = vpop.permute.xlu0 %2045  ;;  %v1625_v23 = vpop.permute.xlu1 %1624  ;;  %v2069_v53 = vld [vmem:[#allocation2 + $0x8] sm:$0xff] }
 0x5ef   :  { %2064 = vst.msk [vmem:[#allocation2 + $0x18] sm:$0xff] %vm2060_vm4, %v2046_v18  ;;  %6284 = vmatmul.mubr.msk.f32.gmra.mxu0 %vm280_vm2, %v2069_v53 }
 0x5f0   :  { %6286 = vmatprep.mubr.msk.f32.mxu0 %vm7131_vm0, %v9761_v62 }
 0x5f2   :  { %v1200_v5 = vpop.permute.xlu0 %1199  ;;  %v2048_v46 = vpop.permute.xlu1 %2047 }
 0x5f3   :  { %v2070_v33 = vld [vmem:[#allocation2 + $0x10] sm:$0xff]  ;;  %1216 = vst.msk [vmem:[#allocation2 + $0x28] sm:$0xff] %vm1210_vm15, %v1200_v5 }
 0x5f4   :  { %2065 = vst.msk [vmem:[#allocation2 + $0x20] sm:$0xff] %vm2060_vm4, %v2048_v46  ;;  %6287 = vmatmul.mubr.msk.f32.gmra.mxu0 %vm280_vm2, %v2070_v33 }
 0x5f5   :  { %1641 = vst.msk [vmem:[#allocation2 + $0x28] sm:$0xff] %vm1635_vm1, %v1625_v23  ;;  %6289 = vmatprep.mubr.msk.f32.mxu0 %vm7131_vm0, %v9761_v62 }
 0x5f6   :  { %v2050_v0 = vpop.permute.xlu0 %2049  ;;  %v1202_v6 = vpop.permute.xlu1 %1201  ;;  %v2071_v7 = vld [vmem:[#allocation2 + $0x18] sm:$0xff] }
 0x5f7   :  { %2066 = vst.msk [vmem:[#allocation2 + $0x28] sm:$0xff] %vm2060_vm4, %v2050_v0 }
 0x5f8   :  { %1217 = vst.msk [vmem:[#allocation2 + $0x30] sm:$0xff] %vm1210_vm15, %v1202_v6  ;;  %6290 = vmatmul.mubr.msk.f32.gmra.mxu0 %vm280_vm2, %v2071_v7 }
 0x5f9   :  { %6292 = vmatprep.mubr.msk.f32.mxu0 %vm7131_vm0, %v9761_v62 }
 0x5fa   :  { %v1627_v9 = vpop.permute.xlu0 %1626  ;;  %v2052_v49 = vpop.permute.xlu1 %2051 }
 0x5fb   :  { %v2072_v54 = vld [vmem:[#allocation2 + $0x20] sm:$0xff]  ;;  %1642 = vst.msk [vmem:[#allocation2 + $0x30] sm:$0xff] %vm1635_vm1, %v1627_v9 }
 0x5fc   :  { %6293 = vmatmul.mubr.msk.f32.gmra.mxu0 %vm280_vm2, %v2072_v54  ;;  %2067 = vst.msk [vmem:[#allocation2 + $0x30] sm:$0xff] %vm2060_vm4, %v2052_v49 }
 0x5fd   :  { %6295 = vmatprep.mubr.msk.f32.mxu0 %vm7131_vm0, %v9761_v62 }
 0x5fe   :  { %v2073_v21 = vld [vmem:[#allocation2 + $0x28] sm:$0xff] }
 0x600   :  { %6296 = vmatmul.mubr.msk.f32.gmra.mxu0 %vm280_vm2, %v2073_v21 }
 0x601   :  { %6298 = vmatprep.mubr.msk.f32.mxu0 %vm7131_vm0, %v9761_v62 }
 0x603   :  { %v2074_v63 = vld [vmem:[#allocation2 + $0x30] sm:$0xff] }
 0x604   :  { %6299 = vmatmul.mubr.msk.f32.gmra.mxu0 %vm280_vm2, %v2074_v63 }
 0x605   :  { %6346 = vmatprep.mubr.msk.f32.mxu0 %vm7131_vm0, %v9761_v62 }
 0x6ab   :  { %v2182_v51 = vpop.f32.mrf.mxu0 }
 0x6ac   :  { %v2183_v38 = vadd.f32 %v2182_v51, %v2078_v36 }
 0x6ad   :  { %v6282_v37 = vpop.f32.mrf.mxu0 }
 0x6ae   :  { %v2216_v58 = vadd.f32 %v2183_v38, %v7259_v16 }
 0x6af   :  { %v2187_v32 = vpop.f32.mrf.mxu0 }
 0x6b0   :  { %v2188_v44 = vadd.f32 %v2187_v32, %v2078_v36  ;;  %v2223_v29 = vsel %vm280_vm2, %v2216_v58, 0.0 }
 0x6b1   :  { %2224 = vadd.xlane.f32.xlu0 %v2223_v29  ;;  %v6285_v59 = vpop.f32.mrf.mxu0 }
 0x6b2   :  { %v2217_v17 = vadd.f32 %v2188_v44, %v7268_v20 }
 0x6b4   :  { %v2192_v42 = vpop.f32.mrf.mxu0  ;;  %v2226_v35 = vsel %vm280_vm2, %v2217_v17, 0.0 }
 0x6b5   :  { %v2193_v25 = vadd.f32 %v2192_v42, %v2078_v36  ;;  %2227 = vadd.xlane.f32.xlu1 %v2226_v35 }
 0x6b6   :  { %v6288_v41 = vpop.f32.mrf.mxu0 }
 0x6b7   :  { %v2218_v11 = vadd.f32 %v2193_v25, %v7277_v24 }
 0x6b8   :  { %v2197_v52 = vpop.f32.mrf.mxu0 }
 0x6b9   :  { %v2198_v28 = vadd.f32 %v2197_v52, %v2078_v36  ;;  %v2229_v16 = vsel %vm280_vm2, %v2218_v11, 0.0  ;;  %v274_v52 = vld [vmem:[%s9721_s2 + $0x38] sm:$0xff] }
 0x6ba   :  { %2230 = vadd.xlane.f32.xlu0 %v2229_v16  ;;  %v6291_v61 = vpop.f32.mrf.mxu0  ;;  %6302 = vmatpush3.msra.mxu1 %v274_v52  ;;  %v270_v16 = vld [vmem:[%s9721_s2 + $0x18] sm:$0xff] }
 0x6bb   :  { %v2219_v34 = vadd.f32 %v2198_v28, %v9762_v2  ;;  %6303 = vmatprep.subr.mxu1 %v9761_v62  ;;  %v272_v28 = vld [vmem:[%s9721_s2 + $0x28] sm:$0xff]  ;;  %v2476_v2 = vld [vmem:[%s9722_s3 + $0x38] sm:$0xff] }
 0x6bc   :  { %v2202_v57 = vpop.f32.mrf.mxu0  ;;  %6304 = vmatpush3.msra.mxu1 %v272_v28  ;;  %v268_v61 = vld [vmem:[%s9721_s2 + $0x8] sm:$0xff]  ;;  %6331 = vmatpush3.msra.mxu0 %v2476_v2  ;;  %v2469_v2 = vld [vmem:[%s9722_s3] sm:$0xff] }
 0x6bd   :  { %v2203_v55 = vadd.f32 %v2202_v57, %v2078_v36  ;;  %v2232_v20 = vsel %vm280_vm2, %v2219_v34, 0.0  ;;  %6305 = vmatprep.subr.mxu1 %v9761_v62  ;;  %6332 = vmatprep.subr.mxu0 %v9761_v62  ;;  %v2474_v57 = vld [vmem:[%s9722_s3 + $0x28] sm:$0xff] }
 0x6be   :  { %2233 = vadd.xlane.f32.xlu0 %v2232_v20  ;;  %v6294_v26 = vpop.f32.mrf.mxu0  ;;  %6306 = vmatpush3.msra.mxu1 %v270_v16  ;;  %v2472_v20 = vld [vmem:[%s9722_s3 + $0x18] sm:$0xff] }
 0x6bf   :  { %v2220_v22 = vadd.f32 %v2203_v55, %v9763_v3  ;;  %6307 = vmatprep.subr.mxu1 %v9761_v62  ;;  %v2473_v55 = vld [vmem:[%s9722_s3 + $0x20] sm:$0xff] }
 0x6c0   :  { %v2207_v43 = vpop.f32.mrf.mxu0  ;;  %6308 = vmatpush3.msra.mxu1 %v268_v61  ;;  %v2471_v61 = vld [vmem:[%s9722_s3 + $0x10] sm:$0xff] }
 0x6c1   :  { %v2208_v60 = vadd.f32 %v2207_v43, %v2078_v36  ;;  %v2235_v24 = vsel %vm280_vm2, %v2220_v22, 0.0  ;;  %6367 = vmatprep.subr.mxu1 %v9761_v62 }
 0x6c2   :  { %2236 = vadd.xlane.f32.xlu1 %v2235_v24  ;;  %v6297_v45 = vpop.f32.mrf.mxu0 }
 0x6c3   :  { %v2221_v56 = vadd.f32 %v2208_v60, %v9764_v40 }
 0x6c4   :  { %v2212_v27 = vpop.f32.mrf.mxu0 }
 0x6c5   :  { %v2238_v30 = vsel %vm280_vm2, %v2221_v56, 0.0  ;;  %v2213_v13 = vadd.f32 %v2212_v27, %v2078_v36 }
 0x6c6   :  { %2239 = vadd.xlane.f32.xlu0 %v2238_v30  ;;  %v6300_v4 = vpop.f32.mrf.mxu0  ;;  %v9746_v30 = vsub.s32 2, %v7320_v47 }
 0x6c7   :  { %v2222_v19 = vadd.f32 %v2213_v13, %v9765_v12  ;;  %v9745_v12 = vsub.s32 3, %v7320_v47 }
 0x6c9   :  { %v2241_v31 = vsel %vm280_vm2, %v2222_v19, 0.0 }
 0x6ca   :  { %2242 = vadd.xlane.f32.xlu1 %v2241_v31  ;;  %v2318_v31 = vrot.slane %v8236_v48, %v9746_v30 }
 0x73a   :  { %v2225_v1 = vpop.xlane.xlu0 %2224 }
 0x73b   :  { %v2245_v14 = vmul.f32 0.03125, %v2225_v1 }
 0x73d   :  { %v8255_v15 = vsub.f32 %v2216_v58, %v2245_v14 }
 0x73e   :  { %v2228_v39 = vpop.xlane.xlu1 %2227 }
 0x73f   :  { %v2246_v8 = vmul.f32 0.03125, %v2228_v39  ;;  %v2259_v50 = vmul.f32 %v8255_v15, %v8255_v15 }
 0x741   :  { %v8259_v18 = vsub.f32 %v2217_v17, %v2246_v8  ;;  %v2266_v23 = vsel %vm280_vm2, %v2259_v50, 0.0  ;;  %v2329_v50 = vrot.slane %v8236_v48, %v9745_v12 }
 0x742   :  { %2267 = vadd.xlane.f32.xlu0 %v2266_v23 }
 0x743   :  { %v2231_v53 = vpop.xlane.xlu0 %2230  ;;  %v2260_v46 = vmul.f32 %v8259_v18, %v8259_v18 }
 0x744   :  { %v2247_v5 = vmul.f32 0.03125, %v2231_v53 }
 0x745   :  { %v2269_v0 = vsel %vm280_vm2, %v2260_v46, 0.0 }
 0x746   :  { %v8264_v33 = vsub.f32 %v2218_v11, %v2247_v5  ;;  %2270 = vadd.xlane.f32.xlu1 %v2269_v0 }
 0x747   :  { %v2234_v6 = vpop.xlane.xlu0 %2233 }
 0x748   :  { %v2248_v7 = vmul.f32 0.03125, %v2234_v6  ;;  %v2261_v9 = vmul.f32 %v8264_v33, %v8264_v33 }
 0x74a   :  { %v8269_v49 = vsub.f32 %v2219_v34, %v2248_v7  ;;  %v2272_v54 = vsel %vm280_vm2, %v2261_v9, 0.0  ;;  %v2475_v34 = vld [vmem:[%s9722_s3 + $0x30] sm:$0xff] }
 0x74b   :  { %2273 = vadd.xlane.f32.xlu0 %v2272_v54  ;;  %v2237_v21 = vpop.xlane.xlu1 %2236  ;;  %6333 = vmatpush3.msra.mxu0 %v2475_v34  ;;  %v9744_v34 = vsub.s32 4, %v7320_v47 }
 0x74c   :  { %v2249_v63 = vmul.f32 0.03125, %v2237_v21  ;;  %v2262_v36 = vmul.f32 %v8269_v49, %v8269_v49  ;;  %6334 = vmatprep.subr.mxu0 %v9761_v62 }
 0x74d   :  { %6335 = vmatpush3.msra.mxu0 %v2474_v57  ;;  %v2340_v57 = vrot.slane %v8236_v48, %v9744_v34 }
 0x74e   :  { %v8274_v51 = vsub.f32 %v2220_v22, %v2249_v63  ;;  %v2275_v38 = vsel %vm280_vm2, %v2262_v36, 0.0  ;;  %6336 = vmatprep.subr.mxu0 %v9761_v62 }
 0x74f   :  { %v2240_v37 = vpop.xlane.xlu0 %2239  ;;  %2276 = vadd.xlane.f32.xlu1 %v2275_v38  ;;  %6337 = vmatpush3.msra.mxu0 %v2473_v55 }
 0x750   :  { %v2250_v58 = vmul.f32 0.03125, %v2240_v37  ;;  %v2263_v32 = vmul.f32 %v8274_v51, %v8274_v51  ;;  %6338 = vmatprep.subr.mxu0 %v9761_v62 }
 0x751   :  { %6339 = vmatpush3.msra.mxu0 %v2472_v20 }
 0x752   :  { %v8279_v44 = vsub.f32 %v2221_v56, %v2250_v58  ;;  %v2278_v29 = vsel %vm280_vm2, %v2263_v32, 0.0  ;;  %6340 = vmatprep.subr.mxu0 %v9761_v62 }
 0x753   :  { %2279 = vadd.xlane.f32.xlu0 %v2278_v29  ;;  %v2243_v59 = vpop.xlane.xlu1 %2242  ;;  %6341 = vmatpush3.msra.mxu0 %v2471_v61 }
 0x754   :  { %v2264_v17 = vmul.f32 %v8279_v44, %v8279_v44  ;;  %v2251_v42 = vmul.f32 0.03125, %v2243_v59  ;;  %6342 = vmatprep.subr.mxu0 %v9761_v62 }
 0x756   :  { %v2281_v25 = vsel %vm280_vm2, %v2264_v17, 0.0  ;;  %v8285_v35 = vsub.f32 %v2222_v19, %v2251_v42 }
 0x757   :  { %2282 = vadd.xlane.f32.xlu1 %v2281_v25 }
 0x758   :  { %v2265_v41 = vmul.f32 %v8285_v35, %v8285_v35 }
 0x75a   :  { %v2284_v11 = vsel %vm280_vm2, %v2265_v41, 0.0 }
 0x75b   :  { %2285 = vadd.xlane.f32.xlu0 %v2284_v11 }
 0x7cb   :  { %v2268_v26 = vpop.xlane.xlu0 %2267 }
 0x7cc   :  { %v2287_v3 = vmul.f32 0.03125, %v2268_v26 }
 0x7ce   :  { %v2294_v22 = vadd.f32 1e-05, %v2287_v3 }
 0x7cf   :  { %v2271_v43 = vpop.xlane.xlu1 %2270 }
 0x7d0   :  { %6930 = vrsqrt.f32 %v2294_v22  ;;  %v2288_v60 = vmul.f32 0.03125, %v2271_v43 }
 0x7d2   :  { %v2295_v24 = vadd.f32 1e-05, %v2288_v60 }
 0x7d4   :  { %v2274_v45 = vpop.xlane.xlu0 %2273  ;;  %6932 = vrsqrt.f32 %v2295_v24 }
 0x7d5   :  { %v2289_v40 = vmul.f32 0.03125, %v2274_v45 }
 0x7d7   :  { %v2296_v56 = vadd.f32 1e-05, %v2289_v40 }
 0x7d8   :  { %v2277_v27 = vpop.xlane.xlu1 %2276 }
 0x7d9   :  { %6934 = vrsqrt.f32 %v2296_v56  ;;  %v2290_v13 = vmul.f32 0.03125, %v2277_v27 }
 0x7db   :  { %v2297_v4 = vadd.f32 1e-05, %v2290_v13 }
 0x7dc   :  { %v2280_v19 = vpop.xlane.xlu0 %2279 }
 0x7dd   :  { %6936 = vrsqrt.f32 %v2297_v4  ;;  %v2291_v1 = vmul.f32 0.03125, %v2280_v19  ;;  %v6931_v14 = vpop.eup %6930 }
 0x7de   :  { %v2308_v39 = vmul.f32 %v6931_v14, %v8255_v15 }
 0x7df   :  { %v2298_v8 = vadd.f32 1e-05, %v2291_v1 }
 0x7e0   :  { %v2283_v23 = vpop.xlane.xlu1 %2282  ;;  %v2319_v53 = vmul.f32 %v2318_v31, %v2308_v39 }
 0x7e1   :  { %6938 = vrsqrt.f32 %v2298_v8  ;;  %v2292_v5 = vmul.f32 0.03125, %v2283_v23  ;;  %v6933_v46 = vpop.eup %6932 }
 0x7e2   :  { %v8335_v6 = vadd.f32 %v2329_v50, %v2319_v53  ;;  %v2309_v7 = vmul.f32 %v6933_v46, %v8259_v18 }
 0x7e3   :  { %v2299_v0 = vadd.f32 1e-05, %v2292_v5 }
 0x7e4   :  { %6310 = vmatmul.mubr.msk.f32.vlgmr.msra.gmra.mxu1 %vm280_vm2, %v8335_v6  ;;  %v2286_v15 = vpop.xlane.xlu0 %2285  ;;  %v2320_v9 = vmul.f32 %v2318_v31, %v2309_v7 }
 0x7e5   :  { %6940 = vrsqrt.f32 %v2299_v0  ;;  %v2293_v21 = vmul.f32 0.03125, %v2286_v15  ;;  %6312 = vmatprep.mubr.msk.f32.mxu1 %vm7131_vm0, %v9761_v62 }
 0x7e6   :  { %v6935_v54 = vpop.eup %6934  ;;  %v8342_v63 = vadd.f32 %v2329_v50, %v2320_v9  ;;  %v9743_v9 = vsub.s32 5, %v7320_v47 }
 0x7e7   :  { %v2310_v36 = vmul.f32 %v6935_v54, %v8264_v33  ;;  %v2300_v38 = vadd.f32 1e-05, %v2293_v21 }
 0x7e8   :  { %6313 = vmatmul.mubr.msk.f32.gmra.mxu1 %vm280_vm2, %v8342_v63  ;;  %v2480_v54 = vrot.slane %v8236_v48, %v9743_v9 }
 0x7e9   :  { %v2321_v18 = vmul.f32 %v2318_v31, %v2310_v36  ;;  %6942 = vrsqrt.f32 %v2300_v38  ;;  %6315 = vmatprep.mubr.msk.f32.mxu1 %vm7131_vm0, %v9761_v62 }
 0x7ea   :  { %v6937_v37 = vpop.eup %6936 }
 0x7eb   :  { %v8349_v58 = vadd.f32 %v2329_v50, %v2321_v18  ;;  %v2311_v32 = vmul.f32 %v6937_v37, %v8269_v49 }
 0x7ed   :  { %6316 = vmatmul.mubr.msk.f32.gmra.mxu1 %vm280_vm2, %v8349_v58  ;;  %v2322_v29 = vmul.f32 %v2318_v31, %v2311_v32 }
 0x7ee   :  { %v6939_v59 = vpop.eup %6938  ;;  %6318 = vmatprep.mubr.msk.f32.mxu1 %vm7131_vm0, %v9761_v62 }
 0x7ef   :  { %v8356_v33 = vadd.f32 %v2329_v50, %v2322_v29  ;;  %v2312_v17 = vmul.f32 %v6939_v59, %v8274_v51 }
 0x7f1   :  { %6319 = vmatmul.mubr.msk.f32.gmra.mxu1 %vm280_vm2, %v8356_v33  ;;  %v2323_v42 = vmul.f32 %v2318_v31, %v2312_v17 }
 0x7f2   :  { %v6941_v25 = vpop.eup %6940  ;;  %6321 = vmatprep.mubr.msk.f32.mxu1 %vm7131_vm0, %v9761_v62 }
 0x7f3   :  { %v8363_v49 = vadd.f32 %v2329_v50, %v2323_v42  ;;  %v2313_v41 = vmul.f32 %v6941_v25, %v8279_v44 }
 0x7f5   :  { %6322 = vmatmul.mubr.msk.f32.gmra.mxu1 %vm280_vm2, %v8363_v49  ;;  %v2324_v11 = vmul.f32 %v2318_v31, %v2313_v41 }
 0x7f6   :  { %6324 = vmatprep.mubr.msk.f32.mxu1 %vm7131_vm0, %v9761_v62  ;;  %v6943_v51 = vpop.eup %6942 }
 0x7f7   :  { %v8370_v52 = vadd.f32 %v2329_v50, %v2324_v11  ;;  %v2314_v28 = vmul.f32 %v6943_v51, %v8285_v35  ;;  %v2470_v35 = vld [vmem:[%s9722_s3 + $0x8] sm:$0xff] }
 0x7f8   :  { %6343 = vmatpush3.msra.mxu0 %v2470_v35 }
 0x7f9   :  { %6325 = vmatmul.mubr.msk.f32.gmra.mxu1 %vm280_vm2, %v8370_v52  ;;  %v2325_v16 = vmul.f32 %v2318_v31, %v2314_v28  ;;  %6344 = vmatprep.subr.mxu0 %v9761_v62 }
 0x7fa   :  { %6327 = vmatprep.mubr.msk.f32.mxu1 %vm7131_vm0, %v9761_v62  ;;  %6345 = vmatpush3.msra.mxu0 %v2469_v2 }
 0x7fb   :  { %v8377_v44 = vadd.f32 %v2329_v50, %v2325_v16  ;;  %6396 = vmatprep.subr.mxu0 %v9761_v62 }
 0x7fd   :  { %6328 = vmatmul.mubr.msk.f32.gmra.mxu1 %vm280_vm2, %v8377_v44 }
 0x7fe   :  { %6375 = vmatprep.mubr.msk.f32.mxu1 %vm7131_vm0, %v9761_v62 }
 0x8a4   :  { %v2428_v55 = vpop.f32.mrf.mxu1 }
 0x8a5   :  { %v2429_v20 = vadd.f32 %v2428_v55, %v2340_v57 }
 0x8a6   :  { %v6311_v26 = vpop.f32.mrf.mxu1 }
 0x8a7   :  { %v2462_v3 = vmax.f32 %v2429_v20, 0.0 }
 0x8a8   :  { %v2433_v22 = vpop.f32.mrf.mxu1 }
 0x8a9   :  { %v2434_v43 = vadd.f32 %v2433_v22, %v2340_v57  ;;  %6347 = vmatmul.mubr.msk.f32.vlgmr.msra.gmra.mxu0 %vm2481_vm5, %v2462_v3 }
 0x8aa   :  { %v6314_v60 = vpop.f32.mrf.mxu1  ;;  %6349 = vmatprep.mubr.msk.f32.mxu0 %vm7131_vm0, %v9761_v62 }
 0x8ab   :  { %v2463_v24 = vmax.f32 %v2434_v43, 0.0 }
 0x8ad   :  { %v2438_v45 = vpop.f32.mrf.mxu1  ;;  %6350 = vmatmul.mubr.msk.f32.gmra.mxu0 %vm2481_vm5, %v2463_v24 }
 0x8ae   :  { %v2439_v40 = vadd.f32 %v2438_v45, %v2340_v57  ;;  %6352 = vmatprep.mubr.msk.f32.mxu0 %vm7131_vm0, %v9761_v62 }
 0x8af   :  { %v6317_v56 = vpop.f32.mrf.mxu1 }
 0x8b0   :  { %v2464_v27 = vmax.f32 %v2439_v40, 0.0 }
 0x8b1   :  { %v2443_v13 = vpop.f32.mrf.mxu1 }
 0x8b2   :  { %v2444_v4 = vadd.f32 %v2443_v13, %v2340_v57  ;;  %6353 = vmatmul.mubr.msk.f32.gmra.mxu0 %vm2481_vm5, %v2464_v27 }
 0x8b3   :  { %v6320_v19 = vpop.f32.mrf.mxu1  ;;  %6355 = vmatprep.mubr.msk.f32.mxu0 %vm7131_vm0, %v9761_v62 }
 0x8b4   :  { %v2465_v31 = vmax.f32 %v2444_v4, 0.0 }
 0x8b5   :  { %v2448_v1 = vpop.f32.mrf.mxu1 }
 0x8b6   :  { %v2449_v14 = vadd.f32 %v2448_v1, %v2340_v57  ;;  %6356 = vmatmul.mubr.msk.f32.gmra.mxu0 %vm2481_vm5, %v2465_v31 }
 0x8b7   :  { %v6323_v39 = vpop.f32.mrf.mxu1  ;;  %6358 = vmatprep.mubr.msk.f32.mxu0 %vm7131_vm0, %v9761_v62 }
 0x8b8   :  { %v2466_v8 = vmax.f32 %v2449_v14, 0.0 }
 0x8b9   :  { %v2453_v50 = vpop.f32.mrf.mxu1 }
 0x8ba   :  { %v2454_v23 = vadd.f32 %v2453_v50, %v2340_v57  ;;  %6359 = vmatmul.mubr.msk.f32.gmra.mxu0 %vm2481_vm5, %v2466_v8 }
 0x8bb   :  { %v6326_v53 = vpop.f32.mrf.mxu1  ;;  %6361 = vmatprep.mubr.msk.f32.mxu0 %vm7131_vm0, %v9761_v62 }
 0x8bc   :  { %v2467_v5 = vmax.f32 %v2454_v23, 0.0 }
 0x8bd   :  { %v2458_v46 = vpop.f32.mrf.mxu1 }
 0x8be   :  { %6362 = vmatmul.mubr.msk.f32.gmra.mxu0 %vm2481_vm5, %v2467_v5  ;;  %v2459_v0 = vadd.f32 %v2458_v46, %v2340_v57 }
 0x8bf   :  { %6364 = vmatprep.mubr.msk.f32.mxu0 %vm7131_vm0, %v9761_v62  ;;  %v6329_v7 = vpop.f32.mrf.mxu1 }
 0x8c0   :  { %v2468_v15 = vmax.f32 %v2459_v0, 0.0 }
 0x8c2   :  { %6365 = vmatmul.mubr.msk.f32.gmra.mxu0 %vm2481_vm5, %v2468_v15 }
 0x8c3   :  { %6410 = vmatprep.mubr.msk.f32.mxu0 %vm7131_vm0, %v9761_v62 }
 0x969   :  { %v2569_v21 = vpop.f32.mrf.mxu0 }
 0x96a   :  { %v2570_v36 = vadd.f32 %v2569_v21, %v2480_v54 }
 0x96b   :  { %v6348_v38 = vpop.f32.mrf.mxu0 }
 0x96c   :  { %v2603_v18 = vadd.f32 %v2570_v36, %v8335_v6 }
 0x96d   :  { %v2574_v37 = vpop.f32.mrf.mxu0 }
 0x96e   :  { %v2575_v32 = vadd.f32 %v2574_v37, %v2480_v54  ;;  %v2610_v29 = vsel %vm280_vm2, %v2603_v18, 0.0 }
 0x96f   :  { %2611 = vadd.xlane.f32.xlu1 %v2610_v29  ;;  %v6351_v59 = vpop.f32.mrf.mxu0 }
 0x970   :  { %v2604_v17 = vadd.f32 %v2575_v32, %v8342_v63 }
 0x972   :  { %v2579_v42 = vpop.f32.mrf.mxu0  ;;  %v2613_v41 = vsel %vm280_vm2, %v2604_v17, 0.0 }
 0x973   :  { %v2580_v25 = vadd.f32 %v2579_v42, %v2480_v54  ;;  %2614 = vadd.xlane.f32.xlu0 %v2613_v41 }
 0x974   :  { %v6354_v11 = vpop.f32.mrf.mxu0 }
 0x975   :  { %v2605_v51 = vadd.f32 %v2580_v25, %v8349_v58 }
 0x976   :  { %v2584_v28 = vpop.f32.mrf.mxu0 }
 0x977   :  { %v2585_v16 = vadd.f32 %v2584_v28, %v2480_v54  ;;  %v2616_v6 = vsel %vm280_vm2, %v2605_v51, 0.0  ;;  %v5470_v28 = vld [vmem:[%s9721_s2 + $0x70] sm:$0xff] }
 0x978   :  { %2617 = vadd.xlane.f32.xlu1 %v2616_v6  ;;  %v6357_v61 = vpop.f32.mrf.mxu0  ;;  %6368 = vmatpush3.msra.mxu1 %v5470_v28  ;;  %v5466_v6 = vld [vmem:[%s9721_s2 + $0x50] sm:$0xff] }
 0x979   :  { %v2606_v35 = vadd.f32 %v2585_v16, %v8356_v33  ;;  %6369 = vmatprep.subr.mxu1 %v9761_v62  ;;  %v5468_v16 = vld [vmem:[%s9721_s2 + $0x60] sm:$0xff] }
 0x97a   :  { %v2589_v2 = vpop.f32.mrf.mxu0  ;;  %6370 = vmatpush3.msra.mxu1 %v5468_v16  ;;  %v5464_v61 = vld [vmem:[%s9721_s2 + $0x40] sm:$0xff] }
 0x97b   :  { %v2590_v57 = vadd.f32 %v2589_v2, %v2480_v54  ;;  %v2619_v63 = vsel %vm280_vm2, %v2606_v35, 0.0  ;;  %6371 = vmatprep.subr.mxu1 %v9761_v62 }
 0x97c   :  { %2620 = vadd.xlane.f32.xlu0 %v2619_v63  ;;  %v6360_v55 = vpop.f32.mrf.mxu0  ;;  %6372 = vmatpush3.msra.mxu1 %v5466_v6 }
 0x97d   :  { %v2607_v20 = vadd.f32 %v2590_v57, %v8363_v49  ;;  %6373 = vmatprep.subr.mxu1 %v9761_v62 }
 0x97e   :  { %v2594_v26 = vpop.f32.mrf.mxu0  ;;  %6374 = vmatpush3.msra.mxu1 %v5464_v61 }
 0x97f   :  { %v2595_v3 = vadd.f32 %v2594_v26, %v2480_v54  ;;  %v2622_v58 = vsel %vm280_vm2, %v2607_v20, 0.0  ;;  %6431 = vmatprep.subr.mxu1 %v9761_v62 }
 0x980   :  { %2623 = vadd.xlane.f32.xlu1 %v2622_v58  ;;  %v6363_v22 = vpop.f32.mrf.mxu0 }
 0x981   :  { %v2608_v43 = vadd.f32 %v2595_v3, %v8370_v52 }
 0x982   :  { %v2599_v60 = vpop.f32.mrf.mxu0 }
 0x983   :  { %v2625_v24 = vsel %vm280_vm2, %v2608_v43, 0.0  ;;  %v2600_v33 = vadd.f32 %v2599_v60, %v2480_v54 }
 0x984   :  { %2626 = vadd.xlane.f32.xlu0 %v2625_v24  ;;  %v6366_v45 = vpop.f32.mrf.mxu0 }
 0x985   :  { %v2609_v40 = vadd.f32 %v2600_v33, %v8377_v44  ;;  %v9741_v33 = vsub.s32 7, %v7320_v47 }
 0x987   :  { %v2628_v56 = vsel %vm280_vm2, %v2609_v40, 0.0 }
 0x988   :  { %2629 = vadd.xlane.f32.xlu1 %v2628_v56 }
 0x9f8   :  { %v2612_v49 = vpop.xlane.xlu1 %2611 }
 0x9f9   :  { %v2631_v27 = vmul.f32 0.03125, %v2612_v49 }
 0x9fb   :  { %v8438_v13 = vsub.f32 %v2603_v18, %v2631_v27 }
 0x9fc   :  { %v2615_v4 = vpop.xlane.xlu0 %2614 }
 0x9fd   :  { %v2632_v19 = vmul.f32 0.03125, %v2615_v4  ;;  %v2645_v52 = vmul.f32 %v8438_v13, %v8438_v13 }
 0x9ff   :  { %v8442_v31 = vsub.f32 %v2604_v17, %v2632_v19  ;;  %v2652_v1 = vsel %vm280_vm2, %v2645_v52, 0.0  ;;  %v2715_v19 = vrot.slane %v8236_v48, %v9741_v33 }
 0xa00   :  { %2653 = vadd.xlane.f32.xlu0 %v2652_v1 }
 0xa01   :  { %v2618_v14 = vpop.xlane.xlu1 %2617  ;;  %v2646_v44 = vmul.f32 %v8442_v31, %v8442_v31 }
 0xa02   :  { %v2633_v39 = vmul.f32 0.03125, %v2618_v14 }
 0xa03   :  { %v2655_v50 = vsel %vm280_vm2, %v2646_v44, 0.0 }
 0xa04   :  { %v8447_v8 = vsub.f32 %v2605_v51, %v2633_v39  ;;  %2656 = vadd.xlane.f32.xlu1 %v2655_v50 }
 0xa05   :  { %v2621_v23 = vpop.xlane.xlu0 %2620 }
 0xa06   :  { %v2634_v53 = vmul.f32 0.03125, %v2621_v23  ;;  %v2647_v5 = vmul.f32 %v8447_v8, %v8447_v8 }
 0xa08   :  { %v8452_v46 = vsub.f32 %v2606_v35, %v2634_v53  ;;  %v2658_v0 = vsel %vm280_vm2, %v2647_v5, 0.0 }
 0xa09   :  { %2659 = vadd.xlane.f32.xlu0 %v2658_v0  ;;  %v2624_v7 = vpop.xlane.xlu1 %2623 }
 0xa0a   :  { %v2635_v15 = vmul.f32 0.03125, %v2624_v7  ;;  %v2648_v54 = vmul.f32 %v8452_v46, %v8452_v46 }
 0xa0c   :  { %v8457_v21 = vsub.f32 %v2607_v20, %v2635_v15  ;;  %v2661_v36 = vsel %vm280_vm2, %v2648_v54, 0.0 }
 0xa0d   :  { %v2627_v38 = vpop.xlane.xlu0 %2626  ;;  %2662 = vadd.xlane.f32.xlu1 %v2661_v36 }
 0xa0e   :  { %v2636_v18 = vmul.f32 0.03125, %v2627_v38  ;;  %v2649_v37 = vmul.f32 %v8457_v21, %v8457_v21 }
 0xa10   :  { %v8462_v32 = vsub.f32 %v2608_v43, %v2636_v18  ;;  %v2664_v29 = vsel %vm280_vm2, %v2649_v37, 0.0  ;;  %v9742_v43 = vsub.s32 6, %v7320_v47 }
 0xa11   :  { %2665 = vadd.xlane.f32.xlu0 %v2664_v29  ;;  %v2630_v59 = vpop.xlane.xlu1 %2629 }
 0xa12   :  { %v2650_v17 = vmul.f32 %v8462_v32, %v8462_v32  ;;  %v2637_v42 = vmul.f32 0.03125, %v2630_v59 }
 0xa14   :  { %v2667_v25 = vsel %vm280_vm2, %v2650_v17, 0.0  ;;  %v8468_v41 = vsub.f32 %v2609_v40, %v2637_v42  ;;  %v2704_v40 = vrot.slane %v8236_v48, %v9742_v43 }
 0xa15   :  { %2668 = vadd.xlane.f32.xlu1 %v2667_v25 }
 0xa16   :  { %v2651_v11 = vmul.f32 %v8468_v41, %v8468_v41 }
 0xa18   :  { %v2670_v51 = vsel %vm280_vm2, %v2651_v11, 0.0 }
 0xa19   :  { %2671 = vadd.xlane.f32.xlu0 %v2670_v51 }
 0xa89   :  { %v2654_v35 = vpop.xlane.xlu0 %2653 }
 0xa8a   :  { %v2673_v2 = vmul.f32 0.03125, %v2654_v35 }
 0xa8c   :  { %v2680_v57 = vadd.f32 1e-05, %v2673_v2 }
 0xa8d   :  { %v2657_v63 = vpop.xlane.xlu1 %2656 }
 0xa8e   :  { %6944 = vrsqrt.f32 %v2680_v57  ;;  %v2674_v55 = vmul.f32 0.03125, %v2657_v63 }
 0xa90   :  { %v2681_v20 = vadd.f32 1e-05, %v2674_v55  ;;  %v5472_v55 = vld [vmem:[%s9723_s4 + $0x8] sm:$0xff] }
 0xa92   :  { %v2660_v26 = vpop.xlane.xlu0 %2659  ;;  %6946 = vrsqrt.f32 %v2681_v20 }
 0xa93   :  { %v2675_v3 = vmul.f32 0.03125, %v2660_v26 }
 0xa95   :  { %v2682_v58 = vadd.f32 1e-05, %v2675_v3  ;;  %v9771_v3 = vsub.s32 0, %v7320_v47 }
 0xa96   :  { %v2663_v22 = vpop.xlane.xlu1 %2662 }
 0xa97   :  { %6948 = vrsqrt.f32 %v2682_v58  ;;  %v2676_v60 = vmul.f32 0.03125, %v2663_v22  ;;  %v2737_v58 = vrot.slane %v5472_v55, %v9771_v3 }
 0xa99   :  { %v2683_v24 = vadd.f32 1e-05, %v2676_v60 }
 0xa9a   :  { %v2666_v45 = vpop.xlane.xlu0 %2665 }
 0xa9b   :  { %6950 = vrsqrt.f32 %v2683_v24  ;;  %v2677_v56 = vmul.f32 0.03125, %v2666_v45  ;;  %v6945_v49 = vpop.eup %6944 }
 0xa9c   :  { %v2694_v27 = vmul.f32 %v6945_v49, %v8438_v13 }
 0xa9d   :  { %v2684_v4 = vadd.f32 1e-05, %v2677_v56 }
 0xa9e   :  { %v2669_v52 = vpop.xlane.xlu1 %2668  ;;  %v2705_v1 = vmul.f32 %v2704_v40, %v2694_v27 }
 0xa9f   :  { %6952 = vrsqrt.f32 %v2684_v4  ;;  %v2678_v14 = vmul.f32 0.03125, %v2669_v52  ;;  %v6947_v39 = vpop.eup %6946 }
 0xaa0   :  { %v8498_v50 = vadd.f32 %v2715_v19, %v2705_v1  ;;  %v2695_v23 = vmul.f32 %v6947_v39, %v8442_v31 }
 0xaa1   :  { %v2685_v44 = vadd.f32 1e-05, %v2678_v14 }
 0xaa2   :  { %6376 = vmatmul.mubr.msk.f32.vlgmr.msra.gmra.mxu1 %vm280_vm2, %v8498_v50  ;;  %v2672_v13 = vpop.xlane.xlu0 %2671  ;;  %v2706_v53 = vmul.f32 %v2704_v40, %v2695_v23 }
 0xaa3   :  { %6954 = vrsqrt.f32 %v2685_v44  ;;  %v2679_v0 = vmul.f32 0.03125, %v2672_v13  ;;  %6378 = vmatprep.mubr.msk.f32.mxu1 %vm7131_vm0, %v9761_v62 }
 0xaa4   :  { %v6949_v5 = vpop.eup %6948  ;;  %v8505_v48 = vadd.f32 %v2715_v19, %v2706_v53 }
 0xaa5   :  { %v2696_v7 = vmul.f32 %v6949_v5, %v8447_v8  ;;  %v2686_v15 = vadd.f32 1e-05, %v2679_v0 }
 0xaa6   :  { %6379 = vmatmul.mubr.msk.f32.gmra.mxu1 %vm280_vm2, %v8505_v48 }
 0xaa7   :  { %v2707_v31 = vmul.f32 %v2704_v40, %v2696_v7  ;;  %6956 = vrsqrt.f32 %v2686_v15  ;;  %6381 = vmatprep.mubr.msk.f32.mxu1 %vm7131_vm0, %v9761_v62 }
 0xaa8   :  { %v6951_v54 = vpop.eup %6950 }
 0xaa9   :  { %v8512_v36 = vadd.f32 %v2715_v19, %v2707_v31  ;;  %v2697_v38 = vmul.f32 %v6951_v54, %v8452_v46 }
 0xaab   :  { %9766 = vst [vmem:[#allocation6_spill] sm:$0xff] %v8512_v36  ;;  %6382 = vmatmul.mubr.msk.f32.gmra.mxu1 %vm280_vm2, %v8512_v36  ;;  %v2708_v18 = vmul.f32 %v2704_v40, %v2697_v38 }
 0xaac   :  { %v6953_v37 = vpop.eup %6952  ;;  %6384 = vmatprep.mubr.msk.f32.mxu1 %vm7131_vm0, %v9761_v62 }
 0xaad   :  { %v8519_v8 = vadd.f32 %v2715_v19, %v2708_v18  ;;  %v2698_v29 = vmul.f32 %v6953_v37, %v8457_v21 }
 0xaaf   :  { %9767 = vst [vmem:[#allocation7_spill] sm:$0xff] %v8519_v8  ;;  %6385 = vmatmul.mubr.msk.f32.gmra.mxu1 %vm280_vm2, %v8519_v8  ;;  %v2709_v59 = vmul.f32 %v2704_v40, %v2698_v29 }
 0xab0   :  { %v6955_v17 = vpop.eup %6954  ;;  %6387 = vmatprep.mubr.msk.f32.mxu1 %vm7131_vm0, %v9761_v62 }
 0xab1   :  { %v8526_v46 = vadd.f32 %v2715_v19, %v2709_v59  ;;  %v2699_v42 = vmul.f32 %v6955_v17, %v8462_v32 }
 0xab3   :  { %9768 = vst [vmem:[#allocation8_spill] sm:$0xff] %v8526_v46  ;;  %6388 = vmatmul.mubr.msk.f32.gmra.mxu1 %vm280_vm2, %v8526_v46  ;;  %v2710_v25 = vmul.f32 %v2704_v40, %v2699_v42 }
 0xab4   :  { %6390 = vmatprep.mubr.msk.f32.mxu1 %vm7131_vm0, %v9761_v62  ;;  %v6957_v21 = vpop.eup %6956 }
 0xab5   :  { %v8533_v11 = vadd.f32 %v2715_v19, %v2710_v25  ;;  %v2700_v51 = vmul.f32 %v6957_v21, %v8468_v41 }
 0xab7   :  { %9769 = vst [vmem:[#allocation9_spill] sm:$0xff] %v8533_v11  ;;  %6391 = vmatmul.mubr.msk.f32.gmra.mxu1 %vm280_vm2, %v8533_v11  ;;  %v2711_v28 = vmul.f32 %v2704_v40, %v2700_v51 }
 0xab8   :  { %6393 = vmatprep.mubr.msk.f32.mxu1 %vm7131_vm0, %v9761_v62 }
 0xab9   :  { %v8540_v32 = vadd.f32 %v2715_v19, %v2711_v28 }
 0xabb   :  { %9770 = vst [vmem:[#allocation14_spill] sm:$0xff] %v8540_v32  ;;  %6394 = vmatmul.mubr.msk.f32.gmra.mxu1 %vm280_vm2, %v8540_v32 }
 0xabc   :  { %6445 = vmatprep.mubr.msk.f32.mxu1 %vm7131_vm0, %v9761_v62 }
 0xb62   :  { %v2825_v16 = vpop.f32.mrf.mxu1 }
 0xb63   :  { %v8563_v27 = vadd.f32 %v2825_v16, %v2737_v58 }
 0xb64   :  { %v6377_v6 = vpop.f32.mrf.mxu1 }
 0xb66   :  { %v2830_v61 = vpop.f32.mrf.mxu1 }
 0xb67   :  { %v8577_v52 = vadd.f32 %v2830_v61, %v2737_v58 }
 0xb68   :  { %v6380_v35 = vpop.f32.mrf.mxu1 }
 0xb6b   :  { %v2835_v41 = vpop.f32.mrf.mxu1 }
 0xb6c   :  { %v8555_v45 = vadd.f32 %v2835_v41, %v2737_v58 }
 0xb6d   :  { %v6383_v2 = vpop.f32.mrf.mxu1 }
 0xb6f   :  { %v2840_v57 = vpop.f32.mrf.mxu1 }
 0xb70   :  { %v8571_v19 = vadd.f32 %v2840_v57, %v2737_v58 }
 0xb71   :  { %v6386_v63 = vpop.f32.mrf.mxu1 }
 0xb73   :  { %v2845_v20 = vpop.f32.mrf.mxu1 }
 0xb74   :  { %v8565_v4 = vadd.f32 %v2845_v20, %v2737_v58 }
 0xb75   :  { %v6389_v26 = vpop.f32.mrf.mxu1 }
 0xb77   :  { %v2850_v22 = vpop.f32.mrf.mxu1 }
 0xb78   :  { %v8551_v60 = vadd.f32 %v2850_v22, %v2737_v58 }
 0xb79   :  { %v6392_v24 = vpop.f32.mrf.mxu1 }
 0xb7a   :  { %2876 = vrot.lane.b32.xlu0 %v8551_v60, %s7132_s13 }
 0xb7b   :  { %v2855_v40 = vpop.f32.mrf.mxu1 }
 0xb7c   :  { %v8557_v56 = vadd.f32 %v2855_v40, %v2737_v58 }
 0xb7d   :  { %v6395_v49 = vpop.f32.mrf.mxu1 }
 0xb7e   :  { %2870 = vrot.lane.b32.xlu0 %v8555_v45, %s7132_s13  ;;  %2878 = vrot.lane.b32.xlu1 %v8557_v56, %s7132_s13 }
 0xb82   :  { %2866 = vrot.lane.b32.xlu0 %v8563_v27, %s7132_s13  ;;  %2874 = vrot.lane.b32.xlu1 %v8565_v4, %s7132_s13 }
 0xb86   :  { %3272 = vrot.lane.b32.xlu0 %v8551_v60, %s7133_s14  ;;  %2872 = vrot.lane.b32.xlu1 %v8571_v19, %s7132_s13 }
 0xb8a   :  { %3268 = vrot.lane.b32.xlu0 %v8571_v19, %s7133_s14  ;;  %2868 = vrot.lane.b32.xlu1 %v8577_v52, %s7132_s13 }
 0xb8e   :  { %3264 = vrot.lane.b32.xlu0 %v8577_v52, %s7133_s14  ;;  %3274 = vrot.lane.b32.xlu1 %v8557_v56, %s7133_s14 }
 0xb92   :  { %3248 = vrot.lane.b32.xlu0 %v8563_v27, %s7135_s16  ;;  %3270 = vrot.lane.b32.xlu1 %v8565_v4, %s7133_s14 }
 0xb96   :  { %3250 = vrot.lane.b32.xlu0 %v8577_v52, %s7135_s16  ;;  %3266 = vrot.lane.b32.xlu1 %v8555_v45, %s7133_s14 }
 0xb9a   :  { %3252 = vrot.lane.b32.xlu0 %v8555_v45, %s7135_s16  ;;  %3262 = vrot.lane.b32.xlu1 %v8563_v27, %s7133_s14 }
 0xb9e   :  { %3254 = vrot.lane.b32.xlu0 %v8571_v19, %s7135_s16  ;;  %3698 = vrot.lane.b32.xlu1 %v8557_v56, %s7134_s15 }
 0xba2   :  { %3256 = vrot.lane.b32.xlu0 %v8565_v4, %s7135_s16  ;;  %3696 = vrot.lane.b32.xlu1 %v8551_v60, %s7134_s15 }
 0xba6   :  { %3258 = vrot.lane.b32.xlu0 %v8551_v60, %s7135_s16  ;;  %3694 = vrot.lane.b32.xlu1 %v8565_v4, %s7134_s15 }
 0xbaa   :  { %3260 = vrot.lane.b32.xlu0 %v8557_v56, %s7135_s16  ;;  %3692 = vrot.lane.b32.xlu1 %v8571_v19, %s7134_s15 }
 0xbae   :  { %3672 = vrot.lane.b32.xlu0 %v8563_v27, %s7137_s18  ;;  %3690 = vrot.lane.b32.xlu1 %v8555_v45, %s7134_s15 }
 0xbb2   :  { %3674 = vrot.lane.b32.xlu0 %v8577_v52, %s7137_s18  ;;  %3688 = vrot.lane.b32.xlu1 %v8577_v52, %s7134_s15 }
 0xbb6   :  { %3676 = vrot.lane.b32.xlu0 %v8555_v45, %s7137_s18  ;;  %3686 = vrot.lane.b32.xlu1 %v8563_v27, %s7134_s15 }
 0xbba   :  { %3678 = vrot.lane.b32.xlu0 %v8571_v19, %s7137_s18  ;;  %4122 = vrot.lane.b32.xlu1 %v8557_v56, %s7136_s17 }
 0xbbe   :  { %3680 = vrot.lane.b32.xlu0 %v8565_v4, %s7137_s18  ;;  %4120 = vrot.lane.b32.xlu1 %v8551_v60, %s7136_s17 }
 0xbc2   :  { %3682 = vrot.lane.b32.xlu0 %v8551_v60, %s7137_s18  ;;  %4118 = vrot.lane.b32.xlu1 %v8565_v4, %s7136_s17 }
 0xbc6   :  { %3684 = vrot.lane.b32.xlu0 %v8557_v56, %s7137_s18  ;;  %4116 = vrot.lane.b32.xlu1 %v8571_v19, %s7136_s17 }
 0xbca   :  { %4096 = vrot.lane.b32.xlu0 %v8563_v27, %s7138_s19  ;;  %4114 = vrot.lane.b32.xlu1 %v8555_v45, %s7136_s17 }
 0xbce   :  { %4100 = vrot.lane.b32.xlu0 %v8555_v45, %s7138_s19  ;;  %4112 = vrot.lane.b32.xlu1 %v8577_v52, %s7136_s17 }
 0xbd2   :  { %4104 = vrot.lane.b32.xlu0 %v8565_v4, %s7138_s19  ;;  %4110 = vrot.lane.b32.xlu1 %v8563_v27, %s7136_s17 }
 0xbd6   :  { %4108 = vrot.lane.b32.xlu0 %v8557_v56, %s7138_s19  ;;  %4098 = vrot.lane.b32.xlu1 %v8577_v52, %s7138_s19 }
 0xbda   :  { %3107 = vrot.lane.b32.xlu0 %v8565_v4, %s7139_s20  ;;  %4102 = vrot.lane.b32.xlu1 %v8571_v19, %s7138_s19 }
 0xbde   :  { %3105 = vrot.lane.b32.xlu0 %v8571_v19, %s7139_s20  ;;  %4106 = vrot.lane.b32.xlu1 %v8551_v60, %s7138_s19 }
 0xbe2   :  { %3503 = vrot.lane.b32.xlu0 %v8565_v4, %s7140_s21  ;;  %3109 = vrot.lane.b32.xlu1 %v8551_v60, %s7139_s20 }
 0xbe6   :  { %3501 = vrot.lane.b32.xlu0 %v8571_v19, %s7140_s21  ;;  %3103 = vrot.lane.b32.xlu1 %v8555_v45, %s7139_s20 }
 0xbea   :  { %3499 = vrot.lane.b32.xlu0 %v8555_v45, %s7140_s21  ;;  %3101 = vrot.lane.b32.xlu1 %v8577_v52, %s7139_s20 }
 0xbec   :  { %v2877_v1 = vpop.permute.xlu0 %2876 }
 0xbee   :  { %3495 = vrot.lane.b32.xlu0 %v8563_v27, %s7140_s21  ;;  %3099 = vrot.lane.b32.xlu1 %v8563_v27, %s7139_s20 }
 0xbf0   :  { %v2871_v14 = vpop.permute.xlu0 %2870  ;;  %v2879_v39 = vpop.permute.xlu1 %2878 }
 0xbf1   :  { %6397 = vmatpush3.xpose.msk.msra.mxu0 %vm423_vm3, %v2879_v39 }
 0xbf2   :  { %3927 = vrot.lane.b32.xlu0 %v8565_v4, %s7141_s22  ;;  %3505 = vrot.lane.b32.xlu1 %v8551_v60, %s7140_s21 }
 0xbf3   :  { %6398 = vmatprep.subr.mxu0 %v9761_v62 }
 0xbf4   :  { %v2867_v44 = vpop.permute.xlu0 %2866  ;;  %v2875_v23 = vpop.permute.xlu1 %2874 }
 0xbf5   :  { %6399 = vmatpush3.xpose.msk.msra.mxu0 %vm423_vm3, %v2877_v1 }
 0xbf6   :  { %3925 = vrot.lane.b32.xlu0 %v8571_v19, %s7141_s22  ;;  %3497 = vrot.lane.b32.xlu1 %v8577_v52, %s7140_s21 }
 0xbf7   :  { %6400 = vmatprep.subr.mxu0 %v9761_v62 }
 0xbf8   :  { %v3273_v13 = vpop.permute.xlu0 %3272  ;;  %v2873_v53 = vpop.permute.xlu1 %2872 }
 0xbf9   :  { %6401 = vmatpush3.xpose.msk.msra.mxu0 %vm423_vm3, %v2875_v23 }
 0xbfa   :  { %3923 = vrot.lane.b32.xlu0 %v8555_v45, %s7141_s22  ;;  %3929 = vrot.lane.b32.xlu1 %v8551_v60, %s7141_s22 }
 0xbfb   :  { %6402 = vmatprep.subr.mxu0 %v9761_v62 }
 0xbfc   :  { %v3269_v5 = vpop.permute.xlu0 %3268  ;;  %v2869_v0 = vpop.permute.xlu1 %2868 }
 0xbfd   :  { %6403 = vmatpush3.xpose.msk.msra.mxu0 %vm423_vm3, %v2873_v53 }
 0xbfe   :  { %3919 = vrot.lane.b32.xlu0 %v8563_v27, %s7141_s22  ;;  %3921 = vrot.lane.b32.xlu1 %v8577_v52, %s7141_s22 }
 0xbff   :  { %6404 = vmatprep.subr.mxu0 %v9761_v62 }
 0xc00   :  { %v3265_v7 = vpop.permute.xlu0 %3264  ;;  %v3275_v15 = vpop.permute.xlu1 %3274 }
 0xc01   :  { %6405 = vmatpush3.xpose.msk.msra.mxu0 %vm423_vm3, %v2871_v14 }
 0xc02   :  { %3111 = vrot.lane.b32.xlu0 %v8557_v56, %s7139_s20  ;;  %6406 = vmatprep.subr.mxu0 %v9761_v62 }
 0xc04   :  { %v3249_v31 = vpop.permute.xlu0 %3248  ;;  %v3271_v54 = vpop.permute.xlu1 %3270 }
 0xc05   :  { %6407 = vmatpush3.xpose.msk.msra.mxu0 %vm423_vm3, %v2869_v0 }
 0xc06   :  { %3507 = vrot.lane.b32.xlu0 %v8557_v56, %s7140_s21  ;;  %6408 = vmatprep.subr.mxu0 %v9761_v62 }
 0xc08   :  { %v3251_v38 = vpop.permute.xlu0 %3250  ;;  %v3267_v18 = vpop.permute.xlu1 %3266 }
 0xc09   :  { %6409 = vmatpush3.xpose.msk.msra.mxu0 %vm423_vm3, %v2867_v44 }
 0xc0a   :  { %3931 = vrot.lane.b32.xlu0 %v8557_v56, %s7141_s22  ;;  %6466 = vmatprep.subr.mxu0 %v9761_v62 }
 0xc0c   :  { %v3253_v37 = vpop.permute.xlu0 %3252  ;;  %6411 = vmatmul.mubr.msk.f32.vlgmr.msra.gmra.mxu0 %vm423_vm3, %v8563_v27  ;;  %v3263_v29 = vpop.permute.xlu1 %3262 }
 0xc0d   :  { %6467 = vmatpush3.xpose.msk.msra.mxu0 %vm423_vm3, %v3275_v15  ;;  %6413 = vmatprep.mubr.msk.f32.mxu0 %vm7131_vm0, %v9761_v62 }
 0xc0e   :  { %4355 = vrot.lane.b32.xlu0 %v8557_v56, %s7142_s0  ;;  %6468 = vmatprep.subr.mxu0 %v9761_v62 }
 0xc10   :  { %v3255_v59 = vpop.permute.xlu0 %3254  ;;  %6414 = vmatmul.mubr.msk.f32.gmra.mxu0 %vm423_vm3, %v8577_v52  ;;  %v3699_v17 = vpop.permute.xlu1 %3698 }
 0xc11   :  { %6469 = vmatpush3.xpose.msk.msra.mxu0 %vm423_vm3, %v3273_v13  ;;  %6416 = vmatprep.mubr.msk.f32.mxu0 %vm7131_vm0, %v9761_v62 }
 0xc12   :  { %6470 = vmatprep.subr.mxu0 %v9761_v62 }
 0xc14   :  { %v3257_v42 = vpop.permute.xlu0 %3256  ;;  %6417 = vmatmul.mubr.msk.f32.gmra.mxu0 %vm423_vm3, %v8555_v45  ;;  %v3697_v25 = vpop.permute.xlu1 %3696 }
 0xc15   :  { %6471 = vmatpush3.xpose.msk.msra.mxu0 %vm423_vm3, %v3271_v54  ;;  %6419 = vmatprep.mubr.msk.f32.mxu0 %vm7131_vm0, %v9761_v62 }
 0xc16   :  { %6472 = vmatprep.subr.mxu0 %v9761_v62 }
 0xc18   :  { %v3259_v21 = vpop.permute.xlu0 %3258  ;;  %6420 = vmatmul.mubr.msk.f32.gmra.mxu0 %vm423_vm3, %v8571_v19  ;;  %v3695_v51 = vpop.permute.xlu1 %3694 }
 0xc19   :  { %6473 = vmatpush3.xpose.msk.msra.mxu0 %vm423_vm3, %v3269_v5  ;;  %6422 = vmatprep.mubr.msk.f32.mxu0 %vm7131_vm0, %v9761_v62 }
 0xc1a   :  { %6474 = vmatprep.subr.mxu0 %v9761_v62 }
 0xc1c   :  { %v3261_v28 = vpop.permute.xlu0 %3260  ;;  %6423 = vmatmul.mubr.msk.f32.gmra.mxu0 %vm423_vm3, %v8565_v4  ;;  %v3693_v16 = vpop.permute.xlu1 %3692 }
 0xc1d   :  { %6475 = vmatpush3.xpose.msk.msra.mxu0 %vm423_vm3, %v3267_v18  ;;  %6425 = vmatprep.mubr.msk.f32.mxu0 %vm7131_vm0, %v9761_v62 }
 0xc1e   :  { %6476 = vmatprep.subr.mxu0 %v9761_v62 }
 0xc20   :  { %v3673_v6 = vpop.permute.xlu0 %3672  ;;  %6426 = vmatmul.mubr.msk.f32.gmra.mxu0 %vm423_vm3, %v8551_v60  ;;  %v3691_v61 = vpop.permute.xlu1 %3690 }
 0xc21   :  { %6477 = vmatpush3.xpose.msk.msra.mxu0 %vm423_vm3, %v3265_v7  ;;  %6428 = vmatprep.mubr.msk.f32.mxu0 %vm7131_vm0, %v9761_v62 }
 0xc22   :  { %6478 = vmatprep.subr.mxu0 %v9761_v62 }
 0xc24   :  { %v3675_v35 = vpop.permute.xlu0 %3674  ;;  %6429 = vmatmul.mubr.msk.f32.gmra.mxu0 %vm423_vm3, %v8557_v56  ;;  %v3689_v41 = vpop.permute.xlu1 %3688 }
 0xc25   :  { %6479 = vmatpush3.xpose.msk.msra.mxu0 %vm423_vm3, %v3263_v29  ;;  %6480 = vmatprep.mubr.msk.f32.mxu0 %vm7131_vm0, %v9761_v62 }
 0xc26   :  { %6536 = vmatprep.subr.mxu0 %v9761_v62 }
 0xc28   :  { %v3677_v2 = vpop.permute.xlu0 %3676  ;;  %6481 = vmatmul.mubr.msk.f32.vlgmr.msra.gmra.mxu0 %vm423_vm3, %v3249_v31  ;;  %v3687_v57 = vpop.permute.xlu1 %3686 }
 0xc29   :  { %6537 = vmatpush3.xpose.msk.msra.mxu0 %vm423_vm3, %v3699_v17  ;;  %6483 = vmatprep.mubr.msk.f32.mxu0 %vm7131_vm0, %v9761_v62 }
 0xc2a   :  { %6538 = vmatprep.subr.mxu0 %v9761_v62 }
 0xc2c   :  { %v3679_v63 = vpop.permute.xlu0 %3678  ;;  %6484 = vmatmul.mubr.msk.f32.gmra.mxu0 %vm423_vm3, %v3251_v38  ;;  %v4123_v20 = vpop.permute.xlu1 %4122 }
 0xc2d   :  { %6539 = vmatpush3.xpose.msk.msra.mxu0 %vm423_vm3, %v3697_v25  ;;  %6486 = vmatprep.mubr.msk.f32.mxu0 %vm7131_vm0, %v9761_v62 }
 0xc2e   :  { %6540 = vmatprep.subr.mxu0 %v9761_v62 }
 0xc30   :  { %v3681_v55 = vpop.permute.xlu0 %3680  ;;  %6487 = vmatmul.mubr.msk.f32.gmra.mxu0 %vm423_vm3, %v3253_v37  ;;  %v4121_v3 = vpop.permute.xlu1 %4120 }
 0xc31   :  { %6541 = vmatpush3.xpose.msk.msra.mxu0 %vm423_vm3, %v3695_v51  ;;  %6489 = vmatprep.mubr.msk.f32.mxu0 %vm7131_vm0, %v9761_v62 }
 0xc32   :  { %6542 = vmatprep.subr.mxu0 %v9761_v62 }
 0xc34   :  { %v3683_v26 = vpop.permute.xlu0 %3682  ;;  %6490 = vmatmul.mubr.msk.f32.gmra.mxu0 %vm423_vm3, %v3255_v59  ;;  %v4119_v24 = vpop.permute.xlu1 %4118 }
 0xc35   :  { %6543 = vmatpush3.xpose.msk.msra.mxu0 %vm423_vm3, %v3693_v16  ;;  %6492 = vmatprep.mubr.msk.f32.mxu0 %vm7131_vm0, %v9761_v62 }
 0xc36   :  { %6544 = vmatprep.subr.mxu0 %v9761_v62 }
 0xc38   :  { %v3685_v58 = vpop.permute.xlu0 %3684  ;;  %6493 = vmatmul.mubr.msk.f32.gmra.mxu0 %vm423_vm3, %v3257_v42  ;;  %v4117_v56 = vpop.permute.xlu1 %4116 }
 0xc39   :  { %6545 = vmatpush3.xpose.msk.msra.mxu0 %vm423_vm3, %v3691_v61  ;;  %6495 = vmatprep.mubr.msk.f32.mxu0 %vm7131_vm0, %v9761_v62 }
 0xc3a   :  { %6546 = vmatprep.subr.mxu0 %v9761_v62 }
 0xc3c   :  { %v4097_v22 = vpop.permute.xlu0 %4096  ;;  %6496 = vmatmul.mubr.msk.f32.gmra.mxu0 %vm423_vm3, %v3259_v21  ;;  %v4115_v14 = vpop.permute.xlu1 %4114 }
 0xc3d   :  { %6547 = vmatpush3.xpose.msk.msra.mxu0 %vm423_vm3, %v3689_v41  ;;  %6498 = vmatprep.mubr.msk.f32.mxu0 %vm7131_vm0, %v9761_v62 }
 0xc3e   :  { %6548 = vmatprep.subr.mxu0 %v9761_v62 }
 0xc40   :  { %v4101_v40 = vpop.permute.xlu0 %4100  ;;  %6499 = vmatmul.mubr.msk.f32.gmra.mxu0 %vm423_vm3, %v3261_v28  ;;  %v4113_v44 = vpop.permute.xlu1 %4112 }
 0xc41   :  { %6549 = vmatpush3.xpose.msk.msra.mxu0 %vm423_vm3, %v3687_v57  ;;  %6550 = vmatprep.mubr.msk.f32.mxu0 %vm7131_vm0, %v9761_v62 }
 0xc42   :  { %6606 = vmatprep.subr.mxu0 %v9761_v62 }
 0xc44   :  { %v4105_v49 = vpop.permute.xlu0 %4104  ;;  %6551 = vmatmul.mubr.msk.f32.vlgmr.msra.gmra.mxu0 %vm423_vm3, %v3673_v6  ;;  %v4111_v53 = vpop.permute.xlu1 %4110  ;;  %v9772_v6 = vld [vmem:[#allocation11_spill] sm:$0xff] }
 0xc45   :  { %6607 = vmatpush3.xpose.msk.msra.mxu0 %vm423_vm3, %v4123_v20  ;;  %6553 = vmatprep.mubr.msk.f32.mxu0 %vm7131_vm0, %v9761_v62 }
 0xc46   :  { %6608 = vmatprep.subr.mxu0 %v9761_v62 }
 0xc48   :  { %v4109_v1 = vpop.permute.xlu0 %4108  ;;  %6554 = vmatmul.mubr.msk.f32.gmra.mxu0 %vm423_vm3, %v3675_v35  ;;  %v4099_v0 = vpop.permute.xlu1 %4098 }
 0xc49   :  { %6609 = vmatpush3.xpose.msk.msra.mxu0 %vm423_vm3, %v4121_v3  ;;  %6556 = vmatprep.mubr.msk.f32.mxu0 %vm7131_vm0, %v9761_v62 }
 0xc4a   :  { %6610 = vmatprep.subr.mxu0 %v9761_v62 }
 0xc4c   :  { %v3108_v39 = vpop.permute.xlu0 %3107  ;;  %6557 = vmatmul.mubr.msk.f32.gmra.mxu0 %vm423_vm3, %v3677_v2  ;;  %v4103_v31 = vpop.permute.xlu1 %4102 }
 0xc4d   :  { %6611 = vmatpush3.xpose.msk.msra.mxu0 %vm423_vm3, %v4119_v24  ;;  %6559 = vmatprep.mubr.msk.f32.mxu0 %vm7131_vm0, %v9761_v62 }
 0xc4e   :  { %6612 = vmatprep.subr.mxu0 %v9761_v62 }
 0xc50   :  { %v3106_v23 = vpop.permute.xlu0 %3105  ;;  %6560 = vmatmul.mubr.msk.f32.gmra.mxu0 %vm423_vm3, %v3679_v63  ;;  %v4107_v38 = vpop.permute.xlu1 %4106 }
 0xc51   :  { %6613 = vmatpush3.xpose.msk.msra.mxu0 %vm423_vm3, %v4117_v56  ;;  %6562 = vmatprep.mubr.msk.f32.mxu0 %vm7131_vm0, %v9761_v62 }
 0xc52   :  { %6614 = vmatprep.subr.mxu0 %v9761_v62 }
 0xc54   :  { %v8818_v13 = vpop.permute.xlu0 %3503  ;;  %6563 = vmatmul.mubr.msk.f32.gmra.mxu0 %vm423_vm3, %v3681_v55  ;;  %v3110_v29 = vpop.permute.xlu1 %3109 }
 0xc55   :  { %6615 = vmatpush3.xpose.msk.msra.mxu0 %vm423_vm3, %v4115_v14  ;;  %6565 = vmatprep.mubr.msk.f32.mxu0 %vm7131_vm0, %v9761_v62 }
 0xc56   :  { %6616 = vmatprep.subr.mxu0 %v9761_v62 }
 0xc58   :  { %v8825_v5 = vpop.permute.xlu0 %3501  ;;  %6566 = vmatmul.mubr.msk.f32.gmra.mxu0 %vm423_vm3, %v3683_v26  ;;  %v3104_v17 = vpop.permute.xlu1 %3103 }
 0xc59   :  { %6617 = vmatpush3.xpose.msk.msra.mxu0 %vm423_vm3, %v4113_v44  ;;  %6568 = vmatprep.mubr.msk.f32.mxu0 %vm7131_vm0, %v9761_v62 }
 0xc5a   :  { %6618 = vmatprep.subr.mxu0 %v9761_v62 }
 0xc5c   :  { %v8832_v7 = vpop.permute.xlu0 %3499  ;;  %6569 = vmatmul.mubr.msk.f32.gmra.mxu0 %vm423_vm3, %v3685_v58  ;;  %v3102_v25 = vpop.permute.xlu1 %3101 }
 0xc5d   :  { %6619 = vmatpush3.xpose.msk.msra.mxu0 %vm423_vm3, %v4111_v53  ;;  %6620 = vmatprep.mubr.msk.f32.mxu0 %vm7131_vm0, %v9761_v62  ;;  %v9774_v53 = vld [vmem:[#allocation13_spill] sm:$0xff] }
 0xc5e   :  { %6676 = vmatprep.subr.mxu0 %v9761_v62 }
 0xc60   :  { %v8839_v15 = vpop.permute.xlu0 %3495  ;;  %6621 = vmatmul.mubr.msk.f32.vlgmr.msra.gmra.mxu0 %vm423_vm3, %v4097_v22  ;;  %v3100_v21 = vpop.permute.xlu1 %3099 }
 0xc61   :  { %6623 = vmatprep.mubr.msk.f32.mxu0 %vm7131_vm0, %v9761_v62 }
 0xc64   :  { %v8844_v54 = vpop.permute.xlu0 %3927  ;;  %6624 = vmatmul.mubr.msk.f32.gmra.mxu0 %vm423_vm3, %v4099_v0 }
 0xc65   :  { %6626 = vmatprep.mubr.msk.f32.mxu0 %vm7131_vm0, %v9761_v62 }
 0xc68   :  { %v8849_v18 = vpop.permute.xlu0 %3925  ;;  %6627 = vmatmul.mubr.msk.f32.gmra.mxu0 %vm423_vm3, %v4101_v40 }
 0xc69   :  { %6629 = vmatprep.mubr.msk.f32.mxu0 %vm7131_vm0, %v9761_v62 }
 0xc6c   :  { %v8854_v37 = vpop.permute.xlu0 %3923  ;;  %6630 = vmatmul.mubr.msk.f32.gmra.mxu0 %vm423_vm3, %v4103_v31 }
 0xc6d   :  { %6632 = vmatprep.mubr.msk.f32.mxu0 %vm7131_vm0, %v9761_v62 }
 0xc70   :  { %v8859_v59 = vpop.permute.xlu0 %3919  ;;  %6633 = vmatmul.mubr.msk.f32.gmra.mxu0 %vm423_vm3, %v4105_v49  ;;  %v9773_v49 = vld [vmem:[#allocation12_spill] sm:$0xff] }
 0xc71   :  { %6635 = vmatprep.mubr.msk.f32.mxu0 %vm7131_vm0, %v9761_v62 }
 0xc74   :  { %v3112_v42 = vpop.permute.xlu0 %3111  ;;  %6636 = vmatmul.mubr.msk.f32.gmra.mxu0 %vm423_vm3, %v4107_v38 }
 0xc75   :  { %6432 = vmatpush3.msra.mxu1 %v3112_v42  ;;  %6638 = vmatprep.mubr.msk.f32.mxu0 %vm7131_vm0, %v9761_v62 }
 0xc76   :  { %6433 = vmatprep.subr.mxu1 %v9761_v62 }
 0xc77   :  { %6434 = vmatpush3.msra.mxu1 %v3110_v29 }
 0xc78   :  { %6435 = vmatprep.subr.mxu1 %v9761_v62  ;;  %6639 = vmatmul.mubr.msk.f32.gmra.mxu0 %vm423_vm3, %v4109_v1 }
 0xc79   :  { %6436 = vmatpush3.msra.mxu1 %v3108_v39  ;;  %6684 = vmatprep.mubr.msk.f32.mxu0 %vm7131_vm0, %v9761_v62 }
 0xc7a   :  { %6437 = vmatprep.subr.mxu1 %v9761_v62 }
 0xc7b   :  { %6438 = vmatpush3.msra.mxu1 %v3106_v23 }
 0xc7c   :  { %6439 = vmatprep.subr.mxu1 %v9761_v62 }
 0xc7d   :  { %6440 = vmatpush3.msra.mxu1 %v3104_v17 }
 0xc7e   :  { %6441 = vmatprep.subr.mxu1 %v9761_v62 }
 0xc7f   :  { %6442 = vmatpush3.msra.mxu1 %v3102_v25 }
 0xc80   :  { %6443 = vmatprep.subr.mxu1 %v9761_v62 }
 0xc81   :  { %6444 = vmatpush3.msra.mxu1 %v3100_v21 }
 0xc82   :  { %6501 = vmatprep.subr.mxu1 %v9761_v62 }
 0xccc   :  { %v2974_v51 = vpop.f32.mrf.mxu0 }
 0xccd   :  { %v3008_v28 = vmul.f32 0.35355338, %v2974_v51 }
 0xcce   :  { %v6412_v16 = vpop.f32.mrf.mxu0 }
 0xccf   :  { %v8878_v61 = vadd.f32 %v3008_v28, %v9772_v6 }
 0xcd0   :  { %v2979_v35 = vpop.f32.mrf.mxu0 }
 0xcd1   :  { %v3009_v41 = vmul.f32 0.35355338, %v2979_v35  ;;  %v3022_v2 = vsel %vm566_vm7, %v8878_v61, -inf }
 0xcd2   :  { %3023 = vmax.xlane.f32.xlu1 %v3022_v2  ;;  %v6415_v57 = vpop.f32.mrf.mxu0 }
 0xcd3   :  { %v8883_v63 = vadd.f32 %v3009_v41, %v9772_v6 }
 0xcd4   :  { %v2984_v55 = vpop.f32.mrf.mxu0 }
 0xcd5   :  { %v3010_v20 = vmul.f32 0.35355338, %v2984_v55  ;;  %v3025_v26 = vsel %vm566_vm7, %v8883_v63, -inf }
 0xcd6   :  { %3026 = vmax.xlane.f32.xlu0 %v3025_v26  ;;  %v6418_v3 = vpop.f32.mrf.mxu0 }
 0xcd7   :  { %v8888_v58 = vadd.f32 %v3010_v20, %v9772_v6 }
 0xcd8   :  { %v2989_v22 = vpop.f32.mrf.mxu0 }
 0xcd9   :  { %v3011_v24 = vmul.f32 0.35355338, %v2989_v22  ;;  %v3028_v40 = vsel %vm566_vm7, %v8888_v58, -inf }
 0xcda   :  { %3029 = vmax.xlane.f32.xlu0 %v3028_v40  ;;  %v6421_v56 = vpop.f32.mrf.mxu0 }
 0xcdb   :  { %v8893_v1 = vadd.f32 %v3011_v24, %v9773_v49 }
 0xcdc   :  { %v2994_v14 = vpop.f32.mrf.mxu0 }
 0xcdd   :  { %v3012_v39 = vmul.f32 0.35355338, %v2994_v14  ;;  %v3031_v44 = vsel %vm566_vm7, %v8893_v1, -inf }
 0xcde   :  { %3032 = vmax.xlane.f32.xlu1 %v3031_v44  ;;  %v6424_v23 = vpop.f32.mrf.mxu0 }
 0xcdf   :  { %v8898_v0 = vadd.f32 %v3012_v39, %v9774_v53 }
 0xce0   :  { %v2999_v31 = vpop.f32.mrf.mxu0 }
 0xce1   :  { %v3013_v38 = vmul.f32 0.35355338, %v2999_v31  ;;  %v3034_v29 = vsel %vm566_vm7, %v8898_v0, -inf }
 0xce2   :  { %3035 = vmax.xlane.f32.xlu0 %v3034_v29  ;;  %v6427_v17 = vpop.f32.mrf.mxu0 }
 0xce3   :  { %v8903_v42 = vadd.f32 %v3013_v38, %v9774_v53 }
 0xce4   :  { %v3004_v25 = vpop.f32.mrf.mxu0 }
 0xce5   :  { %v3014_v21 = vmul.f32 0.35355338, %v3004_v25  ;;  %v3037_v51 = vsel %vm566_vm7, %v8903_v42, -inf }
 0xce6   :  { %3038 = vmax.xlane.f32.xlu1 %v3037_v51  ;;  %v6430_v28 = vpop.f32.mrf.mxu0 }
 0xce7   :  { %v8908_v16 = vadd.f32 %v3014_v21, %v9774_v53 }
 0xce8   :  { %v3370_v35 = vpop.f32.mrf.mxu0 }
 0xce9   :  { %v3404_v41 = vmul.f32 0.35355338, %v3370_v35  ;;  %v3040_v2 = vsel %vm566_vm7, %v8908_v16, -inf }
 0xcea   :  { %3041 = vmax.xlane.f32.xlu0 %v3040_v2  ;;  %v6482_v57 = vpop.f32.mrf.mxu0 }
 0xceb   :  { %v8913_v55 = vadd.f32 %v3404_v41, %v9772_v6 }
 0xcec   :  { %v3375_v20 = vpop.f32.mrf.mxu0 }
 0xced   :  { %v3405_v26 = vmul.f32 0.35355338, %v3375_v20  ;;  %v3418_v3 = vsel %vm566_vm7, %v8913_v55, -inf }
 0xcee   :  { %3419 = vmax.xlane.f32.xlu1 %v3418_v3  ;;  %v6485_v22 = vpop.f32.mrf.mxu0 }
 0xcef   :  { %v8918_v24 = vadd.f32 %v3405_v26, %v9772_v6 }
 0xcf0   :  { %v3380_v40 = vpop.f32.mrf.mxu0 }
 0xcf1   :  { %v3406_v56 = vmul.f32 0.35355338, %v3380_v40  ;;  %v3421_v14 = vsel %vm566_vm7, %v8918_v24, -inf }
 0xcf2   :  { %3422 = vmax.xlane.f32.xlu0 %v3421_v14  ;;  %v6488_v39 = vpop.f32.mrf.mxu0 }
 0xcf3   :  { %v8923_v44 = vadd.f32 %v3406_v56, %v9772_v6 }
 0xcf4   :  { %v3385_v23 = vpop.f32.mrf.mxu0 }
 0xcf5   :  { %v3407_v31 = vmul.f32 0.35355338, %v3385_v23  ;;  %v3424_v38 = vsel %vm566_vm7, %v8923_v44, -inf }
 0xcf6   :  { %3425 = vmax.xlane.f32.xlu1 %v3424_v38  ;;  %v6491_v29 = vpop.f32.mrf.mxu0 }
 0xcf7   :  { %v8928_v17 = vadd.f32 %v3407_v31, %v9773_v49 }
 0xcf8   :  { %v3390_v25 = vpop.f32.mrf.mxu0 }
 0xcf9   :  { %v3408_v21 = vmul.f32 0.35355338, %v3390_v25  ;;  %v3427_v51 = vsel %vm566_vm7, %v8928_v17, -inf }
 0xcfa   :  { %3428 = vmax.xlane.f32.xlu0 %v3427_v51  ;;  %v6494_v28 = vpop.f32.mrf.mxu0 }
 0xcfb   :  { %v8933_v35 = vadd.f32 %v3408_v21, %v9774_v53 }
 0xcfc   :  { %v3395_v41 = vpop.f32.mrf.mxu0 }
 0xcfd   :  { %v3409_v2 = vmul.f32 0.35355338, %v3395_v41  ;;  %v3430_v57 = vsel %vm566_vm7, %v8933_v35, -inf }
 0xcfe   :  { %3431 = vmax.xlane.f32.xlu1 %v3430_v57  ;;  %v6497_v20 = vpop.f32.mrf.mxu0 }
 0xcff   :  { %v8938_v26 = vadd.f32 %v3409_v2, %v9774_v53 }
 0xd00   :  { %v3400_v3 = vpop.f32.mrf.mxu0 }
 0xd01   :  { %v3410_v22 = vmul.f32 0.35355338, %v3400_v3  ;;  %v3433_v40 = vsel %vm566_vm7, %v8938_v26, -inf }
 0xd02   :  { %3434 = vmax.xlane.f32.xlu0 %v3433_v40  ;;  %v6500_v56 = vpop.f32.mrf.mxu0 }
 0xd03   :  { %v8943_v14 = vadd.f32 %v3410_v22, %v9774_v53 }
 0xd04   :  { %v3794_v39 = vpop.f32.mrf.mxu0 }
 0xd05   :  { %v3828_v23 = vmul.f32 0.35355338, %v3794_v39  ;;  %v3436_v31 = vsel %vm566_vm7, %v8943_v14, -inf }
 0xd06   :  { %3437 = vmax.xlane.f32.xlu1 %v3436_v31  ;;  %v6552_v38 = vpop.f32.mrf.mxu0 }
 0xd07   :  { %v8948_v29 = vadd.f32 %v3828_v23, %v9772_v6 }
 0xd08   :  { %v3799_v25 = vpop.f32.mrf.mxu0 }
 0xd09   :  { %v3829_v21 = vmul.f32 0.35355338, %v3799_v25  ;;  %v3842_v51 = vsel %vm566_vm7, %v8948_v29, -inf }
 0xd0a   :  { %3843 = vmax.xlane.f32.xlu0 %v3842_v51  ;;  %v6555_v28 = vpop.f32.mrf.mxu0 }
 0xd0b   :  { %v8953_v41 = vadd.f32 %v3829_v21, %v9772_v6 }
 0xd0c   :  { %v3804_v2 = vpop.f32.mrf.mxu0 }
 0xd0d   :  { %v3830_v57 = vmul.f32 0.35355338, %v3804_v2  ;;  %v3845_v20 = vsel %vm566_vm7, %v8953_v41, -inf }
 0xd0e   :  { %3846 = vmax.xlane.f32.xlu1 %v3845_v20  ;;  %v6558_v3 = vpop.f32.mrf.mxu0 }
 0xd0f   :  { %v8958_v22 = vadd.f32 %v3830_v57, %v9772_v6 }
 0xd10   :  { %v3809_v40 = vpop.f32.mrf.mxu0 }
 0xd11   :  { %v3831_v56 = vmul.f32 0.35355338, %v3809_v40  ;;  %v3848_v39 = vsel %vm566_vm7, %v8958_v22, -inf }
 0xd12   :  { %3849 = vmax.xlane.f32.xlu0 %v3848_v39  ;;  %v6561_v23 = vpop.f32.mrf.mxu0 }
 0xd13   :  { %v8963_v31 = vadd.f32 %v3831_v56, %v9773_v49 }
 0xd14   :  { %v3814_v38 = vpop.f32.mrf.mxu0 }
 0xd15   :  { %v3832_v25 = vmul.f32 0.35355338, %v3814_v38  ;;  %v3851_v21 = vsel %vm566_vm7, %v8963_v31, -inf }
 0xd16   :  { %3852 = vmax.xlane.f32.xlu1 %v3851_v21  ;;  %v6564_v51 = vpop.f32.mrf.mxu0 }
 0xd17   :  { %v8968_v28 = vadd.f32 %v3832_v25, %v9774_v53 }
 0xd18   :  { %v3819_v2 = vpop.f32.mrf.mxu0 }
 0xd19   :  { %v3833_v57 = vmul.f32 0.35355338, %v3819_v2  ;;  %v3854_v20 = vsel %vm566_vm7, %v8968_v28, -inf }
 0xd1a   :  { %3855 = vmax.xlane.f32.xlu0 %v3854_v20  ;;  %v6567_v3 = vpop.f32.mrf.mxu0 }
 0xd1b   :  { %v8973_v40 = vadd.f32 %v3833_v57, %v9774_v53 }
 0xd1c   :  { %v3824_v56 = vpop.f32.mrf.mxu0 }
 0xd1d   :  { %v3834_v39 = vmul.f32 0.35355338, %v3824_v56  ;;  %v3857_v23 = vsel %vm566_vm7, %v8973_v40, -inf }
 0xd1e   :  { %3858 = vmax.xlane.f32.xlu1 %v3857_v23  ;;  %v6570_v38 = vpop.f32.mrf.mxu0 }
 0xd1f   :  { %v8978_v25 = vadd.f32 %v3834_v39, %v9774_v53 }
 0xd20   :  { %v4218_v21 = vpop.f32.mrf.mxu0 }
 0xd21   :  { %v4252_v51 = vmul.f32 0.35355338, %v4218_v21  ;;  %v3860_v2 = vsel %vm566_vm7, %v8978_v25, -inf }
 0xd22   :  { %3861 = vmax.xlane.f32.xlu0 %v3860_v2  ;;  %v6622_v20 = vpop.f32.mrf.mxu0 }
 0xd23   :  { %v8983_v57 = vadd.f32 %v4252_v51, %v9772_v6 }
 0xd24   :  { %v4223_v3 = vpop.f32.mrf.mxu0 }
 0xd25   :  { %v4253_v56 = vmul.f32 0.35355338, %v4223_v3  ;;  %v4266_v33 = vsel %vm566_vm7, %v8983_v57, -inf }
 0xd26   :  { %4267 = vmax.xlane.f32.xlu1 %v4266_v33  ;;  %v6625_v23 = vpop.f32.mrf.mxu0 }
 0xd27   :  { %v8988_v39 = vadd.f32 %v4253_v56, %v9772_v6 }
 0xd28   :  { %v4228_v38 = vpop.f32.mrf.mxu0 }
 0xd29   :  { %v4254_v21 = vmul.f32 0.35355338, %v4228_v38  ;;  %v4269_v43 = vsel %vm566_vm7, %v8988_v39, -inf }
 0xd2a   :  { %4270 = vmax.xlane.f32.xlu0 %v4269_v43  ;;  %v6628_v2 = vpop.f32.mrf.mxu0 }
 0xd2b   :  { %v8993_v51 = vadd.f32 %v4254_v21, %v9772_v6 }
 0xd2c   :  { %v4233_v20 = vpop.f32.mrf.mxu0 }
 0xd2d   :  { %v4255_v3 = vmul.f32 0.35355338, %v4233_v20  ;;  %v4272_v9 = vsel %vm566_vm7, %v8993_v51, -inf }
 0xd2e   :  { %4273 = vmax.xlane.f32.xlu0 %v4272_v9  ;;  %v6631_v33 = vpop.f32.mrf.mxu0 }
 0xd2f   :  { %v8998_v56 = vadd.f32 %v4255_v3, %v9773_v49 }
 0xd30   :  { %v4238_v23 = vpop.f32.mrf.mxu0 }
 0xd31   :  { %v4256_v38 = vmul.f32 0.35355338, %v4238_v23  ;;  %v4275_v34 = vsel %vm566_vm7, %v8998_v56, -inf }
 0xd32   :  { %4276 = vmax.xlane.f32.xlu0 %v4275_v34  ;;  %v6634_v43 = vpop.f32.mrf.mxu0 }
 0xd33   :  { %v9003_v6 = vadd.f32 %v4256_v38, %v9774_v53 }
 0xd34   :  { %v4243_v21 = vpop.f32.mrf.mxu0 }
 0xd35   :  { %v4257_v2 = vmul.f32 0.35355338, %v4243_v21  ;;  %v4278_v20 = vsel %vm566_vm7, %v9003_v6, -inf  ;;  %v9017_v21 = vpop.permute.xlu1 %3505 }
 0xd36   :  { %4279 = vmax.xlane.f32.xlu0 %v4278_v20  ;;  %v6637_v9 = vpop.f32.mrf.mxu0 }
 0xd37   :  { %v9008_v49 = vadd.f32 %v4257_v2, %v9774_v53  ;;  %v9021_v2 = vpop.permute.xlu0 %3507 }
 0xd38   :  { %v4248_v3 = vpop.f32.mrf.mxu0 }
 0xd39   :  { %v4258_v33 = vmul.f32 0.35355338, %v4248_v3  ;;  %v4281_v23 = vsel %vm566_vm7, %v9008_v49, -inf  ;;  %v9019_v20 = vpop.permute.xlu1 %3497 }
 0xd3a   :  { %4282 = vmax.xlane.f32.xlu1 %v4281_v23  ;;  %v6640_v34 = vpop.f32.mrf.mxu0 }
 0xd3b   :  { %v9013_v38 = vadd.f32 %v4258_v33, %v9774_v53  ;;  %v9027_v3 = vpop.permute.xlu0 %3931 }
 0xd3d   :  { %v4284_v43 = vsel %vm566_vm7, %v9013_v38, -inf  ;;  %v9023_v9 = vpop.permute.xlu1 %3929 }
 0xd3e   :  { %4285 = vmax.xlane.f32.xlu0 %v4284_v43 }
 0xd3f   :  { %v9033_v53 = vpop.permute.xlu0 %4355 }
 0xd41   :  { %v9029_v23 = vpop.permute.xlu1 %3921 }
 0xd54   :  { %4351 = vrot.lane.b32.xlu0 %v8565_v4, %s7142_s0 }
 0xd58   :  { %4349 = vrot.lane.b32.xlu0 %v8571_v19, %s7142_s0 }
 0xd5b   :  { %v3024_v33 = vpop.xlane.xlu1 %3023 }
 0xd5c   :  { %v3043_v34 = vsub.f32 %v8878_v61, %v3024_v33 }
 0xd5e   :  { %v3050_v43 = vmul.f32 1.442695, %v3043_v34 }
 0xd5f   :  { %v3027_v12 = vpop.xlane.xlu0 %3026 }
 0xd60   :  { %6958 = vpow2.f32 %v3050_v43  ;;  %v3044_v30 = vsub.f32 %v8883_v63, %v3027_v12 }
 0xd62   :  { %v3052_v10 = vmul.f32 1.442695, %v3044_v30 }
 0xd63   :  { %v3030_v32 = vpop.xlane.xlu0 %3029 }
 0xd64   :  { %6960 = vpow2.f32 %v3052_v10  ;;  %v3045_v4 = vsub.f32 %v8888_v58, %v3030_v32 }
 0xd66   :  { %v3054_v11 = vmul.f32 1.442695, %v3045_v4 }
 0xd67   :  { %v3033_v46 = vpop.xlane.xlu1 %3032 }
 0xd68   :  { %6962 = vpow2.f32 %v3054_v11  ;;  %v3046_v19 = vsub.f32 %v8893_v1, %v3033_v46 }
 0xd6a   :  { %v3056_v8 = vmul.f32 1.442695, %v3046_v19 }
 0xd6b   :  { %v3036_v36 = vpop.xlane.xlu0 %3035 }
 0xd6c   :  { %6964 = vpow2.f32 %v3056_v8  ;;  %v3047_v61 = vsub.f32 %v8898_v0, %v3036_v36 }
 0xd6d   :  { %v9040_v33 = vpop.eup %6958 }
 0xd6e   :  { %v3058_v34 = vmul.f32 1.442695, %v3047_v61  ;;  %v3064_v30 = vsel %vm566_vm7, %v9040_v33, 0.0 }
 0xd6f   :  { %3065 = vadd.xlane.f32.xlu1 %v3064_v30  ;;  %v3039_v10 = vpop.xlane.xlu1 %3038 }
 0xd70   :  { %6966 = vpow2.f32 %v3058_v34  ;;  %v3048_v12 = vsub.f32 %v8903_v42, %v3039_v10 }
 0xd71   :  { %v9045_v32 = vpop.eup %6960 }
 0xd72   :  { %v3060_v11 = vmul.f32 1.442695, %v3048_v12  ;;  %v3067_v46 = vsel %vm566_vm7, %v9045_v32, 0.0 }
 0xd73   :  { %v3042_v8 = vpop.xlane.xlu0 %3041  ;;  %3068 = vadd.xlane.f32.xlu1 %v3067_v46 }
 0xd74   :  { %6968 = vpow2.f32 %v3060_v11  ;;  %v3049_v36 = vsub.f32 %v8908_v16, %v3042_v8 }
 0xd75   :  { %v9050_v63 = vpop.eup %6962 }
 0xd76   :  { %v3062_v58 = vmul.f32 1.442695, %v3049_v36  ;;  %v3070_v1 = vsel %vm566_vm7, %v9050_v63, 0.0 }
 0xd77   :  { %3071 = vadd.xlane.f32.xlu1 %v3070_v1  ;;  %v3420_v43 = vpop.xlane.xlu1 %3419 }
 0xd78   :  { %6970 = vpow2.f32 %v3062_v58 }
 0xd79   :  { %v9054_v0 = vpop.eup %6964 }
 0xd7a   :  { %v3073_v42 = vsel %vm566_vm7, %v9054_v0, 0.0 }
 0xd7b   :  { %v3423_v4 = vpop.xlane.xlu0 %3422  ;;  %3074 = vadd.xlane.f32.xlu1 %v3073_v42 }
 0xd7c   :  { %v3440_v19 = vsub.f32 %v8918_v24, %v3423_v4 }
 0xd7d   :  { %v9059_v61 = vpop.eup %6966 }
 0xd7e   :  { %v3448_v16 = vmul.f32 1.442695, %v3440_v19  ;;  %v3076_v34 = vsel %vm566_vm7, %v9059_v61, 0.0 }
 0xd7f   :  { %3077 = vadd.xlane.f32.xlu1 %v3076_v34  ;;  %v3426_v30 = vpop.xlane.xlu1 %3425 }
 0xd80   :  { %6972 = vpow2.f32 %v3448_v16  ;;  %v3441_v10 = vsub.f32 %v8923_v44, %v3426_v30 }
 0xd81   :  { %v9064_v12 = vpop.eup %6968 }
 0xd82   :  { %v3450_v11 = vmul.f32 1.442695, %v3441_v10  ;;  %v3079_v46 = vsel %vm566_vm7, %v9064_v12, 0.0 }
 0xd83   :  { %v3429_v8 = vpop.xlane.xlu0 %3428  ;;  %3080 = vadd.xlane.f32.xlu1 %v3079_v46 }
 0xd84   :  { %6974 = vpow2.f32 %v3450_v11  ;;  %v3442_v24 = vsub.f32 %v8928_v17, %v3429_v8 }
 0xd85   :  { %v9069_v36 = vpop.eup %6970 }
 0xd86   :  { %v3452_v58 = vmul.f32 1.442695, %v3442_v24  ;;  %v3082_v1 = vsel %vm566_vm7, %v9069_v36, 0.0  ;;  %v3439_v24 = vsub.f32 %v8913_v55, %v3420_v43 }
 0xd87   :  { %3083 = vadd.xlane.f32.xlu0 %v3082_v1  ;;  %v3432_v44 = vpop.xlane.xlu1 %3431 }
 0xd88   :  { %6976 = vpow2.f32 %v3452_v58 }
 0xd8b   :  { %v3435_v1 = vpop.xlane.xlu0 %3434 }
 0xd8d   :  { %v9073_v42 = vpop.eup %6972 }
 0xd8e   :  { %v3463_v4 = vsel %vm566_vm7, %v9073_v42, 0.0 }
 0xd8f   :  { %3464 = vadd.xlane.f32.xlu0 %v3463_v4  ;;  %v3438_v19 = vpop.xlane.xlu1 %3437 }
 0xd90   :  { %v3445_v16 = vsub.f32 %v8943_v14, %v3438_v19  ;;  %v3443_v19 = vsub.f32 %v8933_v35, %v3432_v44 }
 0xd91   :  { %v9078_v34 = vpop.eup %6974 }
 0xd92   :  { %v3458_v17 = vmul.f32 1.442695, %v3445_v16  ;;  %v3466_v30 = vsel %vm566_vm7, %v9078_v34, 0.0 }
 0xd93   :  { %3467 = vadd.xlane.f32.xlu0 %v3466_v30  ;;  %v3844_v16 = vpop.xlane.xlu0 %3843  ;;  %v3444_v30 = vsub.f32 %v8938_v26, %v3435_v1 }
 0xd94   :  { %6978 = vpow2.f32 %v3458_v17  ;;  %4353 = vrot.lane.b32.xlu1 %v8551_v60, %s7142_s0  ;;  %v3446_v60 = vmul.f32 1.442695, %v3439_v24  ;;  %v3454_v17 = vmul.f32 1.442695, %v3443_v19 }
 0xd95   :  { %v9084_v10 = vpop.eup %6976  ;;  %v3456_v43 = vmul.f32 1.442695, %v3444_v30 }
 0xd96   :  { %v3469_v11 = vsel %vm566_vm7, %v9084_v10, 0.0 }
 0xd97   :  { %3470 = vadd.xlane.f32.xlu0 %v3469_v11  ;;  %v3847_v46 = vpop.xlane.xlu1 %3846 }
 0xd98   :  { %v3864_v14 = vsub.f32 %v8953_v41, %v3847_v46  ;;  %v3863_v46 = vsub.f32 %v8948_v29, %v3844_v16 }
 0xd9a   :  { %v3872_v8 = vmul.f32 1.442695, %v3864_v14  ;;  %v3870_v35 = vmul.f32 1.442695, %v3863_v46 }
 0xd9b   :  { %v3850_v11 = vpop.xlane.xlu0 %3849 }
 0xd9c   :  { %6980 = vpow2.f32 %v3872_v8  ;;  %v3865_v44 = vsub.f32 %v8958_v22, %v3850_v11 }
 0xd9d   :  { %6982 = vpow2.f32 %v3446_v60 }
 0xd9e   :  { %6984 = vpow2.f32 %v3454_v17  ;;  %v3874_v26 = vmul.f32 1.442695, %v3865_v44 }
 0xd9f   :  { %6986 = vpow2.f32 %v3456_v43  ;;  %v3853_v8 = vpop.xlane.xlu1 %3852 }
 0xda0   :  { %6988 = vpow2.f32 %v3870_v35  ;;  %v3866_v1 = vsub.f32 %v8963_v31, %v3853_v8 }
 0xda1   :  { %v9090_v58 = vpop.eup %6978  ;;  %6990 = vpow2.f32 %v3874_v26 }
 0xda2   :  { %v3478_v4 = vsel %vm566_vm7, %v9090_v58, 0.0  ;;  %v3876_v19 = vmul.f32 1.442695, %v3866_v1 }
 0xda3   :  { %3479 = vadd.xlane.f32.xlu0 %v3478_v4  ;;  %v3856_v14 = vpop.xlane.xlu0 %3855 }
 0xda4   :  { %v3867_v17 = vsub.f32 %v8968_v28, %v3856_v14  ;;  %6992 = vpow2.f32 %v3876_v19 }
 0xda6   :  { %v3878_v22 = vmul.f32 1.442695, %v3867_v17 }
 0xda7   :  { %v3859_v30 = vpop.xlane.xlu1 %3858 }
 0xda8   :  { %v3868_v11 = vsub.f32 %v8973_v40, %v3859_v30  ;;  %6994 = vpow2.f32 %v3878_v22 }
 0xda9   :  { %v9096_v41 = vpop.eup %6980 }
 0xdaa   :  { %v3887_v55 = vsel %vm566_vm7, %v9096_v41, 0.0  ;;  %v9103_v4 = vpop.eup %6982  ;;  %v3880_v28 = vmul.f32 1.442695, %v3868_v11 }
 0xdab   :  { %3888 = vadd.xlane.f32.xlu0 %v3887_v55  ;;  %v3862_v24 = vpop.xlane.xlu0 %3861  ;;  %v3460_v29 = vsel %vm566_vm7, %v9103_v4, 0.0  ;;  %v9108_v16 = vpop.eup %6984 }
 0xdac   :  { %v3472_v31 = vsel %vm566_vm7, %v9108_v16, 0.0  ;;  %v9113_v55 = vpop.eup %6986  ;;  %6996 = vpow2.f32 %v3880_v28 }
 0xdad   :  { %v3475_v35 = vsel %vm566_vm7, %v9113_v55, 0.0  ;;  %v9118_v44 = vpop.eup %6988 }
 0xdae   :  { %v3884_v1 = vsel %vm566_vm7, %v9118_v44, 0.0  ;;  %v9125_v19 = vpop.eup %6990 }
 0xdaf   :  { %v4268_v43 = vpop.xlane.xlu1 %4267 }
 0xdb0   :  { %v4287_v14 = vsub.f32 %v8983_v57, %v4268_v43  ;;  %v3869_v57 = vsub.f32 %v8978_v25, %v3862_v24 }
 0xdb1   :  { %v9131_v30 = vpop.eup %6992 }
 0xdb2   :  { %v4294_v8 = vmul.f32 1.442695, %v4287_v14  ;;  %v3893_v25 = vsel %vm566_vm7, %v9131_v30, 0.0 }
 0xdb3   :  { %v4271_v60 = vpop.xlane.xlu0 %4270 }
 0xdb4   :  { %6998 = vpow2.f32 %v4294_v8  ;;  %v4288_v11 = vsub.f32 %v8988_v39, %v4271_v60 }
 0xdb5   :  { %v9137_v24 = vpop.eup %6994 }
 0xdb6   :  { %v4296_v28 = vmul.f32 1.442695, %v4288_v11  ;;  %v3896_v60 = vsel %vm566_vm7, %v9137_v24, 0.0 }
 0xdb7   :  { %v4274_v46 = vpop.xlane.xlu0 %4273 }
 0xdb8   :  { %3461 = vadd.xlane.f32.xlu1 %v3460_v29  ;;  %v4289_v26 = vsub.f32 %v8993_v51, %v4274_v46  ;;  %v3882_v51 = vmul.f32 1.442695, %v3869_v57 }
 0xdba   :  { %v4298_v17 = vmul.f32 1.442695, %v4289_v26 }
 0xdbb   :  { %v4277_v40 = vpop.xlane.xlu0 %4276 }
 0xdbc   :  { %3473 = vadd.xlane.f32.xlu1 %v3472_v31  ;;  %v4290_v29 = vsub.f32 %v8998_v56, %v4277_v40  ;;  %7000 = vpow2.f32 %v4298_v17 }
 0xdbd   :  { %7002 = vpow2.f32 %v3882_v51 }
 0xdbe   :  { %v4300_v31 = vmul.f32 1.442695, %v4290_v29 }
 0xdbf   :  { %v4280_v22 = vpop.xlane.xlu0 %4279 }
 0xdc0   :  { %3476 = vadd.xlane.f32.xlu1 %v3475_v35  ;;  %v4291_v43 = vsub.f32 %v9003_v6, %v4280_v22  ;;  %7004 = vpow2.f32 %v4300_v31  ;;  %v9143_v6 = vpop.eup %6996 }
 0xdc1   :  { %4347 = vrot.lane.b32.xlu0 %v8555_v45, %s7142_s0  ;;  %v3890_v45 = vsel %vm566_vm7, %v9125_v19, 0.0  ;;  %7006 = vpow2.f32 %v4296_v28  ;;  %v3899_v26 = vsel %vm566_vm7, %v9143_v6, 0.0 }
 0xdc2   :  { %v4302_v35 = vmul.f32 1.442695, %v4291_v43 }
 0xdc3   :  { %v4283_v46 = vpop.xlane.xlu1 %4282 }
 0xdc4   :  { %3885 = vadd.xlane.f32.xlu1 %v3884_v1  ;;  %v4292_v14 = vsub.f32 %v9008_v49, %v4283_v46  ;;  %7008 = vpow2.f32 %v4302_v35  ;;  %v9147_v1 = vpop.eup %6998 }
 0xdc5   :  { %v4308_v49 = vsel %vm566_vm7, %v9147_v1, 0.0 }
 0xdc6   :  { %v4304_v40 = vmul.f32 1.442695, %v4292_v14 }
 0xdc7   :  { %v4286_v56 = vpop.xlane.xlu0 %4285 }
 0xdc8   :  { %3891 = vadd.xlane.f32.xlu1 %v3890_v45  ;;  %v4293_v39 = vsub.f32 %v9013_v38, %v4286_v56  ;;  %7010 = vpow2.f32 %v4304_v40  ;;  %v7104_v40 = vld [vmem:[%s9721_s2 + $0x50] sm:$0xff] }
 0xdc9   :  { %v9151_v38 = vpop.eup %7000 }
 0xdca   :  { %v4306_v8 = vmul.f32 1.442695, %v4293_v39  ;;  %v9153_v57 = vpop.eup %7002  ;;  %v4314_v17 = vsel %vm566_vm7, %v9151_v38, 0.0  ;;  %v7103_v39 = vld [vmem:[%s9721_s2 + $0x60] sm:$0xff] }
 0xdcb   :  { %v3902_v22 = vsel %vm566_vm7, %v9153_v57, 0.0 }
 0xdcc   :  { %3894 = vadd.xlane.f32.xlu1 %v3893_v25  ;;  %7012 = vpow2.f32 %v4306_v8 }
 0xdcd   :  { %v9157_v29 = vpop.eup %7004 }
 0xdce   :  { %v9159_v45 = vpop.eup %7006  ;;  %v4317_v51 = vsel %vm566_vm7, %v9157_v29, 0.0 }
 0xdcf   :  { %v4311_v43 = vsel %vm566_vm7, %v9159_v45, 0.0 }
 0xdd0   :  { %3897 = vadd.xlane.f32.xlu1 %v3896_v60 }
 0xdd1   :  { %v9165_v11 = vpop.eup %7008 }
 0xdd2   :  { %v4320_v46 = vsel %vm566_vm7, %v9165_v11, 0.0 }
 0xdd4   :  { %3900 = vadd.xlane.f32.xlu1 %v3899_v26 }
 0xdd5   :  { %v9167_v31 = vpop.eup %7010 }
 0xdd6   :  { %v4323_v28 = vsel %vm566_vm7, %v9167_v31, 0.0 }
 0xdd8   :  { %4309 = vadd.xlane.f32.xlu1 %v4308_v49  ;;  %v9195_v49 = vpop.permute.xlu0 %4351 }
 0xdd9   :  { %v9173_v25 = vpop.eup %7012 }
 0xdda   :  { %v4326_v56 = vsel %vm566_vm7, %v9173_v25, 0.0 }
 0xddc   :  { %4315 = vadd.xlane.f32.xlu1 %v4314_v17 }
 0xde0   :  { %3903 = vadd.xlane.f32.xlu0 %v3902_v22  ;;  %4318 = vadd.xlane.f32.xlu1 %v4317_v51 }
 0xde4   :  { %4312 = vadd.xlane.f32.xlu0 %v4311_v43  ;;  %4321 = vadd.xlane.f32.xlu1 %v4320_v46  ;;  %v9208_v46 = vpop.permute.xlu0 %4349 }
 0xde8   :  { %4327 = vadd.xlane.f32.xlu0 %v4326_v56  ;;  %4324 = vadd.xlane.f32.xlu1 %v4323_v28 }
 0xdf8   :  { %v3066_v14 = vpop.xlane.xlu1 %3065 }
 0xdf9   :  { %7014 = vrcp.f32 %v3066_v14  ;;  %4345 = vrot.lane.b32.xlu1 %v8577_v52, %s7142_s0  ;;  %v7105_v52 = vld [vmem:[%s9721_s2 + $0x70] sm:$0xff] }
 0xdfc   :  { %v3069_v35 = vpop.xlane.xlu1 %3068 }
 0xdfd   :  { %7016 = vrcp.f32 %v3069_v35  ;;  %4539 = vrot.lane.b32.xlu1 %v7103_v39, %s7144_s25 }
 0xdfe   :  { %4343 = vrot.lane.b32.xlu0 %v8563_v27, %s7142_s0  ;;  %v7106_v27 = vld [vmem:[%s9721_s2 + $0x40] sm:$0xff] }
 0xe00   :  { %v3072_v60 = vpop.xlane.xlu1 %3071 }
 0xe01   :  { %7018 = vrcp.f32 %v3072_v60  ;;  %4537 = vrot.lane.b32.xlu1 %v7104_v40, %s7144_s25 }
 0xe02   :  { %4541 = vrot.lane.b32.xlu0 %v7105_v52, %s7144_s25 }
 0xe04   :  { %v3075_v8 = vpop.xlane.xlu1 %3074 }
 0xe05   :  { %7020 = vrcp.f32 %v3075_v8 }
 0xe06   :  { %v7015_v26 = vpop.eup %7014  ;;  %4535 = vrot.lane.b32.xlu0 %v7106_v27, %s7144_s25 }
 0xe07   :  { %v3086_v17 = vmul.f32 %v7015_v26, %v9040_v33 }
 0xe08   :  { %v3078_v22 = vpop.xlane.xlu1 %3077 }
 0xe09   :  { %7022 = vrcp.f32 %v3078_v22  ;;  %6446 = vmatmul.mubr.msk.f32.vlgmr.msra.gmra.mxu1 %vm566_vm7, %v3086_v17 }
 0xe0a   :  { %v7017_v51 = vpop.eup %7016  ;;  %6502 = vmatpush3.msra.mxu1 %v9021_v2  ;;  %6448 = vmatprep.mubr.msk.f32.mxu1 %vm7131_vm0, %v9761_v62 }
 0xe0b   :  { %6503 = vmatprep.subr.mxu1 %v9761_v62  ;;  %v3088_v43 = vmul.f32 %v7017_v51, %v9045_v32 }
 0xe0c   :  { %6504 = vmatpush3.msra.mxu1 %v9017_v21  ;;  %v3081_v56 = vpop.xlane.xlu1 %3080 }
 0xe0d   :  { %6505 = vmatprep.subr.mxu1 %v9761_v62  ;;  %7024 = vrcp.f32 %v3081_v56  ;;  %6449 = vmatmul.mubr.msk.f32.gmra.mxu1 %vm566_vm7, %v3088_v43 }
 0xe0e   :  { %v7019_v33 = vpop.eup %7018  ;;  %6506 = vmatpush3.msra.mxu1 %v8818_v13  ;;  %6451 = vmatprep.mubr.msk.f32.mxu1 %vm7131_vm0, %v9761_v62 }
 0xe0f   :  { %6507 = vmatprep.subr.mxu1 %v9761_v62  ;;  %v3090_v2 = vmul.f32 %v7019_v33, %v9050_v63 }
 0xe10   :  { %6508 = vmatpush3.msra.mxu1 %v8825_v5  ;;  %v3084_v32 = vpop.xlane.xlu0 %3083 }
 0xe11   :  { %7026 = vrcp.f32 %v3084_v32  ;;  %6509 = vmatprep.subr.mxu1 %v9761_v62  ;;  %6452 = vmatmul.mubr.msk.f32.gmra.mxu1 %vm566_vm7, %v3090_v2 }
 0xe12   :  { %v7021_v21 = vpop.eup %7020  ;;  %6510 = vmatpush3.msra.mxu1 %v8832_v7  ;;  %6454 = vmatprep.mubr.msk.f32.mxu1 %vm7131_vm0, %v9761_v62 }
 0xe13   :  { %6511 = vmatprep.subr.mxu1 %v9761_v62  ;;  %v3092_v13 = vmul.f32 %v7021_v21, %v9054_v0 }
 0xe14   :  { %6512 = vmatpush3.msra.mxu1 %v9019_v20 }
 0xe15   :  { %6513 = vmatprep.subr.mxu1 %v9761_v62  ;;  %6455 = vmatmul.mubr.msk.f32.gmra.mxu1 %vm566_vm7, %v3092_v13 }
 0xe16   :  { %v7023_v5 = vpop.eup %7022  ;;  %6514 = vmatpush3.msra.mxu1 %v8839_v15  ;;  %6457 = vmatprep.mubr.msk.f32.mxu1 %vm7131_vm0, %v9761_v62 }
 0xe17   :  { %v3094_v7 = vmul.f32 %v7023_v5, %v9059_v61  ;;  %6571 = vmatprep.subr.mxu1 %v9761_v62  ;;  %v9245_v61 = vpop.permute.xlu1 %4353 }
 0xe18   :  { %v3465_v28 = vpop.xlane.xlu0 %3464 }
 0xe19   :  { %6458 = vmatmul.mubr.msk.f32.gmra.mxu1 %vm566_vm7, %v3094_v7 }
 0xe1a   :  { %v7025_v63 = vpop.eup %7024  ;;  %6460 = vmatprep.mubr.msk.f32.mxu1 %vm7131_vm0, %v9761_v62 }
 0xe1b   :  { %v3096_v20 = vmul.f32 %v7025_v63, %v9064_v12 }
 0xe1c   :  { %v3468_v35 = vpop.xlane.xlu0 %3467 }
 0xe1d   :  { %6461 = vmatmul.mubr.msk.f32.gmra.mxu1 %vm566_vm7, %v3096_v20 }
 0xe1e   :  { %v7027_v0 = vpop.eup %7026  ;;  %6463 = vmatprep.mubr.msk.f32.mxu1 %vm7131_vm0, %v9761_v62 }
 0xe1f   :  { %v3098_v15 = vmul.f32 %v7027_v0, %v9069_v36 }
 0xe20   :  { %v3471_v39 = vpop.xlane.xlu0 %3470 }
 0xe21   :  { %6464 = vmatmul.mubr.msk.f32.gmra.mxu1 %vm566_vm7, %v3098_v15 }
 0xe22   :  { %6515 = vmatprep.mubr.msk.f32.mxu1 %vm7131_vm0, %v9761_v62 }
 0xe2c   :  { %v3480_v22 = vpop.xlane.xlu0 %3479 }
 0xe41   :  { %v3462_v14 = vpop.xlane.xlu1 %3461 }
 0xe42   :  { %7028 = vrcp.f32 %v3462_v14 }
 0xe43   :  { %7030 = vrcp.f32 %v3465_v28 }
 0xe44   :  { %7032 = vrcp.f32 %v3468_v35 }
 0xe45   :  { %v3474_v12 = vpop.xlane.xlu1 %3473  ;;  %7034 = vrcp.f32 %v3471_v39 }
 0xe46   :  { %7036 = vrcp.f32 %v3474_v12 }
 0xe49   :  { %v3477_v60 = vpop.xlane.xlu1 %3476 }
 0xe4a   :  { %7038 = vrcp.f32 %v3477_v60 }
 0xe4b   :  { %7040 = vrcp.f32 %v3480_v22 }
 0xe4d   :  { %v3886_v40 = vpop.xlane.xlu1 %3885 }
 0xe4e   :  { %7042 = vrcp.f32 %v3886_v40 }
 0xe4f   :  { %v7029_v52 = vpop.eup %7028 }
 0xe50   :  { %v3482_v36 = vmul.f32 %v7029_v52, %v9103_v4  ;;  %v7031_v8 = vpop.eup %7030 }
 0xe51   :  { %v3892_v26 = vpop.xlane.xlu1 %3891  ;;  %v3484_v27 = vmul.f32 %v7031_v8, %v9073_v42  ;;  %v7033_v17 = vpop.eup %7032 }
 0xe52   :  { %6516 = vmatmul.mubr.msk.f32.vlgmr.msra.gmra.mxu1 %vm566_vm7, %v3482_v36  ;;  %v7035_v42 = vpop.eup %7034 }
 0xe53   :  { %6572 = vmatpush3.msra.mxu1 %v9027_v3  ;;  %6518 = vmatprep.mubr.msk.f32.mxu1 %vm7131_vm0, %v9761_v62  ;;  %v3486_v3 = vmul.f32 %v7033_v17, %v9078_v34  ;;  %v3889_v34 = vpop.xlane.xlu0 %3888 }
 0xe54   :  { %6573 = vmatprep.subr.mxu1 %v9761_v62  ;;  %7044 = vrcp.f32 %v3889_v34 }
 0xe55   :  { %6574 = vmatpush3.msra.mxu1 %v9023_v9  ;;  %v3895_v4 = vpop.xlane.xlu1 %3894  ;;  %v7037_v9 = vpop.eup %7036  ;;  %7046 = vrcp.f32 %v3892_v26 }
 0xe56   :  { %6575 = vmatprep.subr.mxu1 %v9761_v62  ;;  %6519 = vmatmul.mubr.msk.f32.gmra.mxu1 %vm566_vm7, %v3484_v27  ;;  %7048 = vrcp.f32 %v3895_v4 }
 0xe57   :  { %6576 = vmatpush3.msra.mxu1 %v8844_v54  ;;  %6521 = vmatprep.mubr.msk.f32.mxu1 %vm7131_vm0, %v9761_v62  ;;  %v3488_v54 = vmul.f32 %v7035_v42, %v9084_v10  ;;  %v7039_v10 = vpop.eup %7038 }
 0xe58   :  { %6577 = vmatprep.subr.mxu1 %v9761_v62  ;;  %v7041_v56 = vpop.eup %7040 }
 0xe59   :  { %6578 = vmatpush3.msra.mxu1 %v8849_v18  ;;  %v3898_v51 = vpop.xlane.xlu1 %3897 }
 0xe5a   :  { %6579 = vmatprep.subr.mxu1 %v9761_v62  ;;  %6522 = vmatmul.mubr.msk.f32.gmra.mxu1 %vm566_vm7, %v3486_v3  ;;  %7050 = vrcp.f32 %v3898_v51 }
 0xe5b   :  { %6580 = vmatpush3.msra.mxu1 %v8854_v37  ;;  %6524 = vmatprep.mubr.msk.f32.mxu1 %vm7131_vm0, %v9761_v62  ;;  %v3490_v37 = vmul.f32 %v7037_v9, %v9108_v16  ;;  %v3494_v16 = vmul.f32 %v7041_v56, %v9090_v58  ;;  %v7043_v2 = vpop.eup %7042 }
 0xe5c   :  { %6581 = vmatprep.subr.mxu1 %v9761_v62 }
 0xe5d   :  { %6582 = vmatpush3.msra.mxu1 %v9029_v23  ;;  %v3901_v18 = vpop.xlane.xlu1 %3900  ;;  %v3492_v23 = vmul.f32 %v7039_v10, %v9113_v55  ;;  %v3906_v55 = vmul.f32 %v7043_v2, %v9118_v44 }
 0xe5e   :  { %6583 = vmatprep.subr.mxu1 %v9761_v62  ;;  %6525 = vmatmul.mubr.msk.f32.gmra.mxu1 %vm566_vm7, %v3488_v54  ;;  %7052 = vrcp.f32 %v3901_v18 }
 0xe5f   :  { %6584 = vmatpush3.msra.mxu1 %v8859_v59  ;;  %6527 = vmatprep.mubr.msk.f32.mxu1 %vm7131_vm0, %v9761_v62  ;;  %v4348_v59 = vpop.permute.xlu0 %4347 }
 0xe60   :  { %6641 = vmatprep.subr.mxu1 %v9761_v62 }
 0xe61   :  { %v4310_v43 = vpop.xlane.xlu1 %4309  ;;  %v7045_v13 = vpop.eup %7044 }
 0xe62   :  { %6528 = vmatmul.mubr.msk.f32.gmra.mxu1 %vm566_vm7, %v3490_v37  ;;  %v3908_v58 = vmul.f32 %v7045_v13, %v9096_v41  ;;  %v7047_v63 = vpop.eup %7046 }
 0xe63   :  { %6530 = vmatprep.mubr.msk.f32.mxu1 %vm7131_vm0, %v9761_v62  ;;  %v3910_v20 = vmul.f32 %v7047_v63, %v9125_v19  ;;  %v7049_v41 = vpop.eup %7048 }
 0xe64   :  { %v3912_v0 = vmul.f32 %v7049_v41, %v9131_v30 }
 0xe65   :  { %v4316_v33 = vpop.xlane.xlu1 %4315 }
 0xe66   :  { %6531 = vmatmul.mubr.msk.f32.gmra.mxu1 %vm566_vm7, %v3492_v23 }
 0xe67   :  { %6533 = vmatprep.mubr.msk.f32.mxu1 %vm7131_vm0, %v9761_v62  ;;  %v7051_v15 = vpop.eup %7050 }
 0xe69   :  { %v3904_v32 = vpop.xlane.xlu0 %3903  ;;  %v4319_v21 = vpop.xlane.xlu1 %4318 }
 0xe6a   :  { %6534 = vmatmul.mubr.msk.f32.gmra.mxu1 %vm566_vm7, %v3494_v16  ;;  %7054 = vrcp.f32 %v3904_v32 }
 0xe6b   :  { %6585 = vmatprep.mubr.msk.f32.mxu1 %vm7131_vm0, %v9761_v62  ;;  %7056 = vrcp.f32 %v4310_v43 }
 0xe6d   :  { %v4322_v5 = vpop.xlane.xlu1 %4321  ;;  %v4313_v7 = vpop.xlane.xlu0 %4312 }
 0xe6e   :  { %6586 = vmatmul.mubr.msk.f32.vlgmr.msra.gmra.mxu1 %vm566_vm7, %v3906_v55  ;;  %7058 = vrcp.f32 %v4313_v7 }
 0xe6f   :  { %6642 = vmatpush3.msra.mxu1 %v9033_v53  ;;  %6588 = vmatprep.mubr.msk.f32.mxu1 %vm7131_vm0, %v9761_v62  ;;  %7060 = vrcp.f32 %v4316_v33 }
 0xe70   :  { %6643 = vmatprep.subr.mxu1 %v9761_v62  ;;  %7062 = vrcp.f32 %v4319_v21 }
 0xe71   :  { %6644 = vmatpush3.msra.mxu1 %v9245_v61  ;;  %v4325_v44 = vpop.xlane.xlu1 %4324  ;;  %v4328_v53 = vpop.xlane.xlu0 %4327  ;;  %7064 = vrcp.f32 %v4322_v5 }
 0xe72   :  { %6645 = vmatprep.subr.mxu1 %v9761_v62  ;;  %6589 = vmatmul.mubr.msk.f32.gmra.mxu1 %vm566_vm7, %v3908_v58  ;;  %v7053_v61 = vpop.eup %7052  ;;  %7066 = vrcp.f32 %v4325_v44 }
 0xe73   :  { %6646 = vmatpush3.msra.mxu1 %v9195_v49  ;;  %6591 = vmatprep.mubr.msk.f32.mxu1 %vm7131_vm0, %v9761_v62  ;;  %v3916_v30 = vmul.f32 %v7053_v61, %v9143_v6  ;;  %7068 = vrcp.f32 %v4328_v53 }
 0xe74   :  { %6647 = vmatprep.subr.mxu1 %v9761_v62 }
 0xe75   :  { %6648 = vmatpush3.msra.mxu1 %v9208_v46  ;;  %v4346_v49 = vpop.permute.xlu1 %4345  ;;  %v4344_v19 = vpop.permute.xlu0 %4343  ;;  %v3914_v46 = vmul.f32 %v7051_v15, %v9137_v24 }
 0xe76   :  { %6649 = vmatprep.subr.mxu1 %v9761_v62  ;;  %6592 = vmatmul.mubr.msk.f32.gmra.mxu1 %vm566_vm7, %v3910_v20 }
 0xe77   :  { %6650 = vmatpush3.msra.mxu1 %v4348_v59  ;;  %6594 = vmatprep.mubr.msk.f32.mxu1 %vm7131_vm0, %v9761_v62  ;;  %v7055_v28 = vpop.eup %7054 }
 0xe78   :  { %6651 = vmatprep.subr.mxu1 %v9761_v62  ;;  %v3918_v24 = vmul.f32 %v7055_v28, %v9153_v57  ;;  %v7057_v14 = vpop.eup %7056 }
 0xe79   :  { %6652 = vmatpush3.msra.mxu1 %v4346_v49  ;;  %v4330_v35 = vmul.f32 %v7057_v14, %v9147_v1  ;;  %v4540_v34 = vpop.permute.xlu1 %4539  ;;  %v4542_v18 = vpop.permute.xlu0 %4541 }
 0xe7a   :  { %6653 = vmatprep.subr.mxu1 %v9761_v62  ;;  %6595 = vmatmul.mubr.msk.f32.gmra.mxu1 %vm566_vm7, %v3912_v0 }
 0xe7b   :  { %6654 = vmatpush3.msra.mxu1 %v4344_v19  ;;  %6597 = vmatprep.mubr.msk.f32.mxu1 %vm7131_vm0, %v9761_v62  ;;  %v7059_v12 = vpop.eup %7058 }
 0xe7c   :  { %6705 = vmatprep.subr.mxu1 %v9761_v62  ;;  %v4332_v6 = vmul.f32 %v7059_v12, %v9159_v45  ;;  %v7061_v39 = vpop.eup %7060  ;;  %6677 = vmatpush3.msra.mxu0 %v4542_v18 }
 0xe7d   :  { %v4334_v57 = vmul.f32 %v7061_v39, %v9151_v38  ;;  %v7063_v1 = vpop.eup %7062  ;;  %6678 = vmatprep.subr.mxu0 %v9761_v62  ;;  %v4538_v37 = vpop.permute.xlu1 %4537 }
 0xe7e   :  { %6598 = vmatmul.mubr.msk.f32.gmra.mxu1 %vm566_vm7, %v3914_v46  ;;  %v4336_v60 = vmul.f32 %v7063_v1, %v9157_v29  ;;  %v7065_v40 = vpop.eup %7064  ;;  %6679 = vmatpush3.msra.mxu0 %v4540_v34  ;;  %v4536_v10 = vpop.permute.xlu0 %4535 }
 0xe7f   :  { %6600 = vmatprep.mubr.msk.f32.mxu1 %vm7131_vm0, %v9761_v62  ;;  %v4338_v45 = vmul.f32 %v7065_v40, %v9165_v11  ;;  %v7067_v52 = vpop.eup %7066  ;;  %6680 = vmatprep.subr.mxu0 %v9761_v62 }
 0xe80   :  { %v4340_v38 = vmul.f32 %v7067_v52, %v9167_v31  ;;  %v7069_v36 = vpop.eup %7068  ;;  %6681 = vmatpush3.msra.mxu0 %v4538_v37 }
 0xe81   :  { %v4342_v29 = vmul.f32 %v7069_v36, %v9173_v25  ;;  %6682 = vmatprep.subr.mxu0 %v9761_v62 }
 0xe82   :  { %6601 = vmatmul.mubr.msk.f32.gmra.mxu1 %vm566_vm7, %v3916_v30  ;;  %6683 = vmatpush3.msra.mxu0 %v4536_v10 }
 0xe83   :  { %6603 = vmatprep.mubr.msk.f32.mxu1 %vm7131_vm0, %v9761_v62  ;;  %6734 = vmatprep.subr.mxu0 %v9761_v62 }
 0xe86   :  { %6604 = vmatmul.mubr.msk.f32.gmra.mxu1 %vm566_vm7, %v3918_v24 }
 0xe87   :  { %6655 = vmatprep.mubr.msk.f32.mxu1 %vm7131_vm0, %v9761_v62 }
 0xe8a   :  { %6656 = vmatmul.mubr.msk.f32.vlgmr.msra.gmra.mxu1 %vm566_vm7, %v4330_v35 }
 0xe8b   :  { %6658 = vmatprep.mubr.msk.f32.mxu1 %vm7131_vm0, %v9761_v62 }
 0xe8e   :  { %6659 = vmatmul.mubr.msk.f32.gmra.mxu1 %vm566_vm7, %v4332_v6 }
 0xe8f   :  { %6661 = vmatprep.mubr.msk.f32.mxu1 %vm7131_vm0, %v9761_v62 }
 0xe92   :  { %6662 = vmatmul.mubr.msk.f32.gmra.mxu1 %vm566_vm7, %v4334_v57 }
 0xe93   :  { %6664 = vmatprep.mubr.msk.f32.mxu1 %vm7131_vm0, %v9761_v62 }
 0xe96   :  { %6665 = vmatmul.mubr.msk.f32.gmra.mxu1 %vm566_vm7, %v4336_v60 }
 0xe97   :  { %6667 = vmatprep.mubr.msk.f32.mxu1 %vm7131_vm0, %v9761_v62 }
 0xe9a   :  { %6668 = vmatmul.mubr.msk.f32.gmra.mxu1 %vm566_vm7, %v4338_v45 }
 0xe9b   :  { %6670 = vmatprep.mubr.msk.f32.mxu1 %vm7131_vm0, %v9761_v62 }
 0xe9e   :  { %6671 = vmatmul.mubr.msk.f32.gmra.mxu1 %vm566_vm7, %v4340_v38 }
 0xe9f   :  { %6673 = vmatprep.mubr.msk.f32.mxu1 %vm7131_vm0, %v9761_v62 }
 0xea2   :  { %6674 = vmatmul.mubr.msk.f32.gmra.mxu1 %vm566_vm7, %v4342_v29 }
 0xea3   :  { %6713 = vmatprep.mubr.msk.f32.mxu1 %vm7131_vm0, %v9761_v62 }
 0xec9   :  { %v3207_v11 = vpop.f32.mrf.mxu1 }
 0xeca   :  { %3241 = vst.msk [vmem:[#allocation2] sm:$0xff] %vm423_vm3, %v3207_v11 }
 0xecb   :  { %v6447_v8 = vpop.f32.mrf.mxu1 }
 0xecd   :  { %v3212_v26 = vpop.f32.mrf.mxu1 }
 0xece   :  { %3242 = vst.msk [vmem:[#allocation2 + $0x8] sm:$0xff] %vm423_vm3, %v3212_v26 }
 0xecf   :  { %v6450_v31 = vpop.f32.mrf.mxu1 }
 0xed1   :  { %v3217_v27 = vpop.f32.mrf.mxu1 }
 0xed2   :  { %3243 = vst.msk [vmem:[#allocation2 + $0x10] sm:$0xff] %vm423_vm3, %v3217_v27 }
 0xed3   :  { %v6453_v17 = vpop.f32.mrf.mxu1 }
 0xed5   :  { %v3222_v22 = vpop.f32.mrf.mxu1 }
 0xed6   :  { %3244 = vst.msk [vmem:[#allocation2 + $0x18] sm:$0xff] %vm423_vm3, %v3222_v22 }
 0xed7   :  { %v6456_v25 = vpop.f32.mrf.mxu1 }
 0xed9   :  { %v3227_v4 = vpop.f32.mrf.mxu1 }
 0xeda   :  { %3245 = vst.msk [vmem:[#allocation2 + $0x20] sm:$0xff] %vm423_vm3, %v3227_v4 }
 0xedb   :  { %v6459_v3 = vpop.f32.mrf.mxu1 }
 0xedd   :  { %v3232_v42 = vpop.f32.mrf.mxu1 }
 0xede   :  { %3246 = vst.msk [vmem:[#allocation2 + $0x28] sm:$0xff] %vm423_vm3, %v3232_v42 }
 0xedf   :  { %v6462_v51 = vpop.f32.mrf.mxu1 }
 0xee1   :  { %v3237_v54 = vpop.f32.mrf.mxu1 }
 0xee2   :  { %3247 = vst.msk [vmem:[#allocation2 + $0x30] sm:$0xff] %vm423_vm3, %v3237_v54 }
 0xee3   :  { %v6465_v9 = vpop.f32.mrf.mxu1 }
 0xf12   :  { %v3603_v43 = vpop.f32.mrf.mxu1 }
 0xf13   :  { %3644 = vrot.lane.b32.xlu1 %v3603_v43, %s7145_s8 }
 0xf14   :  { %v6517_v23 = vpop.f32.mrf.mxu1 }
 0xf16   :  { %v3608_v56 = vpop.f32.mrf.mxu1 }
 0xf17   :  { %3646 = vrot.lane.b32.xlu1 %v3608_v56, %s7145_s8 }
 0xf18   :  { %v6520_v59 = vpop.f32.mrf.mxu1 }
 0xf1a   :  { %v3613_v33 = vpop.f32.mrf.mxu1 }
 0xf1b   :  { %3648 = vrot.lane.b32.xlu0 %v3613_v33, %s7145_s8 }
 0xf1c   :  { %v6523_v16 = vpop.f32.mrf.mxu1 }
 0xf1e   :  { %v3618_v2 = vpop.f32.mrf.mxu1 }
 0xf1f   :  { %3650 = vrot.lane.b32.xlu0 %v3618_v2, %s7145_s8 }
 0xf20   :  { %v6526_v32 = vpop.f32.mrf.mxu1 }
 0xf22   :  { %v3623_v21 = vpop.f32.mrf.mxu1 }
 0xf24   :  { %v6529_v55 = vpop.f32.mrf.mxu1 }
 0xf26   :  { %v3628_v13 = vpop.f32.mrf.mxu1 }
 0xf28   :  { %v6532_v5 = vpop.f32.mrf.mxu1 }
 0xf29   :  { %v9775_v5 = vsub.s32 1, %v7320_v47 }
 0xf2a   :  { %v3633_v7 = vpop.f32.mrf.mxu1 }
 0xf2c   :  { %v6535_v58 = vpop.f32.mrf.mxu1 }
 0xf2e   :  { %v4027_v63 = vpop.f32.mrf.mxu1 }
 0xf2f   :  { %4068 = vrot.lane.b32.xlu1 %v4027_v63, %s7146_s9 }
 0xf30   :  { %v6587_v44 = vpop.f32.mrf.mxu1 }
 0xf32   :  { %v4032_v53 = vpop.f32.mrf.mxu1 }
 0xf33   :  { %4070 = vrot.lane.b32.xlu0 %v4032_v53, %s7146_s9 }
 0xf34   :  { %v6590_v20 = vpop.f32.mrf.mxu1 }
 0xf36   :  { %v4037_v41 = vpop.f32.mrf.mxu1 }
 0xf37   :  { %4072 = vrot.lane.b32.xlu1 %v4037_v41, %s7146_s9 }
 0xf38   :  { %v6593_v49 = vpop.f32.mrf.mxu1 }
 0xf3a   :  { %v4042_v0 = vpop.f32.mrf.mxu1 }
 0xf3b   :  { %4074 = vrot.lane.b32.xlu1 %v4042_v0, %s7146_s9 }
 0xf3c   :  { %v6596_v15 = vpop.f32.mrf.mxu1 }
 0xf3e   :  { %v4047_v19 = vpop.f32.mrf.mxu1 }
 0xf40   :  { %v6599_v46 = vpop.f32.mrf.mxu1 }
 0xf42   :  { %v4052_v61 = vpop.f32.mrf.mxu1 }
 0xf44   :  { %v6602_v30 = vpop.f32.mrf.mxu1 }
 0xf46   :  { %v4057_v28 = vpop.f32.mrf.mxu1 }
 0xf48   :  { %v6605_v24 = vpop.f32.mrf.mxu1 }
 0xf4a   :  { %v4451_v14 = vpop.f32.mrf.mxu1 }
 0xf4b   :  { %4492 = vrot.lane.b32.xlu1 %v4451_v14, %s7147_s10 }
 0xf4c   :  { %v6657_v35 = vpop.f32.mrf.mxu1 }
 0xf4e   :  { %v4456_v12 = vpop.f32.mrf.mxu1 }
 0xf4f   :  { %3652 = vrot.lane.b32.xlu1 %v3623_v21, %s7145_s8  ;;  %4494 = vrot.lane.b32.xlu0 %v4456_v12, %s7147_s10 }
 0xf50   :  { %v6660_v6 = vpop.f32.mrf.mxu1 }
 0xf51   :  { %v9777_v6 = vld [vmem:[#allocation7_spill] sm:$0xff] }
 0xf52   :  { %v4461_v39 = vpop.f32.mrf.mxu1 }
 0xf53   :  { %4076 = vrot.lane.b32.xlu0 %v4047_v19, %s7146_s9  ;;  %4496 = vrot.lane.b32.xlu1 %v4461_v39, %s7147_s10 }
 0xf54   :  { %v6663_v57 = vpop.f32.mrf.mxu1 }
 0xf56   :  { %v4466_v1 = vpop.f32.mrf.mxu1 }
 0xf57   :  { %4078 = vrot.lane.b32.xlu1 %v4052_v61, %s7146_s9  ;;  %4498 = vrot.lane.b32.xlu0 %v4466_v1, %s7147_s10 }
 0xf58   :  { %v6666_v60 = vpop.f32.mrf.mxu1 }
 0xf5a   :  { %v4471_v40 = vpop.f32.mrf.mxu1 }
 0xf5b   :  { %3654 = vrot.lane.b32.xlu0 %v3628_v13, %s7145_s8  ;;  %4500 = vrot.lane.b32.xlu1 %v4471_v40, %s7147_s10  ;;  %v9433_v13 = vld [vmem:[%s9723_s4 + $0x8] sm:$0xff] }
 0xf5c   :  { %v6669_v45 = vpop.f32.mrf.mxu1  ;;  %v9778_v40 = vld [vmem:[#allocation8_spill] sm:$0xff] }
 0xf5e   :  { %v4476_v52 = vpop.f32.mrf.mxu1 }
 0xf5f   :  { %3656 = vrot.lane.b32.xlu1 %v3633_v7, %s7145_s8  ;;  %4502 = vrot.lane.b32.xlu0 %v4476_v52, %s7147_s10  ;;  %v4530_v7 = vrot.slane %v9433_v13, %v9775_v5 }
 0xf60   :  { %v6672_v38 = vpop.f32.mrf.mxu1 }
 0xf62   :  { %v4481_v36 = vpop.f32.mrf.mxu1 }
 0xf63   :  { %4080 = vrot.lane.b32.xlu0 %v4057_v28, %s7146_s9  ;;  %4504 = vrot.lane.b32.xlu1 %v4481_v36, %s7147_s10  ;;  %v9776_v28 = vld [vmem:[#allocation6_spill] sm:$0xff]  ;;  %s7148_s10 = smov [#allocation3]  }
 0xf64   :  { %v6675_v29 = vpop.f32.mrf.mxu1  ;;  %s5337_s23 = sshll.u32 %s7148_s10, 4  ;;  %s5338_s23 = int_to_ptr.vmem [resolvable:$true] %s5337_s23 }
 0xf65   :  { %s7108_s24 = scalar_lea.vmem %s5338_s23, 32  ;;  %p7113_p1 = scmp.lt.s32.totalorder %s5338_s23, %s5338_s23 }
 0xf66   :  { %p7109_p0 = scmp.ne.s32.totalorder %s5338_s23, %s7108_s24  ;;  %p7114_p2 = scmp.lt.s32.totalorder %s7108_s24, %s7108_s24 }
 0xf68   :  { %p7115_p3 = por %p7114_p2, %p7113_p1 }
 0xf6a   :  { %p7116_p4 = pnand %p7115_p3, %p7109_p0 }
 0xf85   :  { %v3645_v11 = vpop.permute.xlu1 %3644 }
 0xf86   :  { %3665 = vst.msk [vmem:[#allocation2] sm:$0xff] %vm1210_vm15, %v3645_v11  ;;  %v9779_v11 = vld [vmem:[#allocation9_spill] sm:$0xff] }
 0xf89   :  { %v3647_v8 = vpop.permute.xlu1 %3646 }
 0xf8a   :  { %3666 = vst.msk [vmem:[#allocation2 + $0x8] sm:$0xff] %vm1210_vm15, %v3647_v8 }
 0xf8d   :  { %v3649_v26 = vpop.permute.xlu0 %3648 }
 0xf8e   :  { %3667 = vst.msk [vmem:[#allocation2 + $0x10] sm:$0xff] %vm1210_vm15, %v3649_v26 }
 0xf91   :  { %v3651_v31 = vpop.permute.xlu0 %3650 }
 0xf92   :  { %3668 = vst.msk [vmem:[#allocation2 + $0x18] sm:$0xff] %vm1210_vm15, %v3651_v31 }
 0xfa1   :  { %v4069_v27 = vpop.permute.xlu1 %4068 }
 0xfa2   :  { %4089 = vst.msk [vmem:[#allocation2] sm:$0xff] %vm1635_vm1, %v4069_v27 }
 0xfa5   :  { %v4071_v17 = vpop.permute.xlu0 %4070 }
 0xfa6   :  { %4090 = vst.msk [vmem:[#allocation2 + $0x8] sm:$0xff] %vm1635_vm1, %v4071_v17 }
 0xfa9   :  { %v4073_v22 = vpop.permute.xlu1 %4072 }
 0xfaa   :  { %4091 = vst.msk [vmem:[#allocation2 + $0x10] sm:$0xff] %vm1635_vm1, %v4073_v22  ;;  %v9780_v22 = vld [vmem:[#allocation14_spill] sm:$0xff] }
 0xfad   :  { %v4075_v25 = vpop.permute.xlu1 %4074 }
 0xfae   :  { %4092 = vst.msk [vmem:[#allocation2 + $0x18] sm:$0xff] %vm1635_vm1, %v4075_v25 }
 0xfbd   :  { %v4493_v4 = vpop.permute.xlu1 %4492 }
 0xfbe   :  { %4513 = vst.msk [vmem:[#allocation2] sm:$0xff] %vm2060_vm4, %v4493_v4 }
 0xfc1   :  { %v3653_v3 = vpop.permute.xlu1 %3652  ;;  %v4495_v42 = vpop.permute.xlu0 %4494 }
 0xfc2   :  { %3669 = vst.msk [vmem:[#allocation2 + $0x20] sm:$0xff] %vm1210_vm15, %v3653_v3 }
 0xfc3   :  { %4514 = vst.msk [vmem:[#allocation2 + $0x8] sm:$0xff] %vm2060_vm4, %v4495_v42 }
 0xfc5   :  { %v4077_v51 = vpop.permute.xlu0 %4076  ;;  %v4497_v54 = vpop.permute.xlu1 %4496  ;;  %v4520_v9 = vld [vmem:[#allocation2] sm:$0xff] }
 0xfc6   :  { %4093 = vst.msk [vmem:[#allocation2 + $0x20] sm:$0xff] %vm1635_vm1, %v4077_v51  ;;  %6685 = vmatmul.mubr.msk.f32.vlgmr.msra.gmra.mxu0 %vm280_vm2, %v4520_v9 }
 0xfc7   :  { %4515 = vst.msk [vmem:[#allocation2 + $0x10] sm:$0xff] %vm2060_vm4, %v4497_v54  ;;  %6687 = vmatprep.mubr.msk.f32.mxu0 %vm7131_vm0, %v9761_v62 }
 0xfc9   :  { %v4079_v34 = vpop.permute.xlu1 %4078  ;;  %v4499_v18 = vpop.permute.xlu0 %4498 }
 0xfca   :  { %v4521_v37 = vld [vmem:[#allocation2 + $0x8] sm:$0xff]  ;;  %4516 = vst.msk [vmem:[#allocation2 + $0x18] sm:$0xff] %vm2060_vm4, %v4499_v18 }
 0xfcb   :  { %6688 = vmatmul.mubr.msk.f32.gmra.mxu0 %vm280_vm2, %v4521_v37 }
 0xfcc   :  { %6690 = vmatprep.mubr.msk.f32.mxu0 %vm7131_vm0, %v9761_v62 }
 0xfcd   :  { %v3655_v10 = vpop.permute.xlu0 %3654  ;;  %v4501_v43 = vpop.permute.xlu1 %4500 }
 0xfce   :  { %v4522_v23 = vld [vmem:[#allocation2 + $0x10] sm:$0xff]  ;;  %3670 = vst.msk [vmem:[#allocation2 + $0x28] sm:$0xff] %vm1210_vm15, %v3655_v10 }
 0xfcf   :  { %4517 = vst.msk [vmem:[#allocation2 + $0x20] sm:$0xff] %vm2060_vm4, %v4501_v43  ;;  %6691 = vmatmul.mubr.msk.f32.gmra.mxu0 %vm280_vm2, %v4522_v23 }
 0xfd0   :  { %4094 = vst.msk [vmem:[#allocation2 + $0x28] sm:$0xff] %vm1635_vm1, %v4079_v34  ;;  %6693 = vmatprep.mubr.msk.f32.mxu0 %vm7131_vm0, %v9761_v62 }
 0xfd1   :  { %v3657_v56 = vpop.permute.xlu1 %3656  ;;  %v4503_v59 = vpop.permute.xlu0 %4502  ;;  %v4523_v33 = vld [vmem:[#allocation2 + $0x18] sm:$0xff] }
 0xfd2   :  { %3671 = vst.msk [vmem:[#allocation2 + $0x30] sm:$0xff] %vm1210_vm15, %v3657_v56 }
 0xfd3   :  { %4518 = vst.msk [vmem:[#allocation2 + $0x28] sm:$0xff] %vm2060_vm4, %v4503_v59  ;;  %6694 = vmatmul.mubr.msk.f32.gmra.mxu0 %vm280_vm2, %v4523_v33 }
 0xfd4   :  { %6696 = vmatprep.mubr.msk.f32.mxu0 %vm7131_vm0, %v9761_v62 }
 0xfd5   :  { %v4081_v16 = vpop.permute.xlu0 %4080  ;;  %v4505_v2 = vpop.permute.xlu1 %4504 }
 0xfd6   :  { %v4524_v32 = vld [vmem:[#allocation2 + $0x20] sm:$0xff]  ;;  %4095 = vst.msk [vmem:[#allocation2 + $0x30] sm:$0xff] %vm1635_vm1, %v4081_v16 }
 0xfd7   :  { %6697 = vmatmul.mubr.msk.f32.gmra.mxu0 %vm280_vm2, %v4524_v32  ;;  %4519 = vst.msk [vmem:[#allocation2 + $0x30] sm:$0xff] %vm2060_vm4, %v4505_v2 }
 0xfd8   :  { %6699 = vmatprep.mubr.msk.f32.mxu0 %vm7131_vm0, %v9761_v62 }
 0xfda   :  { %v4525_v21 = vld [vmem:[#allocation2 + $0x28] sm:$0xff] }
 0xfdb   :  { %6700 = vmatmul.mubr.msk.f32.gmra.mxu0 %vm280_vm2, %v4525_v21 }
 0xfdc   :  { %6702 = vmatprep.mubr.msk.f32.mxu0 %vm7131_vm0, %v9761_v62 }
 0xfde   :  { %v4526_v55 = vld [vmem:[#allocation2 + $0x30] sm:$0xff] }
 0xfdf   :  { %6703 = vmatmul.mubr.msk.f32.gmra.mxu0 %vm280_vm2, %v4526_v55 }
 0xfe0   :  { %6750 = vmatprep.mubr.msk.f32.mxu0 %vm7131_vm0, %v9761_v62 }
0x1086   :  { %v4634_v58 = vpop.f32.mrf.mxu0 }
0x1087   :  { %v4635_v63 = vadd.f32 %v4634_v58, %v4530_v7 }
0x1088   :  { %v6686_v44 = vpop.f32.mrf.mxu0 }
0x1089   :  { %v4668_v53 = vadd.f32 %v4635_v63, %v8498_v50 }
0x108b   :  { %v4639_v20 = vpop.f32.mrf.mxu0  ;;  %v4675_v49 = vsel %vm280_vm2, %v4668_v53, 0.0 }
0x108c   :  { %v4640_v41 = vadd.f32 %v4639_v20, %v4530_v7  ;;  %4676 = vadd.xlane.f32.xlu0 %v4675_v49 }
0x108d   :  { %v6689_v0 = vpop.f32.mrf.mxu0 }
0x108e   :  { %v4669_v15 = vadd.f32 %v4640_v41, %v8505_v48 }
0x108f   :  { %v4644_v19 = vpop.f32.mrf.mxu0 }
0x1090   :  { %v4645_v46 = vadd.f32 %v4644_v19, %v4530_v7  ;;  %v4678_v61 = vsel %vm280_vm2, %v4669_v15, 0.0 }
0x1091   :  { %v6692_v30 = vpop.f32.mrf.mxu0  ;;  %4679 = vadd.xlane.f32.xlu1 %v4678_v61 }
0x1092   :  { %v4670_v24 = vadd.f32 %v4645_v46, %v9776_v28 }
0x1093   :  { %v4649_v14 = vpop.f32.mrf.mxu0 }
0x1094   :  { %v4650_v35 = vadd.f32 %v4649_v14, %v4530_v7  ;;  %v4681_v50 = vsel %vm280_vm2, %v4670_v24, 0.0  ;;  %v5469_v14 = vld [vmem:[%s9721_s2 + $0x68] sm:$0xff] }
0x1095   :  { %v6695_v12 = vpop.f32.mrf.mxu0  ;;  %4682 = vadd.xlane.f32.xlu0 %v4681_v50  ;;  %v5465_v50 = vld [vmem:[%s9721_s2 + $0x48] sm:$0xff] }
0x1096   :  { %v4671_v39 = vadd.f32 %v4650_v35, %v9777_v6  ;;  %v5467_v35 = vld [vmem:[%s9721_s2 + $0x58] sm:$0xff]  ;;  %v5584_v6 = vld [vmem:[%s9722_s3 + $0x70] sm:$0xff] }
0x1097   :  { %v4654_v57 = vpop.f32.mrf.mxu0  ;;  %v5585_v12 = vld [vmem:[%s9722_s3 + $0x78] sm:$0xff] }
0x1098   :  { %v4655_v1 = vadd.f32 %v4654_v57, %v4530_v7  ;;  %v4684_v48 = vsel %vm280_vm2, %v4671_v39, 0.0  ;;  %6735 = vmatpush3.msra.mxu0 %v5585_v12  ;;  %v5582_v57 = vld [vmem:[%s9722_s3 + $0x60] sm:$0xff]  ;;  %v9783_v12 = vsub.s32 4, %v7320_v47 }
0x1099   :  { %v6698_v60 = vpop.f32.mrf.mxu0  ;;  %4685 = vadd.xlane.f32.xlu0 %v4684_v48  ;;  %6736 = vmatprep.subr.mxu0 %v9761_v62 }
0x109a   :  { %v4672_v45 = vadd.f32 %v4655_v1, %v9778_v40  ;;  %6737 = vmatpush3.msra.mxu0 %v5584_v6  ;;  %v5581_v1 = vld [vmem:[%s9722_s3 + $0x58] sm:$0xff]  ;;  %v4791_v6 = vrot.slane %v9433_v13, %v9783_v12 }
0x109b   :  { %v4659_v52 = vpop.f32.mrf.mxu0  ;;  %6738 = vmatprep.subr.mxu0 %v9761_v62 }
0x109c   :  { %v4660_v38 = vadd.f32 %v4659_v52, %v4530_v7  ;;  %v4687_v36 = vsel %vm280_vm2, %v4672_v45, 0.0 }
0x109d   :  { %v6701_v29 = vpop.f32.mrf.mxu0  ;;  %4688 = vadd.xlane.f32.xlu1 %v4687_v36 }
0x109e   :  { %v4673_v8 = vadd.f32 %v4660_v38, %v9779_v11 }
0x109f   :  { %v4664_v26 = vpop.f32.mrf.mxu0 }
0x10a0   :  { %v4690_v31 = vsel %vm280_vm2, %v4673_v8, 0.0  ;;  %v4665_v27 = vadd.f32 %v4664_v26, %v4530_v7 }
0x10a1   :  { %4691 = vadd.xlane.f32.xlu0 %v4690_v31  ;;  %v6704_v17 = vpop.f32.mrf.mxu0 }
0x10a2   :  { %v4674_v25 = vadd.f32 %v4665_v27, %v9780_v22  ;;  %v9781_v17 = vsub.s32 2, %v7320_v47 }
0x10a4   :  { %v4693_v4 = vsel %vm280_vm2, %v4674_v25, 0.0  ;;  %v4769_v22 = vrot.slane %v9433_v13, %v9781_v17 }
0x10a5   :  { %4694 = vadd.xlane.f32.xlu1 %v4693_v4 }
0x1115   :  { %v4677_v3 = vpop.xlane.xlu0 %4676 }
0x1116   :  { %v4696_v42 = vmul.f32 0.03125, %v4677_v3  ;;  %v9782_v3 = vsub.s32 3, %v7320_v47 }
0x1118   :  { %v9452_v51 = vsub.f32 %v4668_v53, %v4696_v42  ;;  %v4780_v42 = vrot.slane %v9433_v13, %v9782_v3 }
0x111a   :  { %v4680_v54 = vpop.xlane.xlu1 %4679  ;;  %v4710_v34 = vmul.f32 %v9452_v51, %v9452_v51 }
0x111b   :  { %v4697_v9 = vmul.f32 0.03125, %v4680_v54 }
0x111c   :  { %v4717_v37 = vsel %vm280_vm2, %v4710_v34, 0.0 }
0x111d   :  { %v9456_v18 = vsub.f32 %v4669_v15, %v4697_v9  ;;  %4718 = vadd.xlane.f32.xlu0 %v4717_v37 }
0x111e   :  { %v4683_v10 = vpop.xlane.xlu0 %4682 }
0x111f   :  { %v4698_v43 = vmul.f32 0.03125, %v4683_v10  ;;  %v4711_v23 = vmul.f32 %v9456_v18, %v9456_v18 }
0x1121   :  { %v9461_v56 = vsub.f32 %v4670_v24, %v4698_v43  ;;  %v4720_v59 = vsel %vm280_vm2, %v4711_v23, 0.0  ;;  %v5471_v24 = vld [vmem:[%s9721_s2 + $0x78] sm:$0xff] }
0x1122   :  { %v4686_v33 = vpop.xlane.xlu0 %4685  ;;  %4721 = vadd.xlane.f32.xlu1 %v4720_v59  ;;  %6706 = vmatpush3.msra.mxu1 %v5471_v24 }
0x1123   :  { %v4699_v16 = vmul.f32 0.03125, %v4686_v33  ;;  %v4712_v2 = vmul.f32 %v9461_v56, %v9461_v56  ;;  %6707 = vmatprep.subr.mxu1 %v9761_v62 }
0x1124   :  { %6708 = vmatpush3.msra.mxu1 %v5469_v14 }
0x1125   :  { %v9466_v32 = vsub.f32 %v4671_v39, %v4699_v16  ;;  %v4723_v21 = vsel %vm280_vm2, %v4712_v2, 0.0  ;;  %6709 = vmatprep.subr.mxu1 %v9761_v62  ;;  %v5583_v39 = vld [vmem:[%s9722_s3 + $0x68] sm:$0xff] }
0x1126   :  { %4724 = vadd.xlane.f32.xlu0 %v4723_v21  ;;  %v4689_v55 = vpop.xlane.xlu1 %4688  ;;  %6710 = vmatpush3.msra.mxu1 %v5467_v35  ;;  %v5580_v35 = vld [vmem:[%s9722_s3 + $0x50] sm:$0xff] }
0x1127   :  { %v4700_v5 = vmul.f32 0.03125, %v4689_v55  ;;  %v4713_v7 = vmul.f32 %v9466_v32, %v9466_v32  ;;  %6711 = vmatprep.subr.mxu1 %v9761_v62  ;;  %6739 = vmatpush3.msra.mxu0 %v5583_v39 }
0x1128   :  { %6712 = vmatpush3.msra.mxu1 %v5465_v50  ;;  %6740 = vmatprep.subr.mxu0 %v9761_v62  ;;  %v5578_v50 = vld [vmem:[%s9722_s3 + $0x40] sm:$0xff] }
0x1129   :  { %v9471_v58 = vsub.f32 %v4672_v45, %v4700_v5  ;;  %v4726_v63 = vsel %vm280_vm2, %v4713_v7, 0.0  ;;  %6771 = vmatprep.subr.mxu1 %v9761_v62  ;;  %6741 = vmatpush3.msra.mxu0 %v5582_v57 }
0x112a   :  { %v4692_v44 = vpop.xlane.xlu0 %4691  ;;  %4727 = vadd.xlane.f32.xlu1 %v4726_v63  ;;  %6742 = vmatprep.subr.mxu0 %v9761_v62 }
0x112b   :  { %v4701_v53 = vmul.f32 0.03125, %v4692_v44  ;;  %v4714_v20 = vmul.f32 %v9471_v58, %v9471_v58  ;;  %6743 = vmatpush3.msra.mxu0 %v5581_v1 }
0x112c   :  { %6744 = vmatprep.subr.mxu0 %v9761_v62 }
0x112d   :  { %v9476_v41 = vsub.f32 %v4673_v8, %v4701_v53  ;;  %v4729_v49 = vsel %vm280_vm2, %v4714_v20, 0.0  ;;  %6745 = vmatpush3.msra.mxu0 %v5580_v35 }
0x112e   :  { %4730 = vadd.xlane.f32.xlu0 %v4729_v49  ;;  %v4695_v0 = vpop.xlane.xlu1 %4694  ;;  %6746 = vmatprep.subr.mxu0 %v9761_v62 }
0x112f   :  { %v4715_v15 = vmul.f32 %v9476_v41, %v9476_v41  ;;  %v4702_v19 = vmul.f32 0.03125, %v4695_v0 }
0x1131   :  { %v4732_v46 = vsel %vm280_vm2, %v4715_v15, 0.0  ;;  %v9482_v61 = vsub.f32 %v4674_v25, %v4702_v19 }
0x1132   :  { %4733 = vadd.xlane.f32.xlu1 %v4732_v46 }
0x1133   :  { %v4716_v30 = vmul.f32 %v9482_v61, %v9482_v61 }
0x1135   :  { %v4735_v28 = vsel %vm280_vm2, %v4716_v30, 0.0 }
0x1136   :  { %4736 = vadd.xlane.f32.xlu0 %v4735_v28 }
0x11a6   :  { %v4719_v48 = vpop.xlane.xlu0 %4718 }
0x11a7   :  { %v4738_v60 = vmul.f32 0.03125, %v4719_v48 }
0x11a9   :  { %v4745_v40 = vadd.f32 1e-05, %v4738_v60 }
0x11ab   :  { %v4722_v45 = vpop.xlane.xlu1 %4721  ;;  %7070 = vrsqrt.f32 %v4745_v40 }
0x11ac   :  { %v4739_v52 = vmul.f32 0.03125, %v4722_v45 }
0x11ae   :  { %v4746_v38 = vadd.f32 1e-05, %v4739_v52 }
0x11af   :  { %v4725_v36 = vpop.xlane.xlu0 %4724 }
0x11b0   :  { %7072 = vrsqrt.f32 %v4746_v38  ;;  %v4740_v29 = vmul.f32 0.03125, %v4725_v36 }
0x11b2   :  { %v4747_v11 = vadd.f32 1e-05, %v4740_v29 }
0x11b3   :  { %v4728_v8 = vpop.xlane.xlu1 %4727 }
0x11b4   :  { %7074 = vrsqrt.f32 %v4747_v11  ;;  %v4741_v26 = vmul.f32 0.03125, %v4728_v8 }
0x11b6   :  { %v4748_v31 = vadd.f32 1e-05, %v4741_v26 }
0x11b7   :  { %v4731_v27 = vpop.xlane.xlu0 %4730 }
0x11b8   :  { %7076 = vrsqrt.f32 %v4748_v31  ;;  %v4742_v25 = vmul.f32 0.03125, %v4731_v27  ;;  %v7071_v4 = vpop.eup %7070 }
0x11b9   :  { %v4759_v54 = vmul.f32 %v7071_v4, %v9452_v51 }
0x11ba   :  { %v4749_v9 = vadd.f32 1e-05, %v4742_v25 }
0x11bb   :  { %v4734_v34 = vpop.xlane.xlu1 %4733  ;;  %v4770_v37 = vmul.f32 %v4769_v22, %v4759_v54 }
0x11bc   :  { %7078 = vrsqrt.f32 %v4749_v9  ;;  %v4743_v10 = vmul.f32 0.03125, %v4734_v34 }
0x11bd   :  { %v7073_v43 = vpop.eup %7072  ;;  %v9530_v23 = vadd.f32 %v4780_v42, %v4770_v37 }
0x11be   :  { %v4760_v59 = vmul.f32 %v7073_v43, %v9456_v18  ;;  %v4750_v33 = vadd.f32 1e-05, %v4743_v10 }
0x11bf   :  { %6714 = vmatmul.mubr.msk.f32.vlgmr.msra.gmra.mxu1 %vm280_vm2, %v9530_v23  ;;  %v4737_v16 = vpop.xlane.xlu0 %4736 }
0x11c0   :  { %7080 = vrsqrt.f32 %v4750_v33  ;;  %v4771_v2 = vmul.f32 %v4769_v22, %v4760_v59  ;;  %v4744_v55 = vmul.f32 0.03125, %v4737_v16  ;;  %6716 = vmatprep.mubr.msk.f32.mxu1 %vm7131_vm0, %v9761_v62 }
0x11c1   :  { %v7075_v21 = vpop.eup %7074 }
0x11c2   :  { %v4761_v51 = vmul.f32 %v7075_v21, %v9461_v56  ;;  %v9538_v5 = vadd.f32 %v4780_v42, %v4771_v2  ;;  %v4751_v7 = vadd.f32 1e-05, %v4744_v55 }
0x11c4   :  { %6717 = vmatmul.mubr.msk.f32.gmra.mxu1 %vm280_vm2, %v9538_v5  ;;  %v4772_v18 = vmul.f32 %v4769_v22, %v4761_v51  ;;  %7082 = vrsqrt.f32 %v4751_v7 }
0x11c5   :  { %v7077_v63 = vpop.eup %7076  ;;  %6719 = vmatprep.mubr.msk.f32.mxu1 %vm7131_vm0, %v9761_v62 }
0x11c6   :  { %v4762_v44 = vmul.f32 %v7077_v63, %v9466_v32  ;;  %v9545_v53 = vadd.f32 %v4780_v42, %v4772_v18 }
0x11c8   :  { %6720 = vmatmul.mubr.msk.f32.gmra.mxu1 %vm280_vm2, %v9545_v53  ;;  %v4773_v56 = vmul.f32 %v4769_v22, %v4762_v44  ;;  %v9784_v44 = vsub.s32 5, %v7320_v47 }
0x11c9   :  { %v7079_v20 = vpop.eup %7078  ;;  %6722 = vmatprep.mubr.msk.f32.mxu1 %vm7131_vm0, %v9761_v62 }
0x11ca   :  { %v4763_v49 = vmul.f32 %v7079_v20, %v9471_v58  ;;  %v9552_v0 = vadd.f32 %v4780_v42, %v4773_v56  ;;  %v4932_v56 = vrot.slane %v9433_v13, %v9784_v44 }
0x11cc   :  { %6723 = vmatmul.mubr.msk.f32.gmra.mxu1 %vm280_vm2, %v9552_v0  ;;  %v4774_v15 = vmul.f32 %v4769_v22, %v4763_v49 }
0x11cd   :  { %v7081_v19 = vpop.eup %7080  ;;  %6725 = vmatprep.mubr.msk.f32.mxu1 %vm7131_vm0, %v9761_v62 }
0x11ce   :  { %v4764_v32 = vmul.f32 %v7081_v19, %v9476_v41  ;;  %v9559_v46 = vadd.f32 %v4780_v42, %v4774_v15 }
0x11d0   :  { %6726 = vmatmul.mubr.msk.f32.gmra.mxu1 %vm280_vm2, %v9559_v46  ;;  %v4775_v30 = vmul.f32 %v4769_v22, %v4764_v32 }
0x11d1   :  { %6728 = vmatprep.mubr.msk.f32.mxu1 %vm7131_vm0, %v9761_v62  ;;  %v7083_v58 = vpop.eup %7082 }
0x11d2   :  { %v9565_v28 = vadd.f32 %v4780_v42, %v4775_v30  ;;  %v4765_v24 = vmul.f32 %v7083_v58, %v9482_v61  ;;  %v5579_v61 = vld [vmem:[%s9722_s3 + $0x48] sm:$0xff] }
0x11d3   :  { %6747 = vmatpush3.msra.mxu0 %v5579_v61 }
0x11d4   :  { %6729 = vmatmul.mubr.msk.f32.gmra.mxu1 %vm280_vm2, %v9565_v28  ;;  %v4776_v41 = vmul.f32 %v4769_v22, %v4765_v24  ;;  %6748 = vmatprep.subr.mxu0 %v9761_v62 }
0x11d5   :  { %6731 = vmatprep.mubr.msk.f32.mxu1 %vm7131_vm0, %v9761_v62  ;;  %6749 = vmatpush3.msra.mxu0 %v5578_v50 }
0x11d6   :  { %v9572_v14 = vadd.f32 %v4780_v42, %v4776_v41 }
0x11d8   :  { %6732 = vmatmul.mubr.msk.f32.gmra.mxu1 %vm280_vm2, %v9572_v14 }
0x11d9   :  { %6785 = vmatprep.mubr.msk.f32.mxu1 %vm7131_vm0, %v9761_v62 }
0x127f   :  { %v4879_v39 = vpop.f32.mrf.mxu1 }
0x1280   :  { %v4880_v57 = vadd.f32 %v4879_v39, %v4791_v6 }
0x1281   :  { %v6715_v1 = vpop.f32.mrf.mxu1 }
0x1282   :  { %v4913_v48 = vmax.f32 %v4880_v57, 0.0 }
0x1284   :  { %v4884_v60 = vpop.f32.mrf.mxu1  ;;  %6751 = vmatmul.mubr.msk.f32.vlgmr.msra.gmra.mxu0 %vm2481_vm5, %v4913_v48 }
0x1285   :  { %v4885_v40 = vadd.f32 %v4884_v60, %v4791_v6  ;;  %6753 = vmatprep.mubr.msk.f32.mxu0 %vm7131_vm0, %v9761_v62 }
0x1286   :  { %v6718_v45 = vpop.f32.mrf.mxu1 }
0x1287   :  { %v4914_v52 = vmax.f32 %v4885_v40, 0.0 }
0x1288   :  { %v4889_v38 = vpop.f32.mrf.mxu1 }
0x1289   :  { %v4890_v36 = vadd.f32 %v4889_v38, %v4791_v6  ;;  %6754 = vmatmul.mubr.msk.f32.gmra.mxu0 %vm2481_vm5, %v4914_v52 }
0x128a   :  { %v6721_v29 = vpop.f32.mrf.mxu1  ;;  %6756 = vmatprep.mubr.msk.f32.mxu0 %vm7131_vm0, %v9761_v62 }
0x128b   :  { %v4915_v11 = vmax.f32 %v4890_v36, 0.0 }
0x128c   :  { %v4894_v8 = vpop.f32.mrf.mxu1 }
0x128d   :  { %v4895_v26 = vadd.f32 %v4894_v8, %v4791_v6  ;;  %6757 = vmatmul.mubr.msk.f32.gmra.mxu0 %vm2481_vm5, %v4915_v11 }
0x128e   :  { %v6724_v31 = vpop.f32.mrf.mxu1  ;;  %6759 = vmatprep.mubr.msk.f32.mxu0 %vm7131_vm0, %v9761_v62 }
0x128f   :  { %v4916_v27 = vmax.f32 %v4895_v26, 0.0 }
0x1290   :  { %v4899_v17 = vpop.f32.mrf.mxu1 }
0x1291   :  { %v4900_v22 = vadd.f32 %v4899_v17, %v4791_v6  ;;  %6760 = vmatmul.mubr.msk.f32.gmra.mxu0 %vm2481_vm5, %v4916_v27 }
0x1292   :  { %v6727_v25 = vpop.f32.mrf.mxu1  ;;  %6762 = vmatprep.mubr.msk.f32.mxu0 %vm7131_vm0, %v9761_v62 }
0x1293   :  { %v4917_v4 = vmax.f32 %v4900_v22, 0.0 }
0x1294   :  { %v4904_v3 = vpop.f32.mrf.mxu1 }
0x1295   :  { %v4905_v42 = vadd.f32 %v4904_v3, %v4791_v6  ;;  %6763 = vmatmul.mubr.msk.f32.gmra.mxu0 %vm2481_vm5, %v4917_v4 }
0x1296   :  { %v6730_v54 = vpop.f32.mrf.mxu1  ;;  %6765 = vmatprep.mubr.msk.f32.mxu0 %vm7131_vm0, %v9761_v62 }
0x1297   :  { %v4918_v9 = vmax.f32 %v4905_v42, 0.0 }
0x1298   :  { %v4909_v34 = vpop.f32.mrf.mxu1 }
0x1299   :  { %6766 = vmatmul.mubr.msk.f32.gmra.mxu0 %vm2481_vm5, %v4918_v9  ;;  %v4910_v37 = vadd.f32 %v4909_v34, %v4791_v6 }
0x129a   :  { %6768 = vmatprep.mubr.msk.f32.mxu0 %vm7131_vm0, %v9761_v62  ;;  %v6733_v10 = vpop.f32.mrf.mxu1 }
0x129b   :  { %v4919_v43 = vmax.f32 %v4910_v37, 0.0 }
0x129d   :  { %6769 = vmatmul.mubr.msk.f32.gmra.mxu0 %vm2481_vm5, %v4919_v43 }
0x1344   :  { %v5020_v59 = vpop.f32.mrf.mxu0 }
0x1345   :  { %v5021_v48 = vadd.f32 %v5020_v59, %v4932_v56 }
0x1346   :  { %v6752_v33 = vpop.f32.mrf.mxu0 }
0x1349   :  { %v5025_v16 = vpop.f32.mrf.mxu0 }
0x134a   :  { %v5026_v30 = vadd.f32 %v5025_v16, %v4932_v56 }
0x134b   :  { %v6755_v2 = vpop.f32.mrf.mxu0 }
0x134c   :  { %v5055_v6 = vadd.f32 %v5026_v30, %v9538_v5  ;;  %v5054_v5 = vadd.f32 %v5021_v48, %v9530_v23 }
0x134d   :  { %v5030_v21 = vpop.f32.mrf.mxu0 }
0x134e   :  { %v5031_v57 = vadd.f32 %v5030_v21, %v4932_v56 }
0x134f   :  { %v6758_v55 = vpop.f32.mrf.mxu0 }
0x1350   :  { %v5056_v60 = vadd.f32 %v5031_v57, %v9545_v53 }
0x1351   :  { %v5035_v51 = vpop.f32.mrf.mxu0 }
0x1352   :  { %v5036_v49 = vadd.f32 %v5035_v51, %v4932_v56 }
0x1353   :  { %v6761_v7 = vpop.f32.mrf.mxu0 }
0x1354   :  { %v5057_v58 = vadd.f32 %v5036_v49, %v9552_v0  ;;  %v5064_v0 = vsel %vm280_vm2, %v5055_v6, 0.0 }
0x1355   :  { %v5040_v18 = vpop.f32.mrf.mxu0 }
0x1356   :  { %v5041_v35 = vadd.f32 %v5040_v18, %v4932_v56  ;;  %v5070_v39 = vsel %vm280_vm2, %v5057_v58, 0.0 }
0x1357   :  { %v6764_v63 = vpop.f32.mrf.mxu0 }
0x1358   :  { %v5058_v1 = vadd.f32 %v5041_v35, %v9559_v46  ;;  %v5061_v46 = vsel %vm280_vm2, %v5054_v5, 0.0 }
0x1359   :  { %v5045_v20 = vpop.f32.mrf.mxu0 }
0x135a   :  { %v5046_v15 = vadd.f32 %v5045_v20, %v4932_v56  ;;  %v5073_v40 = vsel %vm280_vm2, %v5058_v1, 0.0 }
0x135b   :  { %v6767_v19 = vpop.f32.mrf.mxu0 }
0x135c   :  { %v5059_v32 = vadd.f32 %v5046_v15, %v9565_v28 }
0x135d   :  { %v5050_v24 = vpop.f32.mrf.mxu0 }
0x135e   :  { %v5076_v41 = vsel %vm280_vm2, %v5059_v32, 0.0  ;;  %v5051_v61 = vadd.f32 %v5050_v24, %v4932_v56 }
0x135f   :  { %5077 = vadd.xlane.f32.xlu0 %v5076_v41  ;;  %v6770_v50 = vpop.f32.mrf.mxu0 }
0x1360   :  { %v5060_v12 = vadd.f32 %v5051_v61, %v9572_v14  ;;  %v5067_v14 = vsel %vm280_vm2, %v5056_v60, 0.0 }
0x1362   :  { %v5079_v28 = vsel %vm280_vm2, %v5060_v12, 0.0 }
0x1363   :  { %5071 = vadd.xlane.f32.xlu0 %v5070_v39  ;;  %5080 = vadd.xlane.f32.xlu1 %v5079_v28 }
0x1367   :  { %5065 = vadd.xlane.f32.xlu0 %v5064_v0  ;;  %5074 = vadd.xlane.f32.xlu1 %v5073_v40 }
0x136b   :  { %5068 = vadd.xlane.f32.xlu1 %v5067_v14 }
0x136f   :  { %5062 = vadd.xlane.f32.xlu1 %v5061_v46 }
0x13e8   :  { %v5078_v45 = vpop.xlane.xlu0 %5077 }
0x13e9   :  { %v5087_v52 = vmul.f32 0.03125, %v5078_v45 }
0x13eb   :  { %v9628_v38 = vsub.f32 %v5059_v32, %v5087_v52 }
0x13ec   :  { %v5072_v36 = vpop.xlane.xlu0 %5071  ;;  %v5081_v11 = vpop.xlane.xlu1 %5080 }
0x13ed   :  { %v5085_v29 = vmul.f32 0.03125, %v5072_v36  ;;  %v5101_v53 = vmul.f32 %v9628_v38, %v9628_v38  ;;  %v5088_v8 = vmul.f32 0.03125, %v5081_v11  ;;  %v124_v36 = vadd.s32 1, %v7320_v47 }
0x13ef   :  { %v9632_v26 = vsub.f32 %v5057_v58, %v5085_v29  ;;  %v5118_v23 = vsel %vm280_vm2, %v5101_v53, 0.0  ;;  %v9635_v31 = vsub.f32 %v5060_v12, %v5088_v8  ;;  %v9786_v53 = vsub.s32 7, %v7320_v47 }
0x13f0   :  { %v5066_v27 = vpop.xlane.xlu0 %5065  ;;  %5119 = vadd.xlane.f32.xlu1 %v5118_v23  ;;  %v5075_v22 = vpop.xlane.xlu1 %5074 }
0x13f1   :  { %v5083_v17 = vmul.f32 0.03125, %v5066_v27  ;;  %v5099_v25 = vmul.f32 %v9632_v26, %v9632_v26  ;;  %v5086_v4 = vmul.f32 0.03125, %v5075_v22  ;;  %v5102_v3 = vmul.f32 %v9635_v31, %v9635_v31 }
0x13f2   :  { %v5166_v8 = vrot.slane %v9433_v13, %v9786_v53 }
0x13f3   :  { %v9641_v42 = vsub.f32 %v5055_v6, %v5083_v17  ;;  %v5112_v54 = vsel %vm280_vm2, %v5099_v25, 0.0  ;;  %v9644_v9 = vsub.f32 %v5058_v1, %v5086_v4  ;;  %v5121_v34 = vsel %vm280_vm2, %v5102_v3, 0.0 }
0x13f4   :  { %5113 = vadd.xlane.f32.xlu1 %v5112_v54  ;;  %5122 = vadd.xlane.f32.xlu0 %v5121_v34  ;;  %v5069_v37 = vpop.xlane.xlu1 %5068  ;;  %v125_v4 = vmul.u32 28, %v124_v36 }
0x13f5   :  { %v5097_v10 = vmul.f32 %v9641_v42, %v9641_v42  ;;  %v5084_v43 = vmul.f32 0.03125, %v5069_v37  ;;  %v5100_v59 = vmul.f32 %v9644_v9, %v9644_v9 }
0x13f7   :  { %v5106_v33 = vsel %vm280_vm2, %v5097_v10, 0.0  ;;  %v9652_v16 = vsub.f32 %v5056_v60, %v5084_v43  ;;  %v5115_v2 = vsel %vm280_vm2, %v5100_v59, 0.0  ;;  %v9787_v10 = vld [vmem:[#allocation10_spill] sm:$0xff] }
0x13f8   :  { %5107 = vadd.xlane.f32.xlu1 %v5106_v33  ;;  %5116 = vadd.xlane.f32.xlu0 %v5115_v2  ;;  %v5063_v21 = vpop.xlane.xlu1 %5062  ;;  %vm126_vm6 = vcmp.lt.s32.totalorder %v9787_v10, %v125_v4 }
0x13f9   :  { %v5082_v55 = vmul.f32 0.03125, %v5063_v21  ;;  %v5098_v51 = vmul.f32 %v9652_v16, %v9652_v16 }
0x13fb   :  { %v9657_v7 = vsub.f32 %v5054_v5, %v5082_v55  ;;  %v5109_v18 = vsel %vm280_vm2, %v5098_v51, 0.0  ;;  %v9785_v5 = vsub.s32 6, %v7320_v47 }
0x13fc   :  { %5110 = vadd.xlane.f32.xlu0 %v5109_v18  ;;  %v5249_v18 = vld [vmem:[%s9724_s5 + $0x10] sm:$0xff] }
0x13fd   :  { %v5096_v63 = vmul.f32 %v9657_v7, %v9657_v7  ;;  %v5155_v14 = vrot.slane %v9433_v13, %v9785_v5 }
0x13ff   :  { %v5103_v44 = vsel %vm280_vm2, %v5096_v63, 0.0  ;;  %v5248_v63 = vld [vmem:[%s9724_s5 + $0x8] sm:$0xff] }
0x1400   :  { %5104 = vadd.xlane.f32.xlu0 %v5103_v44  ;;  %v5247_v44 = vld [vmem:[%s9724_s5] sm:$0xff] }
0x1479   :  { %v5120_v56 = vpop.xlane.xlu1 %5119 }
0x147a   :  { %v5129_v20 = vmul.f32 0.03125, %v5120_v56 }
0x147c   :  { %v5136_v49 = vadd.f32 1e-05, %v5129_v20 }
0x147d   :  { %v5114_v15 = vpop.xlane.xlu1 %5113  ;;  %v5123_v32 = vpop.xlane.xlu0 %5122 }
0x147e   :  { %v5127_v19 = vmul.f32 0.03125, %v5114_v15  ;;  %7084 = vrsqrt.f32 %v5136_v49  ;;  %v5130_v30 = vmul.f32 0.03125, %v5123_v32  ;;  %v5594_v49 = vld [vmem:[%s9724_s5 + $0x20] ss:$0 sm:$0xff] }
0x1480   :  { %v5134_v58 = vadd.f32 1e-05, %v5127_v19  ;;  %v5137_v24 = vadd.f32 1e-05, %v5130_v30 }
0x1481   :  { %v5108_v41 = vpop.xlane.xlu1 %5107  ;;  %v5117_v61 = vpop.xlane.xlu0 %5116 }
0x1482   :  { %7086 = vrsqrt.f32 %v5134_v58  ;;  %v5125_v35 = vmul.f32 0.03125, %v5108_v41  ;;  %v5128_v50 = vmul.f32 0.03125, %v5117_v61 }
0x1483   :  { %7088 = vrsqrt.f32 %v5137_v24 }
0x1484   :  { %v5132_v12 = vadd.f32 1e-05, %v5125_v35  ;;  %v5135_v6 = vadd.f32 1e-05, %v5128_v50 }
0x1485   :  { %v5111_v39 = vpop.xlane.xlu0 %5110 }
0x1486   :  { %7090 = vrsqrt.f32 %v5132_v12  ;;  %v5126_v57 = vmul.f32 0.03125, %v5111_v39 }
0x1487   :  { %7092 = vrsqrt.f32 %v5135_v6 }
0x1488   :  { %v5133_v1 = vadd.f32 1e-05, %v5126_v57 }
0x1489   :  { %v5105_v28 = vpop.xlane.xlu0 %5104 }
0x148a   :  { %7094 = vrsqrt.f32 %v5133_v1  ;;  %v5124_v0 = vmul.f32 0.03125, %v5105_v28 }
0x148b   :  { %v7085_v48 = vpop.eup %7084 }
0x148c   :  { %v5131_v60 = vadd.f32 1e-05, %v5124_v0  ;;  %v5150_v46 = vmul.f32 %v7085_v48, %v9628_v38  ;;  %v122_v38 = vmul.u32 28, %v7320_v47 }
0x148e   :  { %7096 = vrsqrt.f32 %v5131_v60  ;;  %v5161_v23 = vmul.f32 %v5155_v14, %v5150_v46  ;;  %vm9680_vm3 = vcmp.ge.s32.totalorder %v9787_v10, %v122_v38 }
0x148f   :  { %v7087_v40 = vpop.eup %7086  ;;  %vm127_vm8 = vmand %vm9680_vm3, %vm126_vm6 }
0x1490   :  { %v7089_v45 = vpop.eup %7088  ;;  %v5148_v27 = vmul.f32 %v7087_v40, %v9632_v26  ;;  %v128_v51 = vsel %vm127_vm8, 0.035714287, %v9761_v62 }
0x1491   :  { %v5151_v52 = vmul.f32 %v7089_v45, %v9635_v31  ;;  %v5172_v31 = vadd.f32 %v5166_v8, %v5161_v23 }
0x1492   :  { %v5159_v54 = vmul.f32 %v5155_v14, %v5148_v27 }
0x1493   :  { %v7091_v29 = vpop.eup %7090  ;;  %v5162_v11 = vmul.f32 %v5155_v14, %v5151_v52 }
0x1494   :  { %v7093_v17 = vpop.eup %7092  ;;  %v5146_v34 = vmul.f32 %v7091_v29, %v9641_v42  ;;  %v5170_v47 = vadd.f32 %v5166_v8, %v5159_v54 }
0x1495   :  { %v5173_v22 = vadd.f32 %v5166_v8, %v5162_v11  ;;  %v5149_v25 = vmul.f32 %v7093_v17, %v9644_v9 }
0x1496   :  { %v5157_v59 = vmul.f32 %v5155_v14, %v5146_v34 }
0x1497   :  { %6772 = vmatpush3.msra.mxu1 %v5173_v22  ;;  %v5160_v3 = vmul.f32 %v5155_v14, %v5149_v25  ;;  %v7095_v37 = vpop.eup %7094 }
0x1498   :  { %6773 = vmatprep.subr.mxu1 %v9761_v62  ;;  %v5147_v26 = vmul.f32 %v7095_v37, %v9652_v16  ;;  %v5168_v2 = vadd.f32 %v5166_v8, %v5157_v59 }
0x1499   :  { %6774 = vmatpush3.msra.mxu1 %v5172_v31  ;;  %v5171_v13 = vadd.f32 %v5166_v8, %v5160_v3 }
0x149a   :  { %6775 = vmatprep.subr.mxu1 %v9761_v62  ;;  %v5158_v43 = vmul.f32 %v5155_v14, %v5147_v26 }
0x149b   :  { %6776 = vmatpush3.msra.mxu1 %v5171_v13  ;;  %v7097_v42 = vpop.eup %7096 }
0x149c   :  { %6777 = vmatprep.subr.mxu1 %v9761_v62  ;;  %v5169_v33 = vadd.f32 %v5166_v8, %v5158_v43  ;;  %v5145_v16 = vmul.f32 %v7097_v42, %v9657_v7  ;;  %v5250_v7 = vld [vmem:[%s9724_s5 + $0x18] sm:$0xff] }
0x149d   :  { %6778 = vmatpush3.msra.mxu1 %v5170_v47 }
0x149e   :  { %6779 = vmatprep.subr.mxu1 %v9761_v62  ;;  %v5156_v21 = vmul.f32 %v5155_v14, %v5145_v16 }
0x149f   :  { %6780 = vmatpush3.msra.mxu1 %v5169_v33 }
0x14a0   :  { %6781 = vmatprep.subr.mxu1 %v9761_v62  ;;  %v5167_v55 = vadd.f32 %v5166_v8, %v5156_v21 }
0x14a1   :  { %6782 = vmatpush3.msra.mxu1 %v5168_v2 }
0x14a2   :  { %6783 = vmatprep.subr.mxu1 %v9761_v62 }
0x14a3   :  { %6784 = vmatpush3.msra.mxu1 %v5167_v55 }
0x14a4   :  { %6786 = vmatmul.mubr.msk.f32.vlgmr.msra.gmra.mxu1 %vm566_vm7, %v128_v51  ;;  %6788 = vmatprep.subr.mxu1 %v9761_v62 }
0x14a5   :  { %6789 = vmatpush3.msra.mxu1 %v5250_v7  ;;  %6796 = vmatprep.mubr.msk.f32.mxu1 %vm7131_vm0, %v9761_v62  ;;  %vm5329_vm0 = vcmask 74752  }
0x14a6   :  { %6790 = vmatprep.subr.mxu1 %v9761_v62 }
0x14a7   :  { %6791 = vmatpush3.msra.mxu1 %v5249_v18 }
0x14a8   :  { %6792 = vmatprep.subr.mxu1 %v9761_v62 }
0x14a9   :  { %6793 = vmatpush3.msra.mxu1 %v5248_v63 }
0x14aa   :  { %6794 = vmatprep.subr.mxu1 %v9761_v62 }
0x14ab   :  { %6795 = vmatpush3.msra.mxu1 %v5247_v44 }
0x1564   :  { %v5243_v56 = vpop.f32.mrf.mxu1 }
0x1565   :  { %6797 = vmatmul.mubr.msk.f32.vlgmr.msra.gmra.mxu1 %vm280_vm2, %v5243_v56 }
0x1566   :  { %v6787_v20 = vpop.f32.mrf.mxu1 }
0x1625   :  { %v5325_v15 = vpop.f32.mrf.mxu1 }
0x1626   :  { %v5326_v19 = vadd.f32 %v5594_v49, %v5325_v15 }
0x1627   :  { %v6798_v62 = vpop.f32.mrf.mxu1 }
0x1628   :  { %5330 = vst.msk [vmem:[#allocation3] sm:$0x3] %vm5329_vm0, %v5326_v19 }
0x1629   :  { %7119 = shalt.err (!%p7116_p4)
}
0x162a   :  { %5340 = dma.vmem_to_hbm [thread:$0]  %s5338_s23, 32, %s9725_s6, [#allocation4]  }
0x162b   :  { %7128 = dma.done.wait [#allocation4], 32  }
0x162c   :  { %7129 = vsyncadd [#allocation4], 4294967264 }
0x162d   :  { %5344 = vsyncpa [#allocation4], 1 }

</bundles_post_ra>
